<compile_context>
chip_gen: v7x
topology: tpu7x:2x2x1
jax: 0.10.0
libtpu: 0.0.40
codegen_flags: <defaults>
</compile_context>

<pallas_src>
import functools

import jax
import jax.numpy as jnp
from jax.experimental import pallas as pl
from jax.experimental.pallas import tpu as pltpu


# ---- model sizes ("small" config) -------------------------------------------
L_IN = 1024    # size[0]
D_HID = 512    # size[1]
D_ATT = 256    # size[2]
N_CLASSES = 2

NEG_BIG = -1e30   # finite "minus infinity" (avoids inf-inf NaNs in online max)


def clam_sb_kernel(h_ref, w1_ref, b1_ref, wa_ref, ba_ref, wb_ref, bb_ref,
                   wc_ref, bc_ref, wcls_ref, bcls_ref,
                   araw_ref, logits_ref, yprob_ref, m_ref,
                   m_s, l_s, acc_s, *, n_valid):
    i = pl.program_id(0)
    tn = h_ref.shape[0]

    # ---- init online-softmax accumulators on the first tile ---------------
    @pl.when(i == 0)
    def _init():
        m_s[...] = jnp.full_like(m_s, NEG_BIG)
        l_s[...] = jnp.zeros_like(l_s)
        acc_s[...] = jnp.zeros_like(acc_s)

    # ---- fc + ReLU (h streamed as bf16; f32 MXU accumulation) --------------
    h1 = jnp.dot(h_ref[...], w1_ref[...],
                 preferred_element_type=jnp.float32) + b1_ref[...]
    h1 = jnp.maximum(h1, 0.0)                                    # [TN, D_HID] f32
    h1_bf = h1.astype(jnp.bfloat16)

    # ---- gated attention (Attn_Net_Gated) ----------------------------------
    a = jnp.tanh(jnp.dot(h1_bf, wa_ref[...],
                         preferred_element_type=jnp.float32) + ba_ref[...])
    g = jax.nn.sigmoid(jnp.dot(h1_bf, wb_ref[...],
                               preferred_element_type=jnp.float32) + bb_ref[...])
    ab = (a * g).astype(jnp.bfloat16)                            # [TN, D_ATT]

    # attention_c as a lane-dense [1, TN] row on the MXU:
    # scores = Wc(1, D_ATT) contracted with ab(TN, D_ATT) over the 256 axis.
    s_row = jax.lax.dot_general(
        wc_ref[...].astype(jnp.bfloat16), ab,
        (((1,), (1,)), ((), ())),
        preferred_element_type=jnp.float32) + bc_ref[...]        # [1, TN]
    # Raw pre-softmax scores (padded columns are sliced off in the wrapper).
    araw_ref[...] = s_row

    # ---- mask padded columns of the last tile ------------------------------
    cid = i * tn + jax.lax.broadcasted_iota(jnp.int32, (1, tn), 1)
    valid = cid < n_valid
    s_m = jnp.where(valid, s_row, NEG_BIG)

    # ---- online softmax over instances; M accumulated on the MXU -----------
    m_prev = m_s[...]                                            # [1,1]
    m_new = jnp.maximum(m_prev, jnp.max(s_m, axis=1, keepdims=True))
    alpha = jnp.exp(m_prev - m_new)                              # [1,1]
    p = jnp.where(valid, jnp.exp(s_m - m_new), 0.0)              # [1, TN] f32

    l_s[...] = alpha * l_s[...] + jnp.sum(p, axis=1, keepdims=True)
    acc_s[...] = alpha * acc_s[...] + jnp.dot(
        p.astype(jnp.bfloat16), h1_bf, preferred_element_type=jnp.float32)
    m_s[...] = m_new

    # ---- finalize: normalize, classifier, bag-level softmax ---------------
    @pl.when(i == pl.num_programs(0) - 1)
    def _finalize():
        M = acc_s[...] / l_s[...]                                # exact divide
        m_ref[...] = M

        logits = jnp.dot(M.astype(jnp.bfloat16), wcls_ref[...],
                         preferred_element_type=jnp.float32) + bcls_ref[...]
        logits_ref[...] = logits                                 # [1, C]

        lmax = jnp.max(logits, axis=1, keepdims=True)
        le = jnp.exp(logits - lmax)
        yprob_ref[...] = le / jnp.sum(le, axis=1, keepdims=True)  # exact softmax


def clam_sb_forward(h, params, *, tn=1024):
    """CLAM_SB forward. Returns (logits, Y_prob, Y_hat, A_raw, {}).

    tn: instance tile size (multiple of 128). Default 1024 amortizes the
    per-grid-step overhead and MXU weight pushes on all generations; it is
    automatically shrunk for small bags.
    """
    (w1, b1, wa, ba, wb, bb, wc, bc, wcls, bcls) = params
    n, l_in = h.shape
    assert l_in == L_IN

    # Adaptive instance tile: multiple of 128, no bigger than the rounded bag.
    tn = max(128, min(int(tn), pl.cdiv(n, 128) * 128))
    tn = (tn // 128) * 128
    n_pad = pl.cdiv(n, tn) * tn
    num_tiles = n_pad // tn

    # Stream h in bf16 (it is quantized to bf16 for the MXU anyway).
    h = h.astype(jnp.bfloat16)
    if n_pad != n:
        h = jnp.pad(h, ((0, n_pad - n), (0, 0)))

    # VMEM budget derived from tn: double-buffered bf16 h tiles + (default
    # double-buffered) bf16 weights + f32 intermediates, with 2x margin.
    # Capped at 48 MiB to stay inside v7x's 64 MiB physical VMEM.
    bytes_h = 2 * tn * L_IN * 2
    bytes_w = 2 * 2 * (L_IN * D_HID + 2 * D_HID * D_ATT + D_HID * N_CLASSES)
    bytes_inter = tn * 4 * (D_HID + 3 * D_ATT) + tn * 2 * D_HID
    vmem_limit = int(min(48 * 2**20,
                         max(32 * 2**20, 2 * (bytes_h + bytes_w + bytes_inter))))

    def full(shape):
        # Pinned (constant index_map) weights / biases.
        return pl.BlockSpec(shape, lambda i: (0,) * len(shape))

    grid_spec = pltpu.PrefetchScalarGridSpec(
        num_scalar_prefetch=0,
        grid=(num_tiles,),
        in_specs=[
            pl.BlockSpec((tn, L_IN), lambda i: (i, 0)),   # h: streamed bf16 row tiles
            full((L_IN, D_HID)),        # W1   (bf16, pinned)
            full((1, D_HID)),           # b1
            full((D_HID, D_ATT)),       # Wa   (bf16, pinned)
            full((1, D_ATT)),           # ba
            full((D_HID, D_ATT)),       # Wb   (bf16, pinned)
            full((1, D_ATT)),           # bb
            full((1, D_ATT)),           # Wc row (f32)
            full((1, 1)),               # bc
            full((D_HID, N_CLASSES)),   # Wcls (bf16, pinned)
            full((1, N_CLASSES)),       # bcls
        ],
        out_specs=(
            pl.BlockSpec((1, tn), lambda i: (0, i)),          # A_raw (lane-dense row)
            pl.BlockSpec((1, N_CLASSES), lambda i: (0, 0)),   # logits
            pl.BlockSpec((1, N_CLASSES), lambda i: (0, 0)),   # Y_prob
            pl.BlockSpec((1, D_HID), lambda i: (0, 0)),       # M (features)
        ),
        scratch_shapes=[
            pltpu.VMEM((1, 1), jnp.float32),       # running max
            pltpu.VMEM((1, 1), jnp.float32),       # running sum
            pltpu.VMEM((1, D_HID), jnp.float32),   # running weighted features
        ],
    )

    out_shapes = (
        jax.ShapeDtypeStruct((1, n_pad), jnp.float32),
        jax.ShapeDtypeStruct((1, N_CLASSES), jnp.float32),
        jax.ShapeDtypeStruct((1, N_CLASSES), jnp.float32),
        jax.ShapeDtypeStruct((1, D_HID), jnp.float32),
    )

    a_row, logits, y_prob, M = pl.pallas_call(
        functools.partial(clam_sb_kernel, n_valid=n),
        grid_spec=grid_spec,
        out_shape=out_shapes,
        compiler_params=pltpu.CompilerParams(
            dimension_semantics=("arbitrary",),   # N axis carries accumulators
            vmem_limit_bytes=vmem_limit,
        ),
    )(h, w1, b1, wa, ba, wb, bb, wc, bc, wcls, bcls)

    # glue (plain JAX): drop padded columns, argmax.
    A_raw = a_row[:, :n]                                  # [1, N]
    Y_hat = jnp.argmax(logits, axis=1, keepdims=True)     # [1, 1]
    return logits, y_prob, Y_hat, A_raw, {}


def clam_sb_reference(h, params):
    """Pure-JAX reference mirroring the kernel's bf16 MXU-input quantization."""
    (w1, b1, wa, ba, wb, bb, wc, bc, wcls, bcls) = params
    f32 = jnp.float32

    def q(x):  # bf16 round-trip (MXU input quantization)
        return x.astype(jnp.bfloat16).astype(f32)

    hq = q(h)
    h1 = jnp.maximum(hq @ q(w1) + b1, 0.0)
    h1q = q(h1)
    a = jnp.tanh(h1q @ q(wa) + ba)
    g = jax.nn.sigmoid(h1q @ q(wb) + bb)
    scores = q(a * g) @ q(wc).T + bc                      # [N, 1]
    A_raw = scores.T                                      # [1, N]
    m = jnp.max(scores)
    p = jnp.exp(scores - m)                               # [N, 1]
    l = jnp.sum(p)
    M = (q(p).T @ h1q) / l                                # [1, D_HID]
    logits = q(M) @ q(wcls) + bcls
    y_prob = jax.nn.softmax(logits, axis=1)
    return logits, y_prob, A_raw, M


def init_params(key):
    """Deterministic synthetic parameters (xavier-ish weights, zero bias)."""
    ks = jax.random.split(key, 5)

    def lin(k, fan_in, fan_out, dtype=jnp.float32):
        std = (2.0 / (fan_in + fan_out)) ** 0.5
        w = jax.random.normal(k, (fan_in, fan_out), jnp.float32) * std
        b = jnp.zeros((1, fan_out), jnp.float32)
        return w.astype(dtype), b

    w1, b1 = lin(ks[0], L_IN, D_HID, jnp.bfloat16)        # Linear(1024, 512)
    wa, ba = lin(ks[1], D_HID, D_ATT, jnp.bfloat16)       # attention_a
    wb, bb = lin(ks[2], D_HID, D_ATT, jnp.bfloat16)       # attention_b
    wc_full, bc = lin(ks[3], D_ATT, 1)                    # attention_c (f32, tiny)
    wc = wc_full.T                                        # [1, D_ATT] row
    wcls, bcls = lin(ks[4], D_HID, N_CLASSES, jnp.bfloat16)  # classifiers
    return (w1, b1, wa, ba, wb, bb, wc, bc, wcls, bcls)


def _check(h_in, params, fwd):
    logits, y_prob, y_hat, a_raw, _ = fwd(h_in, params)
    jax.block_until_ready((logits, y_prob, y_hat, a_raw))
    n = h_in.shape[0]

    # shape checks
    assert logits.shape == (1, N_CLASSES)
    assert y_prob.shape == (1, N_CLASSES)
    assert y_hat.shape == (1, 1)
    assert a_raw.shape == (1, n)

    # numerical check against the pure-JAX reference (same bf16 quantization)
    r_logits, r_prob, r_araw, _ = jax.jit(clam_sb_reference)(h_in, params)
    assert jnp.allclose(jnp.sum(y_prob), 1.0, atol=1e-3)
    assert jnp.allclose(y_prob, r_prob, atol=2e-2)
    assert jnp.allclose(logits, r_logits, atol=2e-2, rtol=2e-2)
    assert jnp.allclose(a_raw, r_araw, atol=2e-2, rtol=2e-2)


if __name__ == "__main__":
    key = jax.random.PRNGKey(0)
    k_h1, k_h2, k_p = jax.random.split(key, 3)
    params = init_params(k_p)

    # Case 1: small bag, not a multiple of 128 (single adaptive tile + masking).
    h_a = jax.random.normal(k_h1, (200, L_IN), jnp.float32)
    _check(h_a, params, jax.jit(clam_sb_forward))

    # Case 2: multi-tile online-softmax path (3 tiles of 256, masked tail).
    h_b = jax.random.normal(k_h2, (700, L_IN), jnp.float32)
    _check(h_b, params, jax.jit(functools.partial(clam_sb_forward, tn=256)))

    print("KERNEL_OK")
</pallas_src>

<mosaic_0001>
module attributes {stable_mosaic.version = 11 : i64} {
  func.func @clam_sb_kernel(%arg0: i32, %arg1: memref<256x1024xbf16, #tpu.memory_space<vmem>>, %arg2: memref<1024x512xbf16, #tpu.memory_space<vmem>>, %arg3: memref<1x512xf32, #tpu.memory_space<vmem>>, %arg4: memref<512x256xbf16, #tpu.memory_space<vmem>>, %arg5: memref<1x256xf32, #tpu.memory_space<vmem>>, %arg6: memref<512x256xbf16, #tpu.memory_space<vmem>>, %arg7: memref<1x256xf32, #tpu.memory_space<vmem>>, %arg8: memref<1x256xf32, #tpu.memory_space<vmem>>, %arg9: memref<1x1xf32, #tpu.memory_space<vmem>>, %arg10: memref<512x2xbf16, #tpu.memory_space<vmem>>, %arg11: memref<1x2xf32, #tpu.memory_space<vmem>>, %arg12: memref<1x256xf32, #tpu.memory_space<vmem>>, %arg13: memref<1x2xf32, #tpu.memory_space<vmem>>, %arg14: memref<1x2xf32, #tpu.memory_space<vmem>>, %arg15: memref<1x512xf32, #tpu.memory_space<vmem>>, %arg16: memref<1x1xf32, #tpu.memory_space<vmem>>, %arg17: memref<1x1xf32, #tpu.memory_space<vmem>>, %arg18: memref<1x512xf32, #tpu.memory_space<vmem>>) attributes {dimension_semantics = [#tpu.dimension_semantics<arbitrary>], iteration_bounds = array<i64: 1>, scalar_prefetch = 0 : i64, scratch_operands = 3 : i64, tpu.core_type = #tpu.core_type<tc>, window_params = [{transform_indices = @transform_0, window_bounds = array<i64: 256, 1024>}, {pipeline_mode = #tpu.pipeline_mode<synchronous>, transform_indices = @transform_1, window_bounds = array<i64: 1024, 512>}, {pipeline_mode = #tpu.pipeline_mode<synchronous>, transform_indices = @transform_2, window_bounds = array<i64: 1, 512>}, {pipeline_mode = #tpu.pipeline_mode<synchronous>, transform_indices = @transform_3, window_bounds = array<i64: 512, 256>}, {pipeline_mode = #tpu.pipeline_mode<synchronous>, transform_indices = @transform_4, window_bounds = array<i64: 1, 256>}, {pipeline_mode = #tpu.pipeline_mode<synchronous>, transform_indices = @transform_5, window_bounds = array<i64: 512, 256>}, {pipeline_mode = #tpu.pipeline_mode<synchronous>, transform_indices = @transform_6, window_bounds = array<i64: 1, 256>}, {pipeline_mode = #tpu.pipeline_mode<synchronous>, transform_indices = @transform_7, window_bounds = array<i64: 1, 256>}, {pipeline_mode = #tpu.pipeline_mode<synchronous>, transform_indices = @transform_8, window_bounds = array<i64: 1, 1>}, {pipeline_mode = #tpu.pipeline_mode<synchronous>, transform_indices = @transform_9, window_bounds = array<i64: 512, 2>}, {pipeline_mode = #tpu.pipeline_mode<synchronous>, transform_indices = @transform_10, window_bounds = array<i64: 1, 2>}, {transform_indices = @transform_11, window_bounds = array<i64: 1, 256>}, {pipeline_mode = #tpu.pipeline_mode<synchronous>, transform_indices = @transform_12, window_bounds = array<i64: 1, 2>}, {pipeline_mode = #tpu.pipeline_mode<synchronous>, transform_indices = @transform_13, window_bounds = array<i64: 1, 2>}, {pipeline_mode = #tpu.pipeline_mode<synchronous>, transform_indices = @transform_14, window_bounds = array<i64: 1, 512>}]} {
    %c0_i32 = arith.constant 0 : i32
    %0 = arith.cmpi eq, %arg0, %c0_i32 : i32
    %1 = arith.extui %0 : i1 to i32
    %c0_i32_0 = arith.constant 0 : i32
    %2 = arith.cmpi ne, %1, %c0_i32_0 : i32
    scf.if %2 {
      %cst_44 = arith.constant -1.000000e+30 : f32
      %73 = vector.broadcast %cst_44 : f32 to vector<1x1xf32>
      %c0_45 = arith.constant 0 : index
      %c0_46 = arith.constant 0 : index
      %74 = vector.load %arg16[%c0_45, %c0_46] : memref<1x1xf32, #tpu.memory_space<vmem>>, vector<1x1xf32>
      tpu.vector_store %arg16[%c0_45, %c0_46], %73 {strides = array<i32>} : memref<1x1xf32, #tpu.memory_space<vmem>>, vector<1x1xf32>,
      %cst_47 = arith.constant 0.000000e+00 : f32
      %75 = vector.broadcast %cst_47 : f32 to vector<1x1xf32>
      %c0_48 = arith.constant 0 : index
      %c0_49 = arith.constant 0 : index
      %76 = vector.load %arg17[%c0_48, %c0_49] : memref<1x1xf32, #tpu.memory_space<vmem>>, vector<1x1xf32>
      tpu.vector_store %arg17[%c0_48, %c0_49], %75 {strides = array<i32>} : memref<1x1xf32, #tpu.memory_space<vmem>>, vector<1x1xf32>,
      %cst_50 = arith.constant 0.000000e+00 : f32
      %77 = vector.broadcast %cst_50 : f32 to vector<1x512xf32>
      %c0_51 = arith.constant 0 : index
      %c0_52 = arith.constant 0 : index
      %78 = vector.load %arg18[%c0_51, %c0_52] : memref<1x512xf32, #tpu.memory_space<vmem>>, vector<1x512xf32>
      tpu.vector_store %arg18[%c0_51, %c0_52], %77 {strides = array<i32>} : memref<1x512xf32, #tpu.memory_space<vmem>>, vector<1x512xf32>,
    } else {
    }
    %c0 = arith.constant 0 : index
    %c0_1 = arith.constant 0 : index
    %3 = vector.load %arg1[%c0, %c0_1] : memref<256x1024xbf16, #tpu.memory_space<vmem>>, vector<256x1024xbf16>
    %c0_2 = arith.constant 0 : index
    %c0_3 = arith.constant 0 : index
    %4 = vector.load %arg2[%c0_2, %c0_3] : memref<1024x512xbf16, #tpu.memory_space<vmem>>, vector<1024x512xbf16>
    %cst = arith.constant dense<0.000000e+00> : vector<256x512xf32>
    %5 = tpu.matmul %3, %4, %cst {dimension_numbers = #tpu.dot_dimension_numbers<[1], [0], [0], [1], [0, 0, 1, 1], [], []>} : vector<256x1024xbf16>, vector<1024x512xbf16>, vector<256x512xf32> -> vector<256x512xf32>
    %c0_4 = arith.constant 0 : index
    %c0_5 = arith.constant 0 : index
    %6 = vector.load %arg3[%c0_4, %c0_5] : memref<1x512xf32, #tpu.memory_space<vmem>>, vector<1x512xf32>
    %7 = vector.broadcast %6 : vector<1x512xf32> to vector<256x512xf32>
    %8 = arith.addf %5, %7 : vector<256x512xf32>
    %cst_6 = arith.constant 0.000000e+00 : f32
    %9 = vector.broadcast %cst_6 : f32 to vector<256x512xf32>
    %10 = arith.maximumf %8, %9 : vector<256x512xf32>
    %11 = arith.truncf %10 : vector<256x512xf32> to vector<256x512xbf16>
    %c0_7 = arith.constant 0 : index
    %c0_8 = arith.constant 0 : index
    %12 = vector.load %arg4[%c0_7, %c0_8] : memref<512x256xbf16, #tpu.memory_space<vmem>>, vector<512x256xbf16>
    %cst_9 = arith.constant dense<0.000000e+00> : vector<256x256xf32>
    %13 = tpu.matmul %11, %12, %cst_9 {dimension_numbers = #tpu.dot_dimension_numbers<[1], [0], [0], [1], [0, 0, 1, 1], [], []>} : vector<256x512xbf16>, vector<512x256xbf16>, vector<256x256xf32> -> vector<256x256xf32>
    %c0_10 = arith.constant 0 : index
    %c0_11 = arith.constant 0 : index
    %14 = vector.load %arg5[%c0_10, %c0_11] : memref<1x256xf32, #tpu.memory_space<vmem>>, vector<1x256xf32>
    %15 = vector.broadcast %14 : vector<1x256xf32> to vector<256x256xf32>
    %16 = arith.addf %13, %15 : vector<256x256xf32>
    %17 = math.tanh %16 : vector<256x256xf32>
    %c0_12 = arith.constant 0 : index
    %c0_13 = arith.constant 0 : index
    %18 = vector.load %arg6[%c0_12, %c0_13] : memref<512x256xbf16, #tpu.memory_space<vmem>>, vector<512x256xbf16>
    %cst_14 = arith.constant dense<0.000000e+00> : vector<256x256xf32>
    %19 = tpu.matmul %11, %18, %cst_14 {dimension_numbers = #tpu.dot_dimension_numbers<[1], [0], [0], [1], [0, 0, 1, 1], [], []>} : vector<256x512xbf16>, vector<512x256xbf16>, vector<256x256xf32> -> vector<256x256xf32>
    %c0_15 = arith.constant 0 : index
    %c0_16 = arith.constant 0 : index
    %20 = vector.load %arg7[%c0_15, %c0_16] : memref<1x256xf32, #tpu.memory_space<vmem>>, vector<1x256xf32>
    %21 = vector.broadcast %20 : vector<1x256xf32> to vector<256x256xf32>
    %22 = arith.addf %19, %21 : vector<256x256xf32>
    %23 = arith.negf %22 : vector<256x256xf32>
    %24 = math.exp %23 : vector<256x256xf32>
    %cst_17 = arith.constant 1.000000e+00 : f32
    %25 = vector.broadcast %cst_17 : f32 to vector<256x256xf32>
    %26 = arith.addf %25, %24 : vector<256x256xf32>
    %27 = arith.divf %25, %26 : vector<256x256xf32>
    %28 = arith.mulf %17, %27 : vector<256x256xf32>
    %29 = arith.truncf %28 : vector<256x256xf32> to vector<256x256xbf16>
    %c0_18 = arith.constant 0 : index
    %c0_19 = arith.constant 0 : index
    %30 = vector.load %arg8[%c0_18, %c0_19] : memref<1x256xf32, #tpu.memory_space<vmem>>, vector<1x256xf32>
    %31 = arith.truncf %30 : vector<1x256xf32> to vector<1x256xbf16>
    %cst_20 = arith.constant dense<0.000000e+00> : vector<1x256xf32>
    %32 = tpu.matmul %31, %29, %cst_20 {dimension_numbers = #tpu.dot_dimension_numbers<[1], [1], [0], [0], [0, 0, 1, 0], [], []>} : vector<1x256xbf16>, vector<256x256xbf16>, vector<1x256xf32> -> vector<1x256xf32>
    %c0_21 = arith.constant 0 : index
    %c0_22 = arith.constant 0 : index
    %33 = vector.load %arg9[%c0_21, %c0_22] : memref<1x1xf32, #tpu.memory_space<vmem>>, vector<1x1xf32>
    %34 = vector.broadcast %33 : vector<1x1xf32> to vector<1x256xf32>
    %35 = arith.addf %32, %34 : vector<1x256xf32>
    %c0_23 = arith.constant 0 : index
    %c0_24 = arith.constant 0 : index
    %36 = vector.load %arg12[%c0_23, %c0_24] : memref<1x256xf32, #tpu.memory_space<vmem>>, vector<1x256xf32>
    tpu.vector_store %arg12[%c0_23, %c0_24], %35 {strides = array<i32>} : memref<1x256xf32, #tpu.memory_space<vmem>>, vector<1x256xf32>,
    %c256_i32 = arith.constant 256 : i32
    %37 = arith.muli %arg0, %c256_i32 : i32
    %38 = tpu.iota {dimensions = array<i32: 1>} : vector<1x256xi32>
    %39 = vector.broadcast %37 : i32 to vector<1x256xi32>
    %40 = arith.addi %39, %38 : vector<1x256xi32>
    %c200_i32 = arith.constant 200 : i32
    %41 = vector.broadcast %c200_i32 : i32 to vector<1x256xi32>
    %42 = arith.cmpi slt, %40, %41 : vector<1x256xi32>
    %cst_25 = arith.constant -1.000000e+30 : f32
    %43 = vector.broadcast %cst_25 : f32 to vector<1x256xf32>
    %44 = arith.select %42, %35, %43 : vector<1x256xi1>, vector<1x256xf32>
    %c0_26 = arith.constant 0 : index
    %c0_27 = arith.constant 0 : index
    %45 = vector.load %arg16[%c0_26, %c0_27] : memref<1x1xf32, #tpu.memory_space<vmem>>, vector<1x1xf32>
    %cst_28 = arith.constant dense<0xFF800000> : vector<1xf32>
    %46 = vector.multi_reduction <maximumf>, %44, %cst_28 [1] : vector<1x256xf32> to vector<1xf32>
    %47 = vector.shape_cast %46 : vector<1xf32> to vector<1x1xf32>
    %48 = arith.maximumf %45, %47 : vector<1x1xf32>
    %49 = arith.subf %45, %48 : vector<1x1xf32>
    %50 = math.exp %49 : vector<1x1xf32>
    %51 = vector.broadcast %48 : vector<1x1xf32> to vector<1x256xf32>
    %52 = arith.subf %44, %51 : vector<1x256xf32>
    %53 = math.exp %52 : vector<1x256xf32>
    %cst_29 = arith.constant 0.000000e+00 : f32
    %54 = vector.broadcast %cst_29 : f32 to vector<1x256xf32>
    %55 = arith.select %42, %53, %54 : vector<1x256xi1>, vector<1x256xf32>
    %c0_30 = arith.constant 0 : index
    %c0_31 = arith.constant 0 : index
    %56 = vector.load %arg17[%c0_30, %c0_31] : memref<1x1xf32, #tpu.memory_space<vmem>>, vector<1x1xf32>
    %57 = arith.mulf %50, %56 : vector<1x1xf32>
    %cst_32 = arith.constant dense<0.000000e+00> : vector<1xf32>
    %58 = vector.multi_reduction <add>, %55, %cst_32 [1] : vector<1x256xf32> to vector<1xf32>
    %59 = vector.shape_cast %58 : vector<1xf32> to vector<1x1xf32>
    %60 = arith.addf %57, %59 : vector<1x1xf32>
    %c0_33 = arith.constant 0 : index
    %c0_34 = arith.constant 0 : index
    %61 = vector.load %arg17[%c0_33, %c0_34] : memref<1x1xf32, #tpu.memory_space<vmem>>, vector<1x1xf32>
    tpu.vector_store %arg17[%c0_33, %c0_34], %60 {strides = array<i32>} : memref<1x1xf32, #tpu.memory_space<vmem>>, vector<1x1xf32>,
    %c0_35 = arith.constant 0 : index
    %c0_36 = arith.constant 0 : index
    %62 = vector.load %arg18[%c0_35, %c0_36] : memref<1x512xf32, #tpu.memory_space<vmem>>, vector<1x512xf32>
    %63 = vector.broadcast %50 : vector<1x1xf32> to vector<1x512xf32>
    %64 = arith.mulf %63, %62 : vector<1x512xf32>
    %65 = arith.truncf %55 : vector<1x256xf32> to vector<1x256xbf16>
    %cst_37 = arith.constant dense<0.000000e+00> : vector<1x512xf32>
    %66 = tpu.matmul %65, %11, %cst_37 {dimension_numbers = #tpu.dot_dimension_numbers<[1], [0], [0], [1], [0, 0, 1, 1], [], []>} : vector<1x256xbf16>, vector<256x512xbf16>, vector<1x512xf32> -> vector<1x512xf32>
    %67 = arith.addf %64, %66 : vector<1x512xf32>
    %c0_38 = arith.constant 0 : index
    %c0_39 = arith.constant 0 : index
    %68 = vector.load %arg18[%c0_38, %c0_39] : memref<1x512xf32, #tpu.memory_space<vmem>>, vector<1x512xf32>
    tpu.vector_store %arg18[%c0_38, %c0_39], %67 {strides = array<i32>} : memref<1x512xf32, #tpu.memory_space<vmem>>, vector<1x512xf32>,
    %c0_40 = arith.constant 0 : index
    %c0_41 = arith.constant 0 : index
    %69 = vector.load %arg16[%c0_40, %c0_41] : memref<1x1xf32, #tpu.memory_space<vmem>>, vector<1x1xf32>
    tpu.vector_store %arg16[%c0_40, %c0_41], %48 {strides = array<i32>} : memref<1x1xf32, #tpu.memory_space<vmem>>, vector<1x1xf32>,
    %c0_i32_42 = arith.constant 0 : i32
    %70 = arith.cmpi eq, %arg0, %c0_i32_42 : i32
    %71 = arith.extui %70 : i1 to i32
    %c0_i32_43 = arith.constant 0 : i32
    %72 = arith.cmpi ne, %71, %c0_i32_43 : i32
    scf.if %72 {
      %c0_44 = arith.constant 0 : index
      %c0_45 = arith.constant 0 : index
      %73 = vector.load %arg18[%c0_44, %c0_45] : memref<1x512xf32, #tpu.memory_space<vmem>>, vector<1x512xf32>
      %c0_46 = arith.constant 0 : index
      %c0_47 = arith.constant 0 : index
      %74 = vector.load %arg17[%c0_46, %c0_47] : memref<1x1xf32, #tpu.memory_space<vmem>>, vector<1x1xf32>
      %75 = vector.broadcast %74 : vector<1x1xf32> to vector<1x512xf32>
      %76 = arith.divf %73, %75 : vector<1x512xf32>
      %c0_48 = arith.constant 0 : index
      %c0_49 = arith.constant 0 : index
      %77 = vector.load %arg15[%c0_48, %c0_49] : memref<1x512xf32, #tpu.memory_space<vmem>>, vector<1x512xf32>
      tpu.vector_store %arg15[%c0_48, %c0_49], %76 {strides = array<i32>} : memref<1x512xf32, #tpu.memory_space<vmem>>, vector<1x512xf32>,
      %78 = arith.truncf %76 : vector<1x512xf32> to vector<1x512xbf16>
      %c0_50 = arith.constant 0 : index
      %c0_51 = arith.constant 0 : index
      %79 = vector.load %arg10[%c0_50, %c0_51] : memref<512x2xbf16, #tpu.memory_space<vmem>>, vector<512x2xbf16>
      %cst_52 = arith.constant dense<0.000000e+00> : vector<1x2xf32>
      %80 = tpu.matmul %78, %79, %cst_52 {dimension_numbers = #tpu.dot_dimension_numbers<[1], [0], [0], [1], [0, 0, 1, 1], [], []>} : vector<1x512xbf16>, vector<512x2xbf16>, vector<1x2xf32> -> vector<1x2xf32>
      %c0_53 = arith.constant 0 : index
      %c0_54 = arith.constant 0 : index
      %81 = vector.load %arg11[%c0_53, %c0_54] : memref<1x2xf32, #tpu.memory_space<vmem>>, vector<1x2xf32>
      %82 = arith.addf %80, %81 : vector<1x2xf32>
      %c0_55 = arith.constant 0 : index
      %c0_56 = arith.constant 0 : index
      %83 = vector.load %arg13[%c0_55, %c0_56] : memref<1x2xf32, #tpu.memory_space<vmem>>, vector<1x2xf32>
      tpu.vector_store %arg13[%c0_55, %c0_56], %82 {strides = array<i32>} : memref<1x2xf32, #tpu.memory_space<vmem>>, vector<1x2xf32>,
      %cst_57 = arith.constant dense<0xFF800000> : vector<1xf32>
      %84 = vector.multi_reduction <maximumf>, %82, %cst_57 [1] : vector<1x2xf32> to vector<1xf32>
      %85 = vector.shape_cast %84 : vector<1xf32> to vector<1x1xf32>
      %86 = vector.broadcast %85 : vector<1x1xf32> to vector<1x2xf32>
      %87 = arith.subf %82, %86 : vector<1x2xf32>
      %88 = math.exp %87 : vector<1x2xf32>
      %cst_58 = arith.constant dense<0.000000e+00> : vector<1xf32>
      %89 = vector.multi_reduction <add>, %88, %cst_58 [1] : vector<1x2xf32> to vector<1xf32>
      %90 = vector.shape_cast %89 : vector<1xf32> to vector<1x1xf32>
      %91 = vector.broadcast %90 : vector<1x1xf32> to vector<1x2xf32>
      %92 = arith.divf %88, %91 : vector<1x2xf32>
      %c0_59 = arith.constant 0 : index
      %c0_60 = arith.constant 0 : index
      %93 = vector.load %arg14[%c0_59, %c0_60] : memref<1x2xf32, #tpu.memory_space<vmem>>, vector<1x2xf32>
      tpu.vector_store %arg14[%c0_59, %c0_60], %92 {strides = array<i32>} : memref<1x2xf32, #tpu.memory_space<vmem>>, vector<1x2xf32>,
    } else {
    }
    return
  }
  func.func @transform_0(%arg0: i32) -> (i32, i32) {
    %c0_i32 = arith.constant 0 : i32
    %c0_i32_0 = arith.constant 0 : i32
    return %arg0, %c0_i32 : i32, i32
  }
  func.func @transform_1(%arg0: i32) -> (i32, i32) {
    %c0_i32 = arith.constant 0 : i32
    %c0_i32_0 = arith.constant 0 : i32
    %c0_i32_1 = arith.constant 0 : i32
    return %c0_i32, %c0_i32_0 : i32, i32
  }
  func.func @transform_2(%arg0: i32) -> (i32, i32) {
    %c0_i32 = arith.constant 0 : i32
    %c0_i32_0 = arith.constant 0 : i32
    %c0_i32_1 = arith.constant 0 : i32
    return %c0_i32, %c0_i32_0 : i32, i32
  }
  func.func @transform_3(%arg0: i32) -> (i32, i32) {
    %c0_i32 = arith.constant 0 : i32
    %c0_i32_0 = arith.constant 0 : i32
    %c0_i32_1 = arith.constant 0 : i32
    return %c0_i32, %c0_i32_0 : i32, i32
  }
  func.func @transform_4(%arg0: i32) -> (i32, i32) {
    %c0_i32 = arith.constant 0 : i32
    %c0_i32_0 = arith.constant 0 : i32
    %c0_i32_1 = arith.constant 0 : i32
    return %c0_i32, %c0_i32_0 : i32, i32
  }
  func.func @transform_5(%arg0: i32) -> (i32, i32) {
    %c0_i32 = arith.constant 0 : i32
    %c0_i32_0 = arith.constant 0 : i32
    %c0_i32_1 = arith.constant 0 : i32
    return %c0_i32, %c0_i32_0 : i32, i32
  }
  func.func @transform_6(%arg0: i32) -> (i32, i32) {
    %c0_i32 = arith.constant 0 : i32
    %c0_i32_0 = arith.constant 0 : i32
    %c0_i32_1 = arith.constant 0 : i32
    return %c0_i32, %c0_i32_0 : i32, i32
  }
  func.func @transform_7(%arg0: i32) -> (i32, i32) {
    %c0_i32 = arith.constant 0 : i32
    %c0_i32_0 = arith.constant 0 : i32
    %c0_i32_1 = arith.constant 0 : i32
    return %c0_i32, %c0_i32_0 : i32, i32
  }
  func.func @transform_8(%arg0: i32) -> (i32, i32) {
    %c0_i32 = arith.constant 0 : i32
    %c0_i32_0 = arith.constant 0 : i32
    %c0_i32_1 = arith.constant 0 : i32
    return %c0_i32, %c0_i32_0 : i32, i32
  }
  func.func @transform_9(%arg0: i32) -> (i32, i32) {
    %c0_i32 = arith.constant 0 : i32
    %c0_i32_0 = arith.constant 0 : i32
    %c0_i32_1 = arith.constant 0 : i32
    return %c0_i32, %c0_i32_0 : i32, i32
  }
  func.func @transform_10(%arg0: i32) -> (i32, i32) {
    %c0_i32 = arith.constant 0 : i32
    %c0_i32_0 = arith.constant 0 : i32
    %c0_i32_1 = arith.constant 0 : i32
    return %c0_i32, %c0_i32_0 : i32, i32
  }
  func.func @transform_11(%arg0: i32) -> (i32, i32) {
    %c0_i32 = arith.constant 0 : i32
    %c0_i32_0 = arith.constant 0 : i32
    return %c0_i32, %arg0 : i32, i32
  }
  func.func @transform_12(%arg0: i32) -> (i32, i32) {
    %c0_i32 = arith.constant 0 : i32
    %c0_i32_0 = arith.constant 0 : i32
    %c0_i32_1 = arith.constant 0 : i32
    return %c0_i32, %c0_i32_0 : i32, i32
  }
  func.func @transform_13(%arg0: i32) -> (i32, i32) {
    %c0_i32 = arith.constant 0 : i32
    %c0_i32_0 = arith.constant 0 : i32
    %c0_i32_1 = arith.constant 0 : i32
    return %c0_i32, %c0_i32_0 : i32, i32
  }
  func.func @transform_14(%arg0: i32) -> (i32, i32) {
    %c0_i32 = arith.constant 0 : i32
    %c0_i32_0 = arith.constant 0 : i32
    %c0_i32_1 = arith.constant 0 : i32
    return %c0_i32, %c0_i32_0 : i32, i32
  }
}

</mosaic_0001>

<bundles_post_ra>
// kernel: clam_sb_forward.1
= control target key start
LH: loop header
LB: loop body
LE: loop exit
PB: predicated region body
PF: predicated region fallthrough
CT: control target
= control target key end

     0   :  { %s12206_s0 = inlined_call_operand.vmem [shape: bf16[256,1024], index: 0, kind: input, shape index: {}]   ;;  %s12207_s1 = inlined_call_operand.vmem [shape: bf16[1024,512], index: 1, kind: input, shape index: {}]   ;;  %s12208_s2 = inlined_call_operand.vmem [shape: f32[1,512], index: 2, kind: input, shape index: {}]   ;;  %s12209_s3 = inlined_call_operand.vmem [shape: bf16[512,256], index: 3, kind: input, shape index: {}]   ;;  %s12210_s4 = inlined_call_operand.vmem [shape: f32[1,256], index: 4, kind: input, shape index: {}]   ;;  %s12211_s5 = inlined_call_operand.vmem [shape: bf16[512,256], index: 5, kind: input, shape index: {}]   ;;  %s12212_s6 = inlined_call_operand.vmem [shape: f32[1,256], index: 6, kind: input, shape index: {}]   ;;  %s12213_s7 = inlined_call_operand.vmem [shape: f32[1,256], index: 7, kind: input, shape index: {}]   ;;  %s12214_s8 = inlined_call_operand.<no memory space> [shape: f32[1,1], index: 8, kind: input, shape index: {}]   ;;  %s12215_s9 = inlined_call_operand.vmem [shape: bf16[512,2], index: 9, kind: input, shape index: {}]   ;;  %s12216_s10 = inlined_call_operand.vmem [shape: f32[1,2], index: 10, kind: input, shape index: {}]   ;;  %s12217_s11 = inlined_call_operand.hbm [shape: f32[1,256], index: 11, kind: output, shape index: {0}]   ;;  %s12218_s12 = inlined_call_operand.vmem [shape: f32[1,2], index: 12, kind: output, shape index: {1}]   ;;  %s12219_s13 = inlined_call_operand.hbm [shape: f32[1,2], index: 13, kind: output, shape index: {2}]   ;;  %s12220_s14 = inlined_call_operand.hbm [shape: f32[1,512], index: 14, kind: output, shape index: {3}]  }
   0x1   :  { %v20_v0 = vstv %s12214_s8 }
   0x2   :  { %21 = vst [vmem:[#allocation5] sm:$0x1] %v20_v0 }
   0x3   :  { %22 = vsyncpa [#allocation7], 0  ;;  %v8368_v1 = vld [vmem:[%s12207_s1 + $0x4] ss:$16 sps:$4 sm:$0xff]   ;;  %v8370_v2 = vld [vmem:[%s12207_s1 + $0xc] ss:$16 sps:$4 sm:$0xff]  }
   0x4   :  { %2385 = vmatprep.subr.bf16.mxu0 %v8368_v1  ;;  %v8372_v3 = vld [vmem:[%s12207_s1] ss:$16 sps:$4 sm:$0xff]   ;;  %v8373_v4 = vld [vmem:[%s12207_s1 + $0x8] ss:$16 sps:$4 sm:$0xff]   ;;  %3157 = vmatprep.subr.bf16.mxu1 %v8370_v2  ;;  %v8374_v5 = vld [vmem:[%s12207_s1 + $0x24] ss:$16 sps:$4 sm:$0xff]  }
   0x5   :  { %2386 = vmatpush1.bf16.msra.mxu0 %v8372_v3  ;;  %3158 = vmatpush1.bf16.msra.mxu1 %v8373_v4  ;;  %v8376_v6 = vld [vmem:[%s12207_s1 + $0x2c] ss:$16 sps:$4 sm:$0xff]   ;;  %v8378_v7 = vld [vmem:[%s12207_s1 + $0x20] ss:$16 sps:$4 sm:$0xff]   ;;  %v8379_v8 = vld [vmem:[%s12207_s1 + $0x28] ss:$16 sps:$4 sm:$0xff]  }
   0x6   :  { %2387 = vmatprep.subr.bf16.mxu0 %v8374_v5  ;;  %3159 = vmatprep.subr.bf16.mxu1 %v8376_v6  ;;  %v8380_v9 = vld [vmem:[%s12207_s1 + $0x44] ss:$16 sps:$4 sm:$0xff]   ;;  %v8382_v10 = vld [vmem:[%s12207_s1 + $0x4c] ss:$16 sps:$4 sm:$0xff]   ;;  %v8384_v11 = vld [vmem:[%s12207_s1 + $0x40] ss:$16 sps:$4 sm:$0xff]  }
   0x7   :  { %v8385_v12 = vld [vmem:[%s12207_s1 + $0x48] ss:$16 sps:$4 sm:$0xff]   ;;  %v8386_v13 = vld [vmem:[%s12207_s1 + $0x64] ss:$16 sps:$4 sm:$0xff]   ;;  %v8388_v14 = vld [vmem:[%s12207_s1 + $0x6c] ss:$16 sps:$4 sm:$0xff]  }
   0x8   :  { %v8390_v15 = vld [vmem:[%s12207_s1 + $0x60] ss:$16 sps:$4 sm:$0xff]   ;;  %v8391_v16 = vld [vmem:[%s12207_s1 + $0x68] ss:$16 sps:$4 sm:$0xff]   ;;  %v8392_v17 = vld [vmem:[%s12207_s1 + $0x84] ss:$16 sps:$4 sm:$0xff]  }
   0x9   :  { %2388 = vmatpush1.bf16.msra.mxu0 %v8378_v7  ;;  %3160 = vmatpush1.bf16.msra.mxu1 %v8379_v8  ;;  %v8394_v18 = vld [vmem:[%s12207_s1 + $0x8c] ss:$16 sps:$4 sm:$0xff]   ;;  %v8396_v19 = vld [vmem:[%s12207_s1 + $0x80] ss:$16 sps:$4 sm:$0xff]   ;;  %v8397_v20 = vld [vmem:[%s12207_s1 + $0x88] ss:$16 sps:$4 sm:$0xff]  }
   0xa   :  { %2389 = vmatprep.subr.bf16.mxu0 %v8380_v9  ;;  %3161 = vmatprep.subr.bf16.mxu1 %v8382_v10  ;;  %v8398_v21 = vld [vmem:[%s12207_s1 + $0xa4] ss:$16 sps:$4 sm:$0xff]   ;;  %v8400_v22 = vld [vmem:[%s12207_s1 + $0xac] ss:$16 sps:$4 sm:$0xff]   ;;  %v8402_v23 = vld [vmem:[%s12207_s1 + $0xa0] ss:$16 sps:$4 sm:$0xff]  }
   0xb   :  { %v8403_v24 = vld [vmem:[%s12207_s1 + $0xa8] ss:$16 sps:$4 sm:$0xff]   ;;  %v8404_v25 = vld [vmem:[%s12207_s1 + $0xc4] ss:$16 sps:$4 sm:$0xff]   ;;  %v8406_v26 = vld [vmem:[%s12207_s1 + $0xcc] ss:$16 sps:$4 sm:$0xff]  }
   0xc   :  { %v8408_v27 = vld [vmem:[%s12207_s1 + $0xc0] ss:$16 sps:$4 sm:$0xff]   ;;  %v8409_v28 = vld [vmem:[%s12207_s1 + $0xc8] ss:$16 sps:$4 sm:$0xff]   ;;  %v8410_v29 = vld [vmem:[%s12207_s1 + $0xe4] ss:$16 sps:$4 sm:$0xff]  }
   0xd   :  { %2390 = vmatpush1.bf16.msra.mxu0 %v8384_v11  ;;  %3162 = vmatpush1.bf16.msra.mxu1 %v8385_v12  ;;  %v8412_v30 = vld [vmem:[%s12207_s1 + $0xec] ss:$16 sps:$4 sm:$0xff]   ;;  %v8414_v31 = vld [vmem:[%s12207_s1 + $0xe0] ss:$16 sps:$4 sm:$0xff]   ;;  %v8415_v32 = vld [vmem:[%s12207_s1 + $0xe8] ss:$16 sps:$4 sm:$0xff]  }
   0xe   :  { %2391 = vmatprep.subr.bf16.mxu0 %v8386_v13  ;;  %3163 = vmatprep.subr.bf16.mxu1 %v8388_v14  ;;  %v8416_v33 = vld [vmem:[%s12207_s1 + $0x104] ss:$16 sps:$4 sm:$0xff]   ;;  %v8418_v34 = vld [vmem:[%s12207_s1 + $0x10c] ss:$16 sps:$4 sm:$0xff]   ;;  %v8420_v35 = vld [vmem:[%s12207_s1 + $0x100] ss:$16 sps:$4 sm:$0xff]  }
   0xf   :  { %v8421_v36 = vld [vmem:[%s12207_s1 + $0x108] ss:$16 sps:$4 sm:$0xff]   ;;  %v8422_v37 = vld [vmem:[%s12207_s1 + $0x124] ss:$16 sps:$4 sm:$0xff]   ;;  %v8424_v38 = vld [vmem:[%s12207_s1 + $0x12c] ss:$16 sps:$4 sm:$0xff]  }
  0x10   :  { %v8426_v39 = vld [vmem:[%s12207_s1 + $0x120] ss:$16 sps:$4 sm:$0xff]   ;;  %v8427_v40 = vld [vmem:[%s12207_s1 + $0x128] ss:$16 sps:$4 sm:$0xff]   ;;  %v8428_v41 = vld [vmem:[%s12207_s1 + $0x144] ss:$16 sps:$4 sm:$0xff]  }
  0x11   :  { %2392 = vmatpush1.bf16.msra.mxu0 %v8390_v15  ;;  %3164 = vmatpush1.bf16.msra.mxu1 %v8391_v16  ;;  %v8430_v42 = vld [vmem:[%s12207_s1 + $0x14c] ss:$16 sps:$4 sm:$0xff]   ;;  %v8432_v43 = vld [vmem:[%s12207_s1 + $0x140] ss:$16 sps:$4 sm:$0xff]   ;;  %v8433_v44 = vld [vmem:[%s12207_s1 + $0x148] ss:$16 sps:$4 sm:$0xff]  }
  0x12   :  { %2393 = vmatprep.subr.bf16.mxu0 %v8392_v17  ;;  %3165 = vmatprep.subr.bf16.mxu1 %v8394_v18  ;;  %v8434_v45 = vld [vmem:[%s12207_s1 + $0x164] ss:$16 sps:$4 sm:$0xff]   ;;  %v8436_v46 = vld [vmem:[%s12207_s1 + $0x16c] ss:$16 sps:$4 sm:$0xff]   ;;  %v8438_v49 = vld [vmem:[%s12207_s1 + $0x160] ss:$16 sps:$4 sm:$0xff]  }
  0x13   :  { %v59_v47 = vld [vmem:[%s12206_s0] sm:$0xff]  ;;  %v8439_v50 = vld [vmem:[%s12207_s1 + $0x168] ss:$16 sps:$4 sm:$0xff]   ;;  %v8442_v53 = vld [vmem:[%s12207_s1 + $0x18c] ss:$16 sps:$4 sm:$0xff]  }
  0x14   :  { %v63_v48 = vld [vmem:[%s12206_s0 + $0x20] sm:$0xff]  ;;  %v8445_v55 = vld [vmem:[%s12207_s1 + $0x188] ss:$16 sps:$4 sm:$0xff]   ;;  %v8448_v57 = vld [vmem:[%s12207_s1 + $0x1ac] ss:$16 sps:$4 sm:$0xff]  }
  0x15   :  { %2394 = vmatpush1.bf16.msra.mxu0 %v8396_v19  ;;  %3166 = vmatpush1.bf16.msra.mxu1 %v8397_v20  ;;  %v8440_v51 = vld [vmem:[%s12207_s1 + $0x184] ss:$16 sps:$4 sm:$0xff]   ;;  %v6934_v52 = vcombine.high %v59_v47, %v63_v48  ;;  %v8444_v54 = vld [vmem:[%s12207_s1 + $0x180] ss:$16 sps:$4 sm:$0xff]   ;;  %v8451_v59 = vld [vmem:[%s12207_s1 + $0x1a8] ss:$16 sps:$4 sm:$0xff]   ;;  %v6933_v8 = vcombine.low %v59_v47, %v63_v48 }
  0x16   :  { %2395 = vmatprep.subr.bf16.mxu0 %v8398_v21  ;;  %3167 = vmatprep.subr.bf16.mxu1 %v8400_v22  ;;  %v8446_v56 = vld [vmem:[%s12207_s1 + $0x1a4] ss:$16 sps:$4 sm:$0xff]   ;;  %v8450_v58 = vld [vmem:[%s12207_s1 + $0x1a0] ss:$16 sps:$4 sm:$0xff]   ;;  %v8454_v61 = vld [vmem:[%s12207_s1 + $0x1cc] ss:$16 sps:$4 sm:$0xff]  }
  0x17   :  { %2417 = vmatprep.mubr.bf16.mxu0 %v6934_v52  ;;  %3189 = vmatprep.mubr.bf16.mxu1 %v6934_v52  ;;  %v8452_v60 = vld [vmem:[%s12207_s1 + $0x1c4] ss:$16 sps:$4 sm:$0xff]   ;;  %v8456_v62 = vld [vmem:[%s12207_s1 + $0x1c0] ss:$16 sps:$4 sm:$0xff]   ;;  %v8457_v63 = vld [vmem:[%s12207_s1 + $0x1c8] ss:$16 sps:$4 sm:$0xff]  }
  0x18   :  { %v8458_v0 = vld [vmem:[%s12207_s1 + $0x1e4] ss:$16 sps:$4 sm:$0xff]   ;;  %v8460_v1 = vld [vmem:[%s12207_s1 + $0x1ec] ss:$16 sps:$4 sm:$0xff]   ;;  %v8462_v2 = vld [vmem:[%s12207_s1 + $0x1e0] ss:$16 sps:$4 sm:$0xff]  }
  0x19   :  { %2396 = vmatpush1.bf16.msra.mxu0 %v8402_v23  ;;  %3168 = vmatpush1.bf16.msra.mxu1 %v8403_v24  ;;  %v8463_v3 = vld [vmem:[%s12207_s1 + $0x1e8] ss:$16 sps:$4 sm:$0xff]   ;;  %v8466_v4 = vld [vmem:[%s12207_s1 + $0x204] ss:$16 sps:$4 sm:$0xff]   ;;  %v8493_v7 = vld [vmem:[%s12207_s1 + $0x20c] ss:$16 sps:$4 sm:$0xff]  }
  0x1a   :  { %2397 = vmatprep.subr.bf16.mxu0 %v8404_v25  ;;  %3169 = vmatprep.subr.bf16.mxu1 %v8406_v26  ;;  %v67_v5 = vld [vmem:[%s12206_s0 + $0x40] sm:$0xff]  ;;  %v8491_v12 = vld [vmem:[%s12207_s1 + $0x208] ss:$16 sps:$4 sm:$0xff]   ;;  %v8496_v13 = vld [vmem:[%s12207_s1 + $0x22c] ss:$16 sps:$4 sm:$0xff]  }
  0x1b   :  { %v71_v6 = vld [vmem:[%s12206_s0 + $0x60] sm:$0xff]  ;;  %v8494_v18 = vld [vmem:[%s12207_s1 + $0x228] ss:$16 sps:$4 sm:$0xff]   ;;  %v8502_v22 = vld [vmem:[%s12207_s1 + $0x24c] ss:$16 sps:$4 sm:$0xff]  }
  0x1c   :  { %v8464_v9 = vld [vmem:[%s12207_s1 + $0x200] ss:$16 sps:$4 sm:$0xff]   ;;  %v6942_v10 = vcombine.high %v67_v5, %v71_v6  ;;  %v8469_v11 = vld [vmem:[%s12207_s1 + $0x224] ss:$16 sps:$4 sm:$0xff]   ;;  %v6941_v19 = vcombine.low %v67_v5, %v71_v6  ;;  %v8500_v24 = vld [vmem:[%s12207_s1 + $0x248] ss:$16 sps:$4 sm:$0xff]  }
  0x1d   :  { %2398 = vmatpush1.bf16.msra.mxu0 %v8408_v27  ;;  %3170 = vmatpush1.bf16.msra.mxu1 %v8409_v28  ;;  %v8467_v14 = vld [vmem:[%s12207_s1 + $0x220] ss:$16 sps:$4 sm:$0xff]   ;;  %v8472_v17 = vld [vmem:[%s12207_s1 + $0x244] ss:$16 sps:$4 sm:$0xff]   ;;  %v8505_v25 = vld [vmem:[%s12207_s1 + $0x26c] ss:$16 sps:$4 sm:$0xff]  }
  0x1e   :  { %2399 = vmatprep.subr.bf16.mxu0 %v8410_v29  ;;  %3171 = vmatprep.subr.bf16.mxu1 %v8412_v30  ;;  %v75_v15 = vld [vmem:[%s12206_s0 + $0x80] sm:$0xff]  ;;  %v8503_v30 = vld [vmem:[%s12207_s1 + $0x268] ss:$16 sps:$4 sm:$0xff]   ;;  %v8520_v47 = vld [vmem:[%s12207_s1 + $0x2cc] ss:$16 sps:$4 sm:$0xff]  }
  0x1f   :  { %v79_v16 = vld [vmem:[%s12206_s0 + $0xa0] sm:$0xff]  ;;  %v8518_v48 = vld [vmem:[%s12207_s1 + $0x2c8] ss:$16 sps:$4 sm:$0xff]   ;;  %v8538_v6 = vld [vmem:[%s12207_s1 + $0x34c] ss:$16 sps:$4 sm:$0xff]  }
  0x20   :  { %v6950_v20 = vcombine.high %v75_v15, %v79_v16  ;;  %v8470_v21 = vld [vmem:[%s12207_s1 + $0x240] ss:$16 sps:$4 sm:$0xff]   ;;  %v8475_v23 = vld [vmem:[%s12207_s1 + $0x264] ss:$16 sps:$4 sm:$0xff]  }
  0x21   :  { %2400 = vmatpush1.bf16.msra.mxu0 %v8414_v31  ;;  %3172 = vmatpush1.bf16.msra.mxu1 %v8415_v32  ;;  %v83_v26 = vld [vmem:[%s12206_s0 + $0xc0] sm:$0xff]  ;;  %v6949_v31 = vcombine.low %v75_v15, %v79_v16 }
  0x22   :  { %2401 = vmatprep.subr.bf16.mxu0 %v8416_v33  ;;  %3173 = vmatprep.subr.bf16.mxu1 %v8418_v34  ;;  %v87_v27 = vld [vmem:[%s12206_s0 + $0xe0] sm:$0xff]  ;;  %v8511_v34 = vld [vmem:[%s12207_s1 + $0x28c] ss:$16 sps:$4 sm:$0xff]  }
  0x23   :  { %v8473_v28 = vld [vmem:[%s12207_s1 + $0x260] ss:$16 sps:$4 sm:$0xff]   ;;  %v8478_v29 = vld [vmem:[%s12207_s1 + $0x284] ss:$16 sps:$4 sm:$0xff]   ;;  %v6958_v32 = vcombine.high %v83_v26, %v87_v27 }
  0x24   :  { %v8476_v33 = vld [vmem:[%s12207_s1 + $0x280] ss:$16 sps:$4 sm:$0xff]  }
  0x25   :  { %2402 = vmatpush1.bf16.msra.mxu0 %v8420_v35  ;;  %3174 = vmatpush1.bf16.msra.mxu1 %v8421_v36  ;;  %v8481_v35 = vld [vmem:[%s12207_s1 + $0x2a4] ss:$16 sps:$4 sm:$0xff]   ;;  %v8509_v36 = vld [vmem:[%s12207_s1 + $0x288] ss:$16 sps:$4 sm:$0xff]   ;;  %v8485_v52 = vld [vmem:[%s12207_s1 + $0x2e0] ss:$16 sps:$4 sm:$0xff]  }
  0x26   :  { %2403 = vmatprep.subr.bf16.mxu0 %v8422_v37  ;;  %3175 = vmatprep.subr.bf16.mxu1 %v8424_v38  ;;  %v91_v37 = vld [vmem:[%s12206_s0 + $0x100] sm:$0xff]  ;;  %v8514_v38 = vld [vmem:[%s12207_s1 + $0x2ac] ss:$16 sps:$4 sm:$0xff]  }
  0x27   :  { %v8506_v5 = vld [vmem:[%s12207_s1 + $0x340] ss:$16 sps:$4 sm:$0xff]  }
  0x28   :  { %v8524_v16 = vld [vmem:[%s12207_s1 + $0x380] ss:$16 sps:$4 sm:$0xff]  }
  0x29   :  { %2404 = vmatpush1.bf16.msra.mxu0 %v8426_v39  ;;  %3176 = vmatpush1.bf16.msra.mxu1 %v8427_v40  ;;  %v95_v39 = vld [vmem:[%s12206_s0 + $0x120] sm:$0xff] }
  0x2a   :  { %2405 = vmatprep.subr.bf16.mxu0 %v8428_v41  ;;  %3177 = vmatprep.subr.bf16.mxu1 %v8430_v42  ;;  %v8479_v40 = vld [vmem:[%s12207_s1 + $0x2a0] ss:$16 sps:$4 sm:$0xff]   ;;  %v8484_v41 = vld [vmem:[%s12207_s1 + $0x2c4] ss:$16 sps:$4 sm:$0xff]   ;;  %v8512_v42 = vld [vmem:[%s12207_s1 + $0x2a8] ss:$16 sps:$4 sm:$0xff]  }
  0x2d   :  { %2406 = vmatpush1.bf16.msra.mxu0 %v8432_v43  ;;  %3178 = vmatpush1.bf16.msra.mxu1 %v8433_v44  ;;  %v6957_v43 = vcombine.low %v83_v26, %v87_v27  ;;  %v6966_v44 = vcombine.high %v91_v37, %v95_v39  ;;  %v8548_v26 = vld [vmem:[%s12207_s1 + $0x3a8] ss:$16 sps:$4 sm:$0xff]  }
  0x2e   :  { %2407 = vmatprep.subr.bf16.mxu0 %v8434_v45  ;;  %3179 = vmatprep.subr.bf16.mxu1 %v8436_v46  ;;  %v8482_v45 = vld [vmem:[%s12207_s1 + $0x2c0] ss:$16 sps:$4 sm:$0xff]   ;;  %v8487_v46 = vld [vmem:[%s12207_s1 + $0x2e4] ss:$16 sps:$4 sm:$0xff]  }
  0x31   :  { %2408 = vmatpush1.bf16.msra.mxu0 %v8438_v49  ;;  %3180 = vmatpush1.bf16.msra.mxu1 %v8439_v50  ;;  %v99_v49 = vld [vmem:[%s12206_s0 + $0x140] sm:$0xff]  ;;  %v8523_v50 = vld [vmem:[%s12207_s1 + $0x2ec] ss:$16 sps:$4 sm:$0xff]  }
  0x32   :  { %2409 = vmatprep.subr.bf16.mxu0 %v8440_v51  ;;  %3181 = vmatprep.subr.bf16.mxu1 %v8442_v53  ;;  %v103_v51 = vld [vmem:[%s12206_s0 + $0x160] sm:$0xff] }
  0x33   :  { %v8490_v53 = vld [vmem:[%s12207_s1 + $0x304] ss:$16 sps:$4 sm:$0xff]  }
  0x35   :  { %2410 = vmatpush1.bf16.msra.mxu0 %v8444_v54  ;;  %3182 = vmatpush1.bf16.msra.mxu1 %v8445_v55  ;;  %v8521_v54 = vld [vmem:[%s12207_s1 + $0x2e8] ss:$16 sps:$4 sm:$0xff]   ;;  %v6965_v55 = vcombine.low %v91_v37, %v95_v39 }
  0x36   :  { %2411 = vmatprep.subr.bf16.mxu0 %v8446_v56  ;;  %3183 = vmatprep.subr.bf16.mxu1 %v8448_v57  ;;  %v6974_v56 = vcombine.high %v99_v49, %v103_v51  ;;  %v8488_v57 = vld [vmem:[%s12207_s1 + $0x300] ss:$16 sps:$4 sm:$0xff]   ;;  %v8557_v37 = vld [vmem:[%s12207_s1 + $0x3e8] ss:$16 sps:$4 sm:$0xff]  }
  0x39   :  { %2412 = vmatpush1.bf16.msra.mxu0 %v8450_v58  ;;  %3184 = vmatpush1.bf16.msra.mxu1 %v8451_v59  ;;  %v8529_v58 = vld [vmem:[%s12207_s1 + $0x30c] ss:$16 sps:$4 sm:$0xff]   ;;  %v8499_v59 = vld [vmem:[%s12207_s1 + $0x324] ss:$16 sps:$4 sm:$0xff]  }
  0x3a   :  { %2413 = vmatprep.subr.bf16.mxu0 %v8452_v60  ;;  %3185 = vmatprep.subr.bf16.mxu1 %v8454_v61  ;;  %v8527_v60 = vld [vmem:[%s12207_s1 + $0x308] ss:$16 sps:$4 sm:$0xff]   ;;  %v8532_v61 = vld [vmem:[%s12207_s1 + $0x32c] ss:$16 sps:$4 sm:$0xff]  }
  0x3d   :  { %2414 = vmatpush1.bf16.msra.mxu0 %v8456_v62  ;;  %3186 = vmatpush1.bf16.msra.mxu1 %v8457_v63  ;;  %v107_v62 = vld [vmem:[%s12206_s0 + $0x180] sm:$0xff] }
  0x3e   :  { %2415 = vmatprep.subr.bf16.mxu0 %v8458_v0  ;;  %3187 = vmatprep.subr.bf16.mxu1 %v8460_v1  ;;  %v111_v63 = vld [vmem:[%s12206_s0 + $0x1a0] sm:$0xff] }
  0x3f   :  { %v8497_v0 = vld [vmem:[%s12207_s1 + $0x320] ss:$16 sps:$4 sm:$0xff]   ;;  %v8508_v1 = vld [vmem:[%s12207_s1 + $0x344] ss:$16 sps:$4 sm:$0xff]   ;;  %v6981_v15 = vcombine.low %v107_v62, %v111_v63 }
  0x41   :  { %2416 = vmatpush1.bf16.msra.mxu0 %v8462_v2  ;;  %3188 = vmatpush1.bf16.msra.mxu1 %v8463_v3  ;;  %v8530_v2 = vld [vmem:[%s12207_s1 + $0x328] ss:$16 sps:$4 sm:$0xff]   ;;  %v6973_v3 = vcombine.low %v99_v49, %v103_v51  ;;  %v159_v51 = vld [vmem:[%s12206_s0 + $0x320] sm:$0xff] }
  0x42   :  { %2578 = vmatprep.subr.bf16.mxu0 %v8466_v4  ;;  %3350 = vmatprep.subr.bf16.mxu1 %v8493_v7  ;;  %v6982_v4 = vcombine.high %v107_v62, %v111_v63  ;;  %v8517_v7 = vld [vmem:[%s12207_s1 + $0x364] ss:$16 sps:$4 sm:$0xff]  }
  0x43   :  { %v179_v62 = vld [vmem:[%s12206_s0 + $0x3c0] sm:$0xff] }
  0x44   :  { %2418 = vmatmul.mubr.bf16.vlgmr.msra.gmra.mrb[0].mxu0 %v6933_v8  ;;  %3190 = vmatmul.mubr.bf16.vlgmr.msra.gmra.mrb[0].mxu1 %v6933_v8  ;;  %v8536_v8 = vld [vmem:[%s12207_s1 + $0x348] ss:$16 sps:$4 sm:$0xff]   ;;  %v183_v63 = vld [vmem:[%s12206_s0 + $0x3e0] sm:$0xff] }
  0x45   :  { %2579 = vmatpush1.bf16.msra.mxu0 %v8464_v9  ;;  %2427 = vmatprep.mubr.bf16.mxu0 %v6942_v10  ;;  %v115_v9 = vld [vmem:[%s12206_s0 + $0x1c0] sm:$0xff] }
  0x46   :  { %3199 = vmatprep.mubr.bf16.mxu1 %v6942_v10  ;;  %2580 = vmatprep.subr.bf16.mxu0 %v8469_v11  ;;  %v119_v10 = vld [vmem:[%s12206_s0 + $0x1e0] sm:$0xff] }
  0x47   :  { %3351 = vmatpush1.bf16.msra.mxu1 %v8491_v12  ;;  %v8515_v11 = vld [vmem:[%s12207_s1 + $0x360] ss:$16 sps:$4 sm:$0xff]   ;;  %v8541_v12 = vld [vmem:[%s12207_s1 + $0x36c] ss:$16 sps:$4 sm:$0xff]   ;;  %v6989_v27 = vcombine.low %v115_v9, %v119_v10 }
  0x48   :  { %3352 = vmatprep.subr.bf16.mxu1 %v8496_v13  ;;  %v8526_v13 = vld [vmem:[%s12207_s1 + $0x384] ss:$16 sps:$4 sm:$0xff]  }
  0x49   :  { %2581 = vmatpush1.bf16.msra.mxu0 %v8467_v14  ;;  %v8539_v14 = vld [vmem:[%s12207_s1 + $0x368] ss:$16 sps:$4 sm:$0xff]  }
  0x4a   :  { %2582 = vmatprep.subr.bf16.mxu0 %v8472_v17  ;;  %v8547_v17 = vld [vmem:[%s12207_s1 + $0x38c] ss:$16 sps:$4 sm:$0xff]  }
  0x4b   :  { %3353 = vmatpush1.bf16.msra.mxu1 %v8494_v18  ;;  %v6990_v18 = vcombine.high %v115_v9, %v119_v10  ;;  %v8565_v10 = vld [vmem:[%s12207_s1 + $0x424] ss:$16 sps:$4 sm:$0xff]  }
  0x4c   :  { %2428 = vmatmul.mubr.bf16.gmra.mrb[4].mxu0 %v6941_v19  ;;  %3200 = vmatmul.mubr.bf16.gmra.mrb[4].mxu1 %v6941_v19  ;;  %v8535_v19 = vld [vmem:[%s12207_s1 + $0x3a4] ss:$16 sps:$4 sm:$0xff]  }
  0x4d   :  { %2437 = vmatprep.mubr.bf16.mxu0 %v6950_v20  ;;  %3209 = vmatprep.mubr.bf16.mxu1 %v6950_v20  ;;  %v8545_v20 = vld [vmem:[%s12207_s1 + $0x388] ss:$16 sps:$4 sm:$0xff]  }
  0x4e   :  { %2583 = vmatpush1.bf16.msra.mxu0 %v8470_v21  ;;  %3354 = vmatprep.subr.bf16.mxu1 %v8502_v22  ;;  %v123_v21 = vld [vmem:[%s12206_s0 + $0x200] sm:$0xff] }
  0x4f   :  { %2584 = vmatprep.subr.bf16.mxu0 %v8475_v23  ;;  %3355 = vmatpush1.bf16.msra.mxu1 %v8500_v24  ;;  %v127_v22 = vld [vmem:[%s12206_s0 + $0x220] sm:$0xff]  ;;  %v8550_v24 = vld [vmem:[%s12207_s1 + $0x3ac] ss:$16 sps:$4 sm:$0xff]  }
  0x50   :  { %3356 = vmatprep.subr.bf16.mxu1 %v8505_v25  ;;  %v8533_v23 = vld [vmem:[%s12207_s1 + $0x3a0] ss:$16 sps:$4 sm:$0xff]   ;;  %v8544_v25 = vld [vmem:[%s12207_s1 + $0x3c4] ss:$16 sps:$4 sm:$0xff]   ;;  %v6997_v39 = vcombine.low %v123_v21, %v127_v22 }
  0x52   :  { %2585 = vmatpush1.bf16.msra.mxu0 %v8473_v28  ;;  %v8542_v28 = vld [vmem:[%s12207_s1 + $0x3c0] ss:$16 sps:$4 sm:$0xff]  }
  0x53   :  { %2586 = vmatprep.subr.bf16.mxu0 %v8478_v29  ;;  %3357 = vmatpush1.bf16.msra.mxu1 %v8503_v30  ;;  %v8556_v29 = vld [vmem:[%s12207_s1 + $0x3cc] ss:$16 sps:$4 sm:$0xff]   ;;  %v6998_v30 = vcombine.high %v123_v21, %v127_v22 }
  0x54   :  { %2438 = vmatmul.mubr.bf16.gmra.mrb[8].mxu0 %v6949_v31  ;;  %3210 = vmatmul.mubr.bf16.gmra.mrb[8].mxu1 %v6949_v31  ;;  %v8553_v31 = vld [vmem:[%s12207_s1 + $0x3e4] ss:$16 sps:$4 sm:$0xff]   ;;  %v8598_v21 = vld [vmem:[%s12207_s1 + $0x44c] ss:$16 sps:$4 sm:$0xff]  }
  0x55   :  { %2447 = vmatprep.mubr.bf16.mxu0 %v6958_v32  ;;  %3219 = vmatprep.mubr.bf16.mxu1 %v6958_v32  ;;  %v8554_v32 = vld [vmem:[%s12207_s1 + $0x3c8] ss:$16 sps:$4 sm:$0xff]  }
  0x56   :  { %2587 = vmatpush1.bf16.msra.mxu0 %v8476_v33  ;;  %3358 = vmatprep.subr.bf16.mxu1 %v8511_v34  ;;  %v131_v33 = vld [vmem:[%s12206_s0 + $0x240] sm:$0xff] }
  0x57   :  { %2588 = vmatprep.subr.bf16.mxu0 %v8481_v35  ;;  %3359 = vmatpush1.bf16.msra.mxu1 %v8509_v36  ;;  %v135_v34 = vld [vmem:[%s12206_s0 + $0x260] sm:$0xff]  ;;  %v8559_v36 = vld [vmem:[%s12207_s1 + $0x3ec] ss:$16 sps:$4 sm:$0xff]  }
  0x58   :  { %3360 = vmatprep.subr.bf16.mxu1 %v8514_v38  ;;  %v8551_v35 = vld [vmem:[%s12207_s1 + $0x3e0] ss:$16 sps:$4 sm:$0xff]   ;;  %v8562_v38 = vld [vmem:[%s12207_s1 + $0x404] ss:$16 sps:$4 sm:$0xff]  }
  0x5a   :  { %2589 = vmatpush1.bf16.msra.mxu0 %v8479_v40  ;;  %v7006_v40 = vcombine.high %v131_v33, %v135_v34 }
  0x5b   :  { %2590 = vmatprep.subr.bf16.mxu0 %v8484_v41  ;;  %3361 = vmatpush1.bf16.msra.mxu1 %v8512_v42  ;;  %v8589_v41 = vld [vmem:[%s12207_s1 + $0x40c] ss:$16 sps:$4 sm:$0xff]   ;;  %v139_v42 = vld [vmem:[%s12206_s0 + $0x280] sm:$0xff] }
  0x5c   :  { %2448 = vmatmul.mubr.bf16.gmra.mrb[12].mxu0 %v6957_v43  ;;  %3220 = vmatmul.mubr.bf16.gmra.mrb[12].mxu1 %v6957_v43  ;;  %v143_v43 = vld [vmem:[%s12206_s0 + $0x2a0] sm:$0xff] }
  0x5d   :  { %2457 = vmatprep.mubr.bf16.mxu0 %v6966_v44  ;;  %3229 = vmatprep.mubr.bf16.mxu1 %v6966_v44  ;;  %v7005_v44 = vcombine.low %v131_v33, %v135_v34  ;;  %v8607_v33 = vld [vmem:[%s12207_s1 + $0x48c] ss:$16 sps:$4 sm:$0xff]  }
  0x5e   :  { %2591 = vmatpush1.bf16.msra.mxu0 %v8482_v45  ;;  %3362 = vmatprep.subr.bf16.mxu1 %v8520_v47  ;;  %v7014_v45 = vcombine.high %v139_v42, %v143_v43  ;;  %v151_v47 = vld [vmem:[%s12206_s0 + $0x2e0] sm:$0xff] }
  0x5f   :  { %2592 = vmatprep.subr.bf16.mxu0 %v8487_v46  ;;  %3363 = vmatpush1.bf16.msra.mxu1 %v8518_v48  ;;  %v147_v46 = vld [vmem:[%s12206_s0 + $0x2c0] sm:$0xff]  ;;  %v7013_v48 = vcombine.low %v139_v42, %v143_v43  ;;  %v8608_v42 = vld [vmem:[%s12207_s1 + $0x4a8] ss:$16 sps:$4 sm:$0xff]  }
  0x60   :  { %3364 = vmatprep.subr.bf16.mxu1 %v8523_v50  ;;  %v7022_v49 = vcombine.high %v147_v46, %v151_v47  ;;  %v155_v50 = vld [vmem:[%s12206_s0 + $0x300] sm:$0xff] }
  0x62   :  { %2593 = vmatpush1.bf16.msra.mxu0 %v8485_v52  ;;  %v7021_v52 = vcombine.low %v147_v46, %v151_v47  ;;  %v8583_v47 = vld [vmem:[%s12207_s1 + $0x4e4] ss:$16 sps:$4 sm:$0xff]  }
  0x63   :  { %2594 = vmatprep.subr.bf16.mxu0 %v8490_v53  ;;  %3365 = vmatpush1.bf16.msra.mxu1 %v8521_v54  ;;  %v7030_v53 = vcombine.high %v155_v50, %v159_v51  ;;  %v163_v54 = vld [vmem:[%s12206_s0 + $0x340] sm:$0xff] }
  0x64   :  { %2458 = vmatmul.mubr.bf16.gmra.mrb[16].mxu0 %v6965_v55  ;;  %3230 = vmatmul.mubr.bf16.gmra.mrb[16].mxu1 %v6965_v55  ;;  %v167_v55 = vld [vmem:[%s12206_s0 + $0x360] sm:$0xff] }
  0x65   :  { %2467 = vmatprep.mubr.bf16.mxu0 %v6974_v56  ;;  %3239 = vmatprep.mubr.bf16.mxu1 %v6974_v56  ;;  %v7029_v56 = vcombine.low %v155_v50, %v159_v51  ;;  %v104_v50 = vld [vmem:[%s12206_s0 + $0x168] sm:$0xff]  ;;  %v8581_v51 = vld [vmem:[%s12207_s1 + $0x4e0] ss:$16 sps:$4 sm:$0xff]  }
  0x66   :  { %2595 = vmatpush1.bf16.msra.mxu0 %v8488_v57  ;;  %3366 = vmatprep.subr.bf16.mxu1 %v8529_v58  ;;  %v7038_v57 = vcombine.high %v163_v54, %v167_v55  ;;  %v171_v58 = vld [vmem:[%s12206_s0 + $0x380] sm:$0xff] }
  0x67   :  { %2596 = vmatprep.subr.bf16.mxu0 %v8499_v59  ;;  %3367 = vmatpush1.bf16.msra.mxu1 %v8527_v60  ;;  %v175_v59 = vld [vmem:[%s12206_s0 + $0x3a0] sm:$0xff]  ;;  %v7037_v60 = vcombine.low %v163_v54, %v167_v55  ;;  %v8617_v54 = vld [vmem:[%s12207_s1 + $0x4e8] ss:$16 sps:$4 sm:$0xff]  }
  0x68   :  { %3368 = vmatprep.subr.bf16.mxu1 %v8532_v61  ;;  %v7046_v61 = vcombine.high %v171_v58, %v175_v59 }
  0x6a   :  { %2597 = vmatpush1.bf16.msra.mxu0 %v8497_v0  ;;  %v7045_v0 = vcombine.low %v171_v58, %v175_v59  ;;  %v8595_v59 = vld [vmem:[%s12207_s1 + $0x524] ss:$16 sps:$4 sm:$0xff]  }
  0x6b   :  { %2598 = vmatprep.subr.bf16.mxu0 %v8508_v1  ;;  %3369 = vmatpush1.bf16.msra.mxu1 %v8530_v2  ;;  %v7054_v1 = vcombine.high %v179_v62, %v183_v63  ;;  %v60_v2 = vld [vmem:[%s12206_s0 + $0x8] sm:$0xff] }
  0x6c   :  { %2468 = vmatmul.mubr.bf16.gmra.mrb[20].mxu0 %v6973_v3  ;;  %3240 = vmatmul.mubr.bf16.gmra.mrb[20].mxu1 %v6973_v3  ;;  %v64_v3 = vld [vmem:[%s12206_s0 + $0x28] sm:$0xff] }
  0x6d   :  { %2477 = vmatprep.mubr.bf16.mxu0 %v6982_v4  ;;  %3249 = vmatprep.mubr.bf16.mxu1 %v6982_v4  ;;  %v7053_v4 = vcombine.low %v179_v62, %v183_v63  ;;  %v6935_v9 = vcombine.low %v60_v2, %v64_v3  ;;  %v112_v62 = vld [vmem:[%s12206_s0 + $0x1a8] sm:$0xff]  ;;  %v8593_v63 = vld [vmem:[%s12207_s1 + $0x520] ss:$16 sps:$4 sm:$0xff]  }
  0x6e   :  { %2599 = vmatpush1.bf16.msra.mxu0 %v8506_v5  ;;  %3370 = vmatprep.subr.bf16.mxu1 %v8538_v6  ;;  %v6936_v5 = vcombine.high %v60_v2, %v64_v3  ;;  %v68_v6 = vld [vmem:[%s12206_s0 + $0x48] sm:$0xff] }
  0x6f   :  { %2600 = vmatprep.subr.bf16.mxu0 %v8517_v7  ;;  %3371 = vmatpush1.bf16.msra.mxu1 %v8536_v8  ;;  %v72_v7 = vld [vmem:[%s12206_s0 + $0x68] sm:$0xff]  ;;  %v8560_v8 = vld [vmem:[%s12207_s1 + $0x400] ss:$16 sps:$4 sm:$0xff]  }
  0x70   :  { %3372 = vmatprep.subr.bf16.mxu1 %v8541_v12  ;;  %v8587_v12 = vld [vmem:[%s12207_s1 + $0x408] ss:$16 sps:$4 sm:$0xff]  }
  0x71   :  { %v8626_v2 = vld [vmem:[%s12207_s1 + $0x528] ss:$16 sps:$4 sm:$0xff]  }
  0x72   :  { %2601 = vmatpush1.bf16.msra.mxu0 %v8515_v11  ;;  %v6944_v11 = vcombine.high %v68_v6, %v72_v7 }
  0x73   :  { %2602 = vmatprep.subr.bf16.mxu0 %v8526_v13  ;;  %3373 = vmatpush1.bf16.msra.mxu1 %v8539_v14  ;;  %v8563_v13 = vld [vmem:[%s12207_s1 + $0x420] ss:$16 sps:$4 sm:$0xff]   ;;  %v76_v14 = vld [vmem:[%s12206_s0 + $0x88] sm:$0xff] }
  0x74   :  { %2478 = vmatmul.mubr.bf16.gmra.mrb[24].mxu0 %v6981_v15  ;;  %3250 = vmatmul.mubr.bf16.gmra.mrb[24].mxu1 %v6981_v15  ;;  %v80_v15 = vld [vmem:[%s12206_s0 + $0xa8] sm:$0xff] }
  0x75   :  { %2487 = vmatprep.mubr.bf16.mxu0 %v6990_v18  ;;  %3259 = vmatprep.mubr.bf16.mxu1 %v6990_v18  ;;  %v8590_v18 = vld [vmem:[%s12207_s1 + $0x428] ss:$16 sps:$4 sm:$0xff]   ;;  %v6952_v22 = vcombine.high %v76_v14, %v80_v15 }
  0x76   :  { %2603 = vmatpush1.bf16.msra.mxu0 %v8524_v16  ;;  %3374 = vmatprep.subr.bf16.mxu1 %v8547_v17  ;;  %v8592_v16 = vld [vmem:[%s12207_s1 + $0x42c] ss:$16 sps:$4 sm:$0xff]   ;;  %v8568_v17 = vld [vmem:[%s12207_s1 + $0x444] ss:$16 sps:$4 sm:$0xff]  }
  0x77   :  { %2604 = vmatprep.subr.bf16.mxu0 %v8535_v19  ;;  %3375 = vmatpush1.bf16.msra.mxu1 %v8545_v20  ;;  %v6943_v19 = vcombine.low %v68_v6, %v72_v7  ;;  %v8566_v20 = vld [vmem:[%s12207_s1 + $0x440] ss:$16 sps:$4 sm:$0xff]   ;;  %v8613_v7 = vld [vmem:[%s12207_s1 + $0x564] ss:$16 sps:$4 sm:$0xff]  }
  0x78   :  { %3376 = vmatprep.subr.bf16.mxu1 %v8550_v24  ;;  %v8596_v24 = vld [vmem:[%s12207_s1 + $0x448] ss:$16 sps:$4 sm:$0xff]  }
  0x7a   :  { %2605 = vmatpush1.bf16.msra.mxu0 %v8533_v23  ;;  %v8571_v23 = vld [vmem:[%s12207_s1 + $0x464] ss:$16 sps:$4 sm:$0xff]  }
  0x7b   :  { %2606 = vmatprep.subr.bf16.mxu0 %v8544_v25  ;;  %3377 = vmatpush1.bf16.msra.mxu1 %v8548_v26  ;;  %v84_v25 = vld [vmem:[%s12206_s0 + $0xc8] sm:$0xff] }
  0x7c   :  { %2488 = vmatmul.mubr.bf16.gmra.mrb[28].mxu0 %v6989_v27  ;;  %3260 = vmatmul.mubr.bf16.gmra.mrb[28].mxu1 %v6989_v27  ;;  %v88_v26 = vld [vmem:[%s12206_s0 + $0xe8] sm:$0xff]  ;;  %v8569_v27 = vld [vmem:[%s12207_s1 + $0x460] ss:$16 sps:$4 sm:$0xff]  }
  0x7d   :  { %2497 = vmatprep.mubr.bf16.mxu0 %v6998_v30  ;;  %3269 = vmatprep.mubr.bf16.mxu1 %v6998_v30  ;;  %v8599_v30 = vld [vmem:[%s12207_s1 + $0x468] ss:$16 sps:$4 sm:$0xff]   ;;  %v6960_v34 = vcombine.high %v84_v25, %v88_v26  ;;  %v6959_v43 = vcombine.low %v84_v25, %v88_v26 }
  0x7e   :  { %2607 = vmatpush1.bf16.msra.mxu0 %v8542_v28  ;;  %3378 = vmatprep.subr.bf16.mxu1 %v8556_v29  ;;  %v8601_v28 = vld [vmem:[%s12207_s1 + $0x46c] ss:$16 sps:$4 sm:$0xff]   ;;  %v8574_v29 = vld [vmem:[%s12207_s1 + $0x484] ss:$16 sps:$4 sm:$0xff]  }
  0x7f   :  { %2608 = vmatprep.subr.bf16.mxu0 %v8553_v31  ;;  %3379 = vmatpush1.bf16.msra.mxu1 %v8554_v32  ;;  %v6951_v31 = vcombine.low %v76_v14, %v80_v15  ;;  %v8572_v32 = vld [vmem:[%s12207_s1 + $0x480] ss:$16 sps:$4 sm:$0xff]   ;;  %v8635_v14 = vld [vmem:[%s12207_s1 + $0x568] ss:$16 sps:$4 sm:$0xff]  }
  0x80   :  { %3380 = vmatprep.subr.bf16.mxu1 %v8559_v36  ;;  %v8605_v36 = vld [vmem:[%s12207_s1 + $0x488] ss:$16 sps:$4 sm:$0xff]  }
  0x82   :  { %2609 = vmatpush1.bf16.msra.mxu0 %v8551_v35  ;;  %v8577_v35 = vld [vmem:[%s12207_s1 + $0x4a4] ss:$16 sps:$4 sm:$0xff]  }
  0x83   :  { %3381 = vmatpush1.bf16.msra.mxu1 %v8557_v37  ;;  %2771 = vmatprep.subr.bf16.mxu0 %v8562_v38  ;;  %v92_v37 = vld [vmem:[%s12206_s0 + $0x108] sm:$0xff] }
  0x84   :  { %2498 = vmatmul.mubr.bf16.gmra.mrb[32].mxu0 %v6997_v39  ;;  %3270 = vmatmul.mubr.bf16.gmra.mrb[32].mxu1 %v6997_v39  ;;  %v96_v38 = vld [vmem:[%s12206_s0 + $0x128] sm:$0xff]  ;;  %v8575_v39 = vld [vmem:[%s12207_s1 + $0x4a0] ss:$16 sps:$4 sm:$0xff]  }
  0x85   :  { %2507 = vmatprep.mubr.bf16.mxu0 %v7006_v40  ;;  %3279 = vmatprep.mubr.bf16.mxu1 %v7006_v40  ;;  %v8610_v40 = vld [vmem:[%s12207_s1 + $0x4ac] ss:$16 sps:$4 sm:$0xff]   ;;  %v6968_v46 = vcombine.high %v92_v37, %v96_v38  ;;  %v6967_v55 = vcombine.low %v92_v37, %v96_v38 }
  0x86   :  { %3543 = vmatprep.subr.bf16.mxu1 %v8589_v41  ;;  %v8580_v41 = vld [vmem:[%s12207_s1 + $0x4c4] ss:$16 sps:$4 sm:$0xff]  }
  0x8c   :  { %2508 = vmatmul.mubr.bf16.gmra.mrb[36].mxu0 %v7005_v44  ;;  %3280 = vmatmul.mubr.bf16.gmra.mrb[36].mxu1 %v7005_v44  ;;  %v8578_v44 = vld [vmem:[%s12207_s1 + $0x4c0] ss:$16 sps:$4 sm:$0xff]  }
  0x8d   :  { %2517 = vmatprep.mubr.bf16.mxu0 %v7014_v45  ;;  %3289 = vmatprep.mubr.bf16.mxu1 %v7014_v45  ;;  %v8616_v45 = vld [vmem:[%s12207_s1 + $0x4cc] ss:$16 sps:$4 sm:$0xff]  }
  0x94   :  { %2518 = vmatmul.mubr.bf16.gmra.mrb[40].mxu0 %v7013_v48  ;;  %3290 = vmatmul.mubr.bf16.gmra.mrb[40].mxu1 %v7013_v48  ;;  %v8614_v48 = vld [vmem:[%s12207_s1 + $0x4c8] ss:$16 sps:$4 sm:$0xff]  }
  0x95   :  { %2527 = vmatprep.mubr.bf16.mxu0 %v7022_v49  ;;  %3299 = vmatprep.mubr.bf16.mxu1 %v7022_v49  ;;  %v100_v49 = vld [vmem:[%s12206_s0 + $0x148] sm:$0xff] }
  0x96   :  { %v6976_v58 = vcombine.high %v100_v49, %v104_v50  ;;  %v6975_v3 = vcombine.low %v100_v49, %v104_v50 }
  0x9c   :  { %2528 = vmatmul.mubr.bf16.gmra.mrb[44].mxu0 %v7021_v52  ;;  %3300 = vmatmul.mubr.bf16.gmra.mrb[44].mxu1 %v7021_v52  ;;  %v8619_v52 = vld [vmem:[%s12207_s1 + $0x4ec] ss:$16 sps:$4 sm:$0xff]  }
  0x9d   :  { %2537 = vmatprep.mubr.bf16.mxu0 %v7030_v53  ;;  %3309 = vmatprep.mubr.bf16.mxu1 %v7030_v53  ;;  %v8586_v53 = vld [vmem:[%s12207_s1 + $0x504] ss:$16 sps:$4 sm:$0xff]  }
  0xa4   :  { %2538 = vmatmul.mubr.bf16.gmra.mrb[48].mxu0 %v7029_v56  ;;  %3310 = vmatmul.mubr.bf16.gmra.mrb[48].mxu1 %v7029_v56  ;;  %v8584_v56 = vld [vmem:[%s12207_s1 + $0x500] ss:$16 sps:$4 sm:$0xff]  }
  0xa5   :  { %2547 = vmatprep.mubr.bf16.mxu0 %v7038_v57  ;;  %3319 = vmatprep.mubr.bf16.mxu1 %v7038_v57  ;;  %v8625_v57 = vld [vmem:[%s12207_s1 + $0x50c] ss:$16 sps:$4 sm:$0xff]  }
  0xac   :  { %2548 = vmatmul.mubr.bf16.gmra.mrb[52].mxu0 %v7037_v60  ;;  %3320 = vmatmul.mubr.bf16.gmra.mrb[52].mxu1 %v7037_v60  ;;  %v8623_v60 = vld [vmem:[%s12207_s1 + $0x508] ss:$16 sps:$4 sm:$0xff]  }
  0xad   :  { %2557 = vmatprep.mubr.bf16.mxu0 %v7046_v61  ;;  %3329 = vmatprep.mubr.bf16.mxu1 %v7046_v61  ;;  %v108_v61 = vld [vmem:[%s12206_s0 + $0x188] sm:$0xff] }
  0xae   :  { %v6984_v6 = vcombine.high %v108_v61, %v112_v62  ;;  %v6983_v15 = vcombine.low %v108_v61, %v112_v62 }
  0xb4   :  { %2558 = vmatmul.mubr.bf16.gmra.mrb[56].mxu0 %v7045_v0  ;;  %3330 = vmatmul.mubr.bf16.gmra.mrb[56].mxu1 %v7045_v0  ;;  %v8628_v0 = vld [vmem:[%s12207_s1 + $0x52c] ss:$16 sps:$4 sm:$0xff]  }
  0xb5   :  { %2567 = vmatprep.mubr.bf16.mxu0 %v7054_v1  ;;  %3339 = vmatprep.mubr.bf16.mxu1 %v7054_v1  ;;  %v8604_v1 = vld [vmem:[%s12207_s1 + $0x544] ss:$16 sps:$4 sm:$0xff]  }
  0xbc   :  { %2568 = vmatmul.mubr.bf16.gmra.mrb[60].mxu0 %v7053_v4  ;;  %3340 = vmatmul.mubr.bf16.gmra.mrb[60].mxu1 %v7053_v4  ;;  %v8602_v4 = vld [vmem:[%s12207_s1 + $0x540] ss:$16 sps:$4 sm:$0xff]  }
  0xbd   :  { %2610 = vmatprep.mubr.bf16.mxu0 %v6936_v5  ;;  %3382 = vmatprep.mubr.bf16.mxu1 %v6936_v5  ;;  %v8634_v5 = vld [vmem:[%s12207_s1 + $0x54c] ss:$16 sps:$4 sm:$0xff]  }
  0xc4   :  { %2611 = vmatmul.mubr.bf16.vlgmr.msra.gmra.mrb[0].mxu0 %v6935_v9  ;;  %3383 = vmatmul.mubr.bf16.vlgmr.msra.gmra.mrb[0].mxu1 %v6935_v9  ;;  %v116_v9 = vld [vmem:[%s12206_s0 + $0x1c8] sm:$0xff] }
  0xc5   :  { %2772 = vmatpush1.bf16.msra.mxu0 %v8560_v8  ;;  %2620 = vmatprep.mubr.bf16.mxu0 %v6944_v11  ;;  %v8632_v8 = vld [vmem:[%s12207_s1 + $0x548] ss:$16 sps:$4 sm:$0xff]  }
  0xc6   :  { %3392 = vmatprep.mubr.bf16.mxu1 %v6944_v11  ;;  %2773 = vmatprep.subr.bf16.mxu0 %v8565_v10  ;;  %v120_v10 = vld [vmem:[%s12206_s0 + $0x1e8] sm:$0xff]  ;;  %v8611_v11 = vld [vmem:[%s12207_s1 + $0x560] ss:$16 sps:$4 sm:$0xff]  }
  0xc7   :  { %3544 = vmatpush1.bf16.msra.mxu1 %v8587_v12  ;;  %v8637_v12 = vld [vmem:[%s12207_s1 + $0x56c] ss:$16 sps:$4 sm:$0xff]  }
  0xc8   :  { %3545 = vmatprep.subr.bf16.mxu1 %v8592_v16  ;;  %v8620_v16 = vld [vmem:[%s12207_s1 + $0x580] ss:$16 sps:$4 sm:$0xff]  }
  0xc9   :  { %2774 = vmatpush1.bf16.msra.mxu0 %v8563_v13  ;;  %v8622_v13 = vld [vmem:[%s12207_s1 + $0x584] ss:$16 sps:$4 sm:$0xff]  }
  0xca   :  { %2775 = vmatprep.subr.bf16.mxu0 %v8568_v17  ;;  %v8643_v17 = vld [vmem:[%s12207_s1 + $0x58c] ss:$16 sps:$4 sm:$0xff]  }
  0xcb   :  { %3546 = vmatpush1.bf16.msra.mxu1 %v8590_v18  ;;  %v6992_v18 = vcombine.high %v116_v9, %v120_v10 }
  0xcc   :  { %2621 = vmatmul.mubr.bf16.gmra.mrb[4].mxu0 %v6943_v19  ;;  %3393 = vmatmul.mubr.bf16.gmra.mrb[4].mxu1 %v6943_v19  ;;  %v8631_v19 = vld [vmem:[%s12207_s1 + $0x5a4] ss:$16 sps:$4 sm:$0xff]  }
  0xcd   :  { %2630 = vmatprep.mubr.bf16.mxu0 %v6952_v22  ;;  %3402 = vmatprep.mubr.bf16.mxu1 %v6952_v22 }
  0xce   :  { %2776 = vmatpush1.bf16.msra.mxu0 %v8566_v20  ;;  %3547 = vmatprep.subr.bf16.mxu1 %v8598_v21  ;;  %v8641_v20 = vld [vmem:[%s12207_s1 + $0x588] ss:$16 sps:$4 sm:$0xff]   ;;  %v8646_v21 = vld [vmem:[%s12207_s1 + $0x5ac] ss:$16 sps:$4 sm:$0xff]  }
  0xcf   :  { %2777 = vmatprep.subr.bf16.mxu0 %v8571_v23  ;;  %3548 = vmatpush1.bf16.msra.mxu1 %v8596_v24 }
  0xd0   :  { %3549 = vmatprep.subr.bf16.mxu1 %v8601_v28 }
  0xd2   :  { %2778 = vmatpush1.bf16.msra.mxu0 %v8569_v27 }
  0xd3   :  { %2779 = vmatprep.subr.bf16.mxu0 %v8574_v29  ;;  %3550 = vmatpush1.bf16.msra.mxu1 %v8599_v30 }
  0xd4   :  { %2631 = vmatmul.mubr.bf16.gmra.mrb[8].mxu0 %v6951_v31  ;;  %3403 = vmatmul.mubr.bf16.gmra.mrb[8].mxu1 %v6951_v31 }
  0xd5   :  { %2640 = vmatprep.mubr.bf16.mxu0 %v6960_v34  ;;  %3412 = vmatprep.mubr.bf16.mxu1 %v6960_v34 }
  0xd6   :  { %2780 = vmatpush1.bf16.msra.mxu0 %v8572_v32  ;;  %3551 = vmatprep.subr.bf16.mxu1 %v8607_v33 }
  0xd7   :  { %2781 = vmatprep.subr.bf16.mxu0 %v8577_v35  ;;  %3552 = vmatpush1.bf16.msra.mxu1 %v8605_v36 }
  0xd8   :  { %3553 = vmatprep.subr.bf16.mxu1 %v8610_v40 }
  0xda   :  { %2782 = vmatpush1.bf16.msra.mxu0 %v8575_v39 }
  0xdb   :  { %2783 = vmatprep.subr.bf16.mxu0 %v8580_v41  ;;  %3554 = vmatpush1.bf16.msra.mxu1 %v8608_v42 }
  0xdc   :  { %2641 = vmatmul.mubr.bf16.gmra.mrb[12].mxu0 %v6959_v43  ;;  %3413 = vmatmul.mubr.bf16.gmra.mrb[12].mxu1 %v6959_v43 }
  0xdd   :  { %2650 = vmatprep.mubr.bf16.mxu0 %v6968_v46  ;;  %3422 = vmatprep.mubr.bf16.mxu1 %v6968_v46 }
  0xde   :  { %2784 = vmatpush1.bf16.msra.mxu0 %v8578_v44  ;;  %3555 = vmatprep.subr.bf16.mxu1 %v8616_v45 }
  0xdf   :  { %2785 = vmatprep.subr.bf16.mxu0 %v8583_v47  ;;  %3556 = vmatpush1.bf16.msra.mxu1 %v8614_v48 }
  0xe0   :  { %3557 = vmatprep.subr.bf16.mxu1 %v8619_v52 }
  0xe2   :  { %2786 = vmatpush1.bf16.msra.mxu0 %v8581_v51 }
  0xe3   :  { %2787 = vmatprep.subr.bf16.mxu0 %v8586_v53  ;;  %3558 = vmatpush1.bf16.msra.mxu1 %v8617_v54 }
  0xe4   :  { %2651 = vmatmul.mubr.bf16.gmra.mrb[16].mxu0 %v6967_v55  ;;  %3423 = vmatmul.mubr.bf16.gmra.mrb[16].mxu1 %v6967_v55 }
  0xe5   :  { %2660 = vmatprep.mubr.bf16.mxu0 %v6976_v58  ;;  %3432 = vmatprep.mubr.bf16.mxu1 %v6976_v58 }
  0xe6   :  { %2788 = vmatpush1.bf16.msra.mxu0 %v8584_v56  ;;  %3559 = vmatprep.subr.bf16.mxu1 %v8625_v57 }
  0xe7   :  { %2789 = vmatprep.subr.bf16.mxu0 %v8595_v59  ;;  %3560 = vmatpush1.bf16.msra.mxu1 %v8623_v60 }
  0xe8   :  { %3561 = vmatprep.subr.bf16.mxu1 %v8628_v0 }
  0xea   :  { %2790 = vmatpush1.bf16.msra.mxu0 %v8593_v63 }
  0xeb   :  { %2791 = vmatprep.subr.bf16.mxu0 %v8604_v1  ;;  %3562 = vmatpush1.bf16.msra.mxu1 %v8626_v2 }
  0xec   :  { %2661 = vmatmul.mubr.bf16.gmra.mrb[20].mxu0 %v6975_v3  ;;  %3433 = vmatmul.mubr.bf16.gmra.mrb[20].mxu1 %v6975_v3 }
  0xed   :  { %2670 = vmatprep.mubr.bf16.mxu0 %v6984_v6  ;;  %3442 = vmatprep.mubr.bf16.mxu1 %v6984_v6 }
  0xee   :  { %2792 = vmatpush1.bf16.msra.mxu0 %v8602_v4  ;;  %3563 = vmatprep.subr.bf16.mxu1 %v8634_v5 }
  0xef   :  { %2793 = vmatprep.subr.bf16.mxu0 %v8613_v7  ;;  %3564 = vmatpush1.bf16.msra.mxu1 %v8632_v8 }
  0xf0   :  { %3565 = vmatprep.subr.bf16.mxu1 %v8637_v12 }
  0xf2   :  { %2794 = vmatpush1.bf16.msra.mxu0 %v8611_v11 }
  0xf3   :  { %2795 = vmatprep.subr.bf16.mxu0 %v8622_v13  ;;  %3566 = vmatpush1.bf16.msra.mxu1 %v8635_v14 }
  0xf4   :  { %2671 = vmatmul.mubr.bf16.gmra.mrb[24].mxu0 %v6983_v15  ;;  %3443 = vmatmul.mubr.bf16.gmra.mrb[24].mxu1 %v6983_v15 }
  0xf5   :  { %2680 = vmatprep.mubr.bf16.mxu0 %v6992_v18  ;;  %3452 = vmatprep.mubr.bf16.mxu1 %v6992_v18 }
  0xf6   :  { %23 = vsyncpa [#allocation9], 0  ;;  %v124_v22 = vld [vmem:[%s12206_s0 + $0x208] sm:$0xff]  ;;  %2796 = vmatpush1.bf16.msra.mxu0 %v8620_v16  ;;  %v8629_v24 = vld [vmem:[%s12207_s1 + $0x5a0] ss:$16 sps:$4 sm:$0xff]   ;;  %3567 = vmatprep.subr.bf16.mxu1 %v8643_v17  ;;  %v6991_v27 = vcombine.low %v116_v9, %v120_v10  ;;  %vm6329_vm1 = vcmask 1040384  }
  0xf7   :  { %v128_v23 = vld [vmem:[%s12206_s0 + $0x228] sm:$0xff]  ;;  %2797 = vmatprep.subr.bf16.mxu0 %v8631_v19  ;;  %v8640_v25 = vld [vmem:[%s12207_s1 + $0x5c4] ss:$16 sps:$4 sm:$0xff]   ;;  %3568 = vmatpush1.bf16.msra.mxu1 %v8641_v20  ;;  %v8638_v29 = vld [vmem:[%s12207_s1 + $0x5c0] ss:$16 sps:$4 sm:$0xff]   ;;  %vm51_vm3 = vcmask 0  }
  0xf8   :  { %v8644_v26 = vld [vmem:[%s12207_s1 + $0x5a8] ss:$16 sps:$4 sm:$0xff]   ;;  %3569 = vmatprep.subr.bf16.mxu1 %v8646_v21  ;;  %v7000_v28 = vcombine.high %v124_v22, %v128_v23  ;;  %v8652_v30 = vld [vmem:[%s12207_s1 + $0x5cc] ss:$16 sps:$4 sm:$0xff]   ;;  %v8649_v31 = vld [vmem:[%s12207_s1 + $0x5e4] ss:$16 sps:$4 sm:$0xff]   ;;  %v6999_v39 = vcombine.low %v124_v22, %v128_v23 }
  0xf9   :  { %v8650_v32 = vld [vmem:[%s12207_s1 + $0x5c8] ss:$16 sps:$4 sm:$0xff]   ;;  %v8655_v33 = vld [vmem:[%s12207_s1 + $0x5ec] ss:$16 sps:$4 sm:$0xff]   ;;  %v8647_v36 = vld [vmem:[%s12207_s1 + $0x5e0] ss:$16 sps:$4 sm:$0xff]  }
  0xfa   :  { %2798 = vmatpush1.bf16.msra.mxu0 %v8629_v24  ;;  %v132_v34 = vld [vmem:[%s12206_s0 + $0x248] sm:$0xff]  ;;  %v8658_v38 = vld [vmem:[%s12207_s1 + $0x604] ss:$16 sps:$4 sm:$0xff]   ;;  %v8656_v9 = vld [vmem:[%s12207_s1 + $0x600] ss:$16 sps:$4 sm:$0xff]   ;;  %vm6874_vm6 = vcmask 8192  }
  0xfb   :  { %2799 = vmatprep.subr.bf16.mxu0 %v8640_v25  ;;  %3570 = vmatpush1.bf16.msra.mxu1 %v8644_v26  ;;  %v136_v35 = vld [vmem:[%s12206_s0 + $0x268] sm:$0xff]  ;;  %v61_v2 = vld [vmem:[%s12206_s0 + $0x10] sm:$0xff] }
  0xfc   :  { %2681 = vmatmul.mubr.bf16.gmra.mrb[28].mxu0 %v6991_v27  ;;  %3453 = vmatmul.mubr.bf16.gmra.mrb[28].mxu1 %v6991_v27  ;;  %v8653_v37 = vld [vmem:[%s12207_s1 + $0x5e8] ss:$16 sps:$4 sm:$0xff]   ;;  %v7008_v40 = vcombine.high %v132_v34, %v136_v35  ;;  %v8685_v41 = vld [vmem:[%s12207_s1 + $0x60c] ss:$16 sps:$4 sm:$0xff]   ;;  %v7007_v44 = vcombine.low %v132_v34, %v136_v35  ;;  %v65_v3 = vld [vmem:[%s12206_s0 + $0x30] sm:$0xff] }
  0xfd   :  { %2690 = vmatprep.mubr.bf16.mxu0 %v7000_v28  ;;  %3462 = vmatprep.mubr.bf16.mxu1 %v7000_v28  ;;  %v140_v42 = vld [vmem:[%s12206_s0 + $0x288] sm:$0xff]  ;;  %v6938_v5 = vcombine.high %v61_v2, %v65_v3  ;;  %v69_v6 = vld [vmem:[%s12206_s0 + $0x50] sm:$0xff]  ;;  %v6937_v8 = vcombine.low %v61_v2, %v65_v3 }
  0xfe   :  { %2800 = vmatpush1.bf16.msra.mxu0 %v8638_v29  ;;  %3571 = vmatprep.subr.bf16.mxu1 %v8652_v30  ;;  %v144_v43 = vld [vmem:[%s12206_s0 + $0x2a8] sm:$0xff]  ;;  %v73_v7 = vld [vmem:[%s12206_s0 + $0x70] sm:$0xff] }
  0xff   :  { %2801 = vmatprep.subr.bf16.mxu0 %v8649_v31  ;;  %3572 = vmatpush1.bf16.msra.mxu1 %v8650_v32  ;;  %v7016_v45 = vcombine.high %v140_v42, %v144_v43  ;;  %v148_v46 = vld [vmem:[%s12206_s0 + $0x2c8] sm:$0xff]  ;;  %v7015_v48 = vcombine.low %v140_v42, %v144_v43  ;;  %v6946_v10 = vcombine.high %v69_v6, %v73_v7  ;;  %v8661_v11 = vld [vmem:[%s12207_s1 + $0x624] ss:$16 sps:$4 sm:$0xff]   ;;  %v8659_v14 = vld [vmem:[%s12207_s1 + $0x620] ss:$16 sps:$4 sm:$0xff]  }
 0x100   :  { %3573 = vmatprep.subr.bf16.mxu1 %v8655_v33  ;;  %v152_v47 = vld [vmem:[%s12206_s0 + $0x2e8] sm:$0xff]  ;;  %v77_v15 = vld [vmem:[%s12206_s0 + $0x90] sm:$0xff]  ;;  %v6945_v19 = vcombine.low %v69_v6, %v73_v7 }
 0x101   :  { %v7024_v49 = vcombine.high %v148_v46, %v152_v47  ;;  %v156_v50 = vld [vmem:[%s12206_s0 + $0x308] sm:$0xff]  ;;  %v7023_v52 = vcombine.low %v148_v46, %v152_v47  ;;  %v81_v16 = vld [vmem:[%s12206_s0 + $0xb0] sm:$0xff] }
 0x102   :  { %2802 = vmatpush1.bf16.msra.mxu0 %v8647_v36  ;;  %v160_v51 = vld [vmem:[%s12206_s0 + $0x328] sm:$0xff]  ;;  %v8664_v17 = vld [vmem:[%s12207_s1 + $0x644] ss:$16 sps:$4 sm:$0xff]   ;;  %v6954_v20 = vcombine.high %v77_v15, %v81_v16  ;;  %v8662_v21 = vld [vmem:[%s12207_s1 + $0x640] ss:$16 sps:$4 sm:$0xff]   ;;  %v6953_v31 = vcombine.low %v77_v15, %v81_v16 }
 0x103   :  { %3574 = vmatpush1.bf16.msra.mxu1 %v8653_v37  ;;  %2964 = vmatprep.subr.bf16.mxu0 %v8658_v38  ;;  %v7032_v53 = vcombine.high %v156_v50, %v160_v51  ;;  %v164_v54 = vld [vmem:[%s12206_s0 + $0x348] sm:$0xff]  ;;  %v7031_v56 = vcombine.low %v156_v50, %v160_v51  ;;  %v8667_v23 = vld [vmem:[%s12207_s1 + $0x664] ss:$16 sps:$4 sm:$0xff]   ;;  %v8665_v28 = vld [vmem:[%s12207_s1 + $0x660] ss:$16 sps:$4 sm:$0xff]  }
 0x104   :  { %2691 = vmatmul.mubr.bf16.gmra.mrb[32].mxu0 %v6999_v39  ;;  %3463 = vmatmul.mubr.bf16.gmra.mrb[32].mxu1 %v6999_v39  ;;  %v168_v55 = vld [vmem:[%s12206_s0 + $0x368] sm:$0xff]  ;;  %v85_v26 = vld [vmem:[%s12206_s0 + $0xd0] sm:$0xff] }
 0x105   :  { %2700 = vmatprep.mubr.bf16.mxu0 %v7008_v40  ;;  %3472 = vmatprep.mubr.bf16.mxu1 %v7008_v40  ;;  %v7040_v57 = vcombine.high %v164_v54, %v168_v55  ;;  %v172_v58 = vld [vmem:[%s12206_s0 + $0x388] sm:$0xff]  ;;  %v7039_v60 = vcombine.low %v164_v54, %v168_v55  ;;  %v89_v27 = vld [vmem:[%s12206_s0 + $0xf0] sm:$0xff] }
 0x106   :  { %3736 = vmatprep.subr.bf16.mxu1 %v8685_v41  ;;  %v176_v59 = vld [vmem:[%s12206_s0 + $0x3a8] sm:$0xff]  ;;  %v8670_v29 = vld [vmem:[%s12207_s1 + $0x684] ss:$16 sps:$4 sm:$0xff]   ;;  %v6962_v32 = vcombine.high %v85_v26, %v89_v27  ;;  %v8668_v33 = vld [vmem:[%s12207_s1 + $0x680] ss:$16 sps:$4 sm:$0xff]   ;;  %v6961_v43 = vcombine.low %v85_v26, %v89_v27 }
 0x107   :  { %v7048_v61 = vcombine.high %v172_v58, %v176_v59  ;;  %v180_v62 = vld [vmem:[%s12206_s0 + $0x3c8] sm:$0xff]  ;;  %v7047_v0 = vcombine.low %v172_v58, %v176_v59  ;;  %v8673_v35 = vld [vmem:[%s12207_s1 + $0x6a4] ss:$16 sps:$4 sm:$0xff]   ;;  %v8671_v40 = vld [vmem:[%s12207_s1 + $0x6a0] ss:$16 sps:$4 sm:$0xff]  }
 0x108   :  { %v184_v63 = vld [vmem:[%s12206_s0 + $0x3e8] sm:$0xff]  ;;  %v93_v38 = vld [vmem:[%s12206_s0 + $0x110] sm:$0xff] }
 0x109   :  { %v7056_v1 = vcombine.high %v180_v62, %v184_v63  ;;  %v7055_v4 = vcombine.low %v180_v62, %v184_v63  ;;  %v8683_v12 = vld [vmem:[%s12207_s1 + $0x608] ss:$16 sps:$4 sm:$0xff]   ;;  %v8688_v13 = vld [vmem:[%s12207_s1 + $0x62c] ss:$16 sps:$4 sm:$0xff]   ;;  %v97_v39 = vld [vmem:[%s12206_s0 + $0x130] sm:$0xff] }
 0x10a   :  { %v8686_v18 = vld [vmem:[%s12207_s1 + $0x628] ss:$16 sps:$4 sm:$0xff]   ;;  %v8694_v22 = vld [vmem:[%s12207_s1 + $0x64c] ss:$16 sps:$4 sm:$0xff]   ;;  %v8676_v41 = vld [vmem:[%s12207_s1 + $0x6c4] ss:$16 sps:$4 sm:$0xff]   ;;  %v6969_v55 = vcombine.low %v93_v38, %v97_v39 }
 0x10b   :  { %v8692_v24 = vld [vmem:[%s12207_s1 + $0x648] ss:$16 sps:$4 sm:$0xff]   ;;  %v8697_v25 = vld [vmem:[%s12207_s1 + $0x66c] ss:$16 sps:$4 sm:$0xff]   ;;  %v8679_v47 = vld [vmem:[%s12207_s1 + $0x6e4] ss:$16 sps:$4 sm:$0xff]  }
 0x10c   :  { %2701 = vmatmul.mubr.bf16.gmra.mrb[36].mxu0 %v7007_v44  ;;  %3473 = vmatmul.mubr.bf16.gmra.mrb[36].mxu1 %v7007_v44  ;;  %v8695_v30 = vld [vmem:[%s12207_s1 + $0x668] ss:$16 sps:$4 sm:$0xff]   ;;  %v8703_v34 = vld [vmem:[%s12207_s1 + $0x68c] ss:$16 sps:$4 sm:$0xff]   ;;  %v6970_v44 = vcombine.high %v93_v38, %v97_v39  ;;  %v101_v50 = vld [vmem:[%s12206_s0 + $0x150] sm:$0xff] }
 0x10d   :  { %2710 = vmatprep.mubr.bf16.mxu0 %v7016_v45  ;;  %3482 = vmatprep.mubr.bf16.mxu1 %v7016_v45  ;;  %v8701_v36 = vld [vmem:[%s12207_s1 + $0x688] ss:$16 sps:$4 sm:$0xff]   ;;  %v8706_v37 = vld [vmem:[%s12207_s1 + $0x6ac] ss:$16 sps:$4 sm:$0xff]   ;;  %v8674_v45 = vld [vmem:[%s12207_s1 + $0x6c0] ss:$16 sps:$4 sm:$0xff]  }
 0x10e   :  { %v8704_v42 = vld [vmem:[%s12207_s1 + $0x6a8] ss:$16 sps:$4 sm:$0xff]   ;;  %v8712_v46 = vld [vmem:[%s12207_s1 + $0x6cc] ss:$16 sps:$4 sm:$0xff]   ;;  %v105_v51 = vld [vmem:[%s12206_s0 + $0x170] sm:$0xff] }
 0x10f   :  { %v8713_v54 = vld [vmem:[%s12207_s1 + $0x6e8] ss:$16 sps:$4 sm:$0xff]   ;;  %v8721_v58 = vld [vmem:[%s12207_s1 + $0x70c] ss:$16 sps:$4 sm:$0xff]   ;;  %v8691_v59 = vld [vmem:[%s12207_s1 + $0x724] ss:$16 sps:$4 sm:$0xff]   ;;  %v6977_v3 = vcombine.low %v101_v50, %v105_v51 }
 0x110   :  { %v109_v62 = vld [vmem:[%s12206_s0 + $0x190] sm:$0xff]  ;;  %v8722_v2 = vld [vmem:[%s12207_s1 + $0x728] ss:$16 sps:$4 sm:$0xff]   ;;  %v8730_v6 = vld [vmem:[%s12207_s1 + $0x74c] ss:$16 sps:$4 sm:$0xff]  }
 0x111   :  { %v113_v63 = vld [vmem:[%s12206_s0 + $0x1b0] sm:$0xff]  ;;  %v8740_v26 = vld [vmem:[%s12207_s1 + $0x7a8] ss:$16 sps:$4 sm:$0xff]  }
 0x112   :  { %v8709_v7 = vld [vmem:[%s12207_s1 + $0x764] ss:$16 sps:$4 sm:$0xff]   ;;  %v6985_v15 = vcombine.low %v109_v62, %v113_v63 }
 0x114   :  { %2711 = vmatmul.mubr.bf16.gmra.mrb[40].mxu0 %v7015_v48  ;;  %3483 = vmatmul.mubr.bf16.gmra.mrb[40].mxu1 %v7015_v48  ;;  %v8710_v48 = vld [vmem:[%s12207_s1 + $0x6c8] ss:$16 sps:$4 sm:$0xff]  }
 0x115   :  { %2720 = vmatprep.mubr.bf16.mxu0 %v7024_v49  ;;  %3492 = vmatprep.mubr.bf16.mxu1 %v7024_v49  ;;  %v8715_v49 = vld [vmem:[%s12207_s1 + $0x6ec] ss:$16 sps:$4 sm:$0xff]  }
 0x11c   :  { %2721 = vmatmul.mubr.bf16.gmra.mrb[44].mxu0 %v7023_v52  ;;  %3493 = vmatmul.mubr.bf16.gmra.mrb[44].mxu1 %v7023_v52  ;;  %v8677_v52 = vld [vmem:[%s12207_s1 + $0x6e0] ss:$16 sps:$4 sm:$0xff]  }
 0x11d   :  { %2730 = vmatprep.mubr.bf16.mxu0 %v7032_v53  ;;  %3502 = vmatprep.mubr.bf16.mxu1 %v7032_v53  ;;  %v8682_v53 = vld [vmem:[%s12207_s1 + $0x704] ss:$16 sps:$4 sm:$0xff]  }
 0x124   :  { %2731 = vmatmul.mubr.bf16.gmra.mrb[48].mxu0 %v7031_v56  ;;  %3503 = vmatmul.mubr.bf16.gmra.mrb[48].mxu1 %v7031_v56  ;;  %v6978_v56 = vcombine.high %v101_v50, %v105_v51 }
 0x125   :  { %2740 = vmatprep.mubr.bf16.mxu0 %v7040_v57  ;;  %3512 = vmatprep.mubr.bf16.mxu1 %v7040_v57  ;;  %v8680_v57 = vld [vmem:[%s12207_s1 + $0x700] ss:$16 sps:$4 sm:$0xff]  }
 0x12c   :  { %2741 = vmatmul.mubr.bf16.gmra.mrb[52].mxu0 %v7039_v60  ;;  %3513 = vmatmul.mubr.bf16.gmra.mrb[52].mxu1 %v7039_v60  ;;  %v8719_v60 = vld [vmem:[%s12207_s1 + $0x708] ss:$16 sps:$4 sm:$0xff]  }
 0x12d   :  { %2750 = vmatprep.mubr.bf16.mxu0 %v7048_v61  ;;  %3522 = vmatprep.mubr.bf16.mxu1 %v7048_v61  ;;  %v8724_v61 = vld [vmem:[%s12207_s1 + $0x72c] ss:$16 sps:$4 sm:$0xff]  }
 0x134   :  { %2751 = vmatmul.mubr.bf16.gmra.mrb[56].mxu0 %v7047_v0  ;;  %3523 = vmatmul.mubr.bf16.gmra.mrb[56].mxu1 %v7047_v0  ;;  %v8689_v0 = vld [vmem:[%s12207_s1 + $0x720] ss:$16 sps:$4 sm:$0xff]  }
 0x135   :  { %2760 = vmatprep.mubr.bf16.mxu0 %v7056_v1  ;;  %3532 = vmatprep.mubr.bf16.mxu1 %v7056_v1  ;;  %v8700_v1 = vld [vmem:[%s12207_s1 + $0x744] ss:$16 sps:$4 sm:$0xff]  }
 0x13c   :  { %2761 = vmatmul.mubr.bf16.gmra.mrb[60].mxu0 %v7055_v4  ;;  %3533 = vmatmul.mubr.bf16.gmra.mrb[60].mxu1 %v7055_v4  ;;  %v6986_v4 = vcombine.high %v109_v62, %v113_v63  ;;  %v181_v62 = vld [vmem:[%s12206_s0 + $0x3d0] sm:$0xff] }
 0x13d   :  { %2803 = vmatprep.mubr.bf16.mxu0 %v6938_v5  ;;  %3575 = vmatprep.mubr.bf16.mxu1 %v6938_v5  ;;  %v8698_v5 = vld [vmem:[%s12207_s1 + $0x740] ss:$16 sps:$4 sm:$0xff]  }
 0x13e   :  { %v185_v63 = vld [vmem:[%s12206_s0 + $0x3f0] sm:$0xff] }
 0x144   :  { %2804 = vmatmul.mubr.bf16.vlgmr.msra.gmra.mrb[0].mxu0 %v6937_v8  ;;  %3576 = vmatmul.mubr.bf16.vlgmr.msra.gmra.mrb[0].mxu1 %v6937_v8  ;;  %v8728_v8 = vld [vmem:[%s12207_s1 + $0x748] ss:$16 sps:$4 sm:$0xff]  }
 0x145   :  { %2965 = vmatpush1.bf16.msra.mxu0 %v8656_v9  ;;  %2813 = vmatprep.mubr.bf16.mxu0 %v6946_v10  ;;  %v8733_v9 = vld [vmem:[%s12207_s1 + $0x76c] ss:$16 sps:$4 sm:$0xff]  }
 0x146   :  { %3585 = vmatprep.mubr.bf16.mxu1 %v6946_v10  ;;  %2966 = vmatprep.subr.bf16.mxu0 %v8661_v11  ;;  %v117_v10 = vld [vmem:[%s12206_s0 + $0x1d0] sm:$0xff] }
 0x147   :  { %3737 = vmatpush1.bf16.msra.mxu1 %v8683_v12  ;;  %v121_v11 = vld [vmem:[%s12206_s0 + $0x1f0] sm:$0xff] }
 0x148   :  { %3738 = vmatprep.subr.bf16.mxu1 %v8688_v13  ;;  %v8707_v12 = vld [vmem:[%s12207_s1 + $0x760] ss:$16 sps:$4 sm:$0xff]   ;;  %v8718_v13 = vld [vmem:[%s12207_s1 + $0x784] ss:$16 sps:$4 sm:$0xff]   ;;  %v6994_v16 = vcombine.high %v117_v10, %v121_v11  ;;  %v6993_v27 = vcombine.low %v117_v10, %v121_v11 }
 0x149   :  { %2967 = vmatpush1.bf16.msra.mxu0 %v8659_v14  ;;  %v8731_v14 = vld [vmem:[%s12207_s1 + $0x768] ss:$16 sps:$4 sm:$0xff]  }
 0x14a   :  { %2968 = vmatprep.subr.bf16.mxu0 %v8664_v17  ;;  %v8716_v17 = vld [vmem:[%s12207_s1 + $0x780] ss:$16 sps:$4 sm:$0xff]  }
 0x14b   :  { %3739 = vmatpush1.bf16.msra.mxu1 %v8686_v18  ;;  %v8739_v18 = vld [vmem:[%s12207_s1 + $0x78c] ss:$16 sps:$4 sm:$0xff]   ;;  %v8752_v10 = vld [vmem:[%s12211_s5] ss:$8 sps:$4 sm:$0xff]  }
 0x14c   :  { %2814 = vmatmul.mubr.bf16.gmra.mrb[4].mxu0 %v6945_v19  ;;  %3586 = vmatmul.mubr.bf16.gmra.mrb[4].mxu1 %v6945_v19  ;;  %v8727_v19 = vld [vmem:[%s12207_s1 + $0x7a4] ss:$16 sps:$4 sm:$0xff]   ;;  %v8758_v11 = vld [vmem:[%s12209_s3] ss:$8 sps:$4 sm:$0xff]  }
 0x14d   :  { %2823 = vmatprep.mubr.bf16.mxu0 %v6954_v20  ;;  %3595 = vmatprep.mubr.bf16.mxu1 %v6954_v20  ;;  %v8737_v20 = vld [vmem:[%s12207_s1 + $0x788] ss:$16 sps:$4 sm:$0xff]  }
 0x14e   :  { %2969 = vmatpush1.bf16.msra.mxu0 %v8662_v21  ;;  %3740 = vmatprep.subr.bf16.mxu1 %v8694_v22  ;;  %v8742_v21 = vld [vmem:[%s12207_s1 + $0x7ac] ss:$16 sps:$4 sm:$0xff]   ;;  %v125_v22 = vld [vmem:[%s12206_s0 + $0x210] sm:$0xff] }
 0x14f   :  { %2970 = vmatprep.subr.bf16.mxu0 %v8667_v23  ;;  %3741 = vmatpush1.bf16.msra.mxu1 %v8692_v24  ;;  %v129_v23 = vld [vmem:[%s12206_s0 + $0x230] sm:$0xff] }
 0x150   :  { %3742 = vmatprep.subr.bf16.mxu1 %v8697_v25  ;;  %v8725_v24 = vld [vmem:[%s12207_s1 + $0x7a0] ss:$16 sps:$4 sm:$0xff]   ;;  %v8736_v25 = vld [vmem:[%s12207_s1 + $0x7c4] ss:$16 sps:$4 sm:$0xff]   ;;  %v7001_v38 = vcombine.low %v125_v22, %v129_v23 }
 0x152   :  { %2971 = vmatpush1.bf16.msra.mxu0 %v8665_v28  ;;  %v7002_v28 = vcombine.high %v125_v22, %v129_v23  ;;  %v8761_v22 = vld [vmem:[%s12211_s5 + $0x20] ss:$8 sps:$4 sm:$0xff]  }
 0x153   :  { %2972 = vmatprep.subr.bf16.mxu0 %v8670_v29  ;;  %3743 = vmatpush1.bf16.msra.mxu1 %v8695_v30  ;;  %v8734_v29 = vld [vmem:[%s12207_s1 + $0x7c0] ss:$16 sps:$4 sm:$0xff]   ;;  %v8748_v30 = vld [vmem:[%s12207_s1 + $0x7cc] ss:$16 sps:$4 sm:$0xff]  }
 0x154   :  { %2824 = vmatmul.mubr.bf16.gmra.mrb[8].mxu0 %v6953_v31  ;;  %3596 = vmatmul.mubr.bf16.gmra.mrb[8].mxu1 %v6953_v31  ;;  %v8745_v31 = vld [vmem:[%s12207_s1 + $0x7e4] ss:$16 sps:$4 sm:$0xff]   ;;  %v8770_v23 = vld [vmem:[%s12209_s3 + $0x20] ss:$8 sps:$4 sm:$0xff]  }
 0x155   :  { %2833 = vmatprep.mubr.bf16.mxu0 %v6962_v32  ;;  %3605 = vmatprep.mubr.bf16.mxu1 %v6962_v32  ;;  %v8746_v32 = vld [vmem:[%s12207_s1 + $0x7c8] ss:$16 sps:$4 sm:$0xff]  }
 0x156   :  { %2973 = vmatpush1.bf16.msra.mxu0 %v8668_v33  ;;  %3744 = vmatprep.subr.bf16.mxu1 %v8703_v34  ;;  %v8751_v33 = vld [vmem:[%s12207_s1 + $0x7ec] ss:$16 sps:$4 sm:$0xff]   ;;  %v133_v34 = vld [vmem:[%s12206_s0 + $0x250] sm:$0xff] }
 0x157   :  { %2974 = vmatprep.subr.bf16.mxu0 %v8673_v35  ;;  %3745 = vmatpush1.bf16.msra.mxu1 %v8701_v36  ;;  %v137_v35 = vld [vmem:[%s12206_s0 + $0x270] sm:$0xff] }
 0x158   :  { %3746 = vmatprep.subr.bf16.mxu1 %v8706_v37  ;;  %v8743_v36 = vld [vmem:[%s12207_s1 + $0x7e0] ss:$16 sps:$4 sm:$0xff]   ;;  %v8749_v37 = vld [vmem:[%s12207_s1 + $0x7e8] ss:$16 sps:$4 sm:$0xff]   ;;  %v7010_v39 = vcombine.high %v133_v34, %v137_v35 }
 0x15a   :  { %2975 = vmatpush1.bf16.msra.mxu0 %v8671_v40  ;;  %v141_v40 = vld [vmem:[%s12206_s0 + $0x290] sm:$0xff] }
 0x15b   :  { %2976 = vmatprep.subr.bf16.mxu0 %v8676_v41  ;;  %3747 = vmatpush1.bf16.msra.mxu1 %v8704_v42  ;;  %v145_v41 = vld [vmem:[%s12206_s0 + $0x2b0] sm:$0xff]  ;;  %v7009_v42 = vcombine.low %v133_v34, %v137_v35  ;;  %v8773_v34 = vld [vmem:[%s12211_s5 + $0x40] ss:$8 sps:$4 sm:$0xff]  }
 0x15c   :  { %2834 = vmatmul.mubr.bf16.gmra.mrb[12].mxu0 %v6961_v43  ;;  %3606 = vmatmul.mubr.bf16.gmra.mrb[12].mxu1 %v6961_v43  ;;  %v7018_v43 = vcombine.high %v141_v40, %v145_v41  ;;  %v8782_v35 = vld [vmem:[%s12209_s3 + $0x40] ss:$8 sps:$4 sm:$0xff]  }
 0x15d   :  { %2843 = vmatprep.mubr.bf16.mxu0 %v6970_v44  ;;  %3615 = vmatprep.mubr.bf16.mxu1 %v6970_v44  ;;  %v149_v44 = vld [vmem:[%s12206_s0 + $0x2d0] sm:$0xff] }
 0x15e   :  { %2977 = vmatpush1.bf16.msra.mxu0 %v8674_v45  ;;  %3748 = vmatprep.subr.bf16.mxu1 %v8712_v46  ;;  %v153_v45 = vld [vmem:[%s12206_s0 + $0x2f0] sm:$0xff]  ;;  %v7017_v46 = vcombine.low %v141_v40, %v145_v41 }
 0x15f   :  { %2978 = vmatprep.subr.bf16.mxu0 %v8679_v47  ;;  %3749 = vmatpush1.bf16.msra.mxu1 %v8710_v48  ;;  %v7026_v47 = vcombine.high %v149_v44, %v153_v45  ;;  %v157_v48 = vld [vmem:[%s12206_s0 + $0x310] sm:$0xff]  ;;  %v7025_v50 = vcombine.low %v149_v44, %v153_v45 }
 0x160   :  { %3750 = vmatprep.subr.bf16.mxu1 %v8715_v49  ;;  %v161_v49 = vld [vmem:[%s12206_s0 + $0x330] sm:$0xff] }
 0x161   :  { %v7034_v51 = vcombine.high %v157_v48, %v161_v49  ;;  %v8779_v40 = vld [vmem:[%s12211_s5 + $0x50] ss:$8 sps:$4 sm:$0xff]  }
 0x162   :  { %2979 = vmatpush1.bf16.msra.mxu0 %v8677_v52  ;;  %v8754_v52 = vld [vmem:[%s12211_s5 + $0x4] ss:$8 sps:$4 sm:$0xff]   ;;  %v8788_v41 = vld [vmem:[%s12209_s3 + $0x50] ss:$8 sps:$4 sm:$0xff]  }
 0x163   :  { %2980 = vmatprep.subr.bf16.mxu0 %v8682_v53  ;;  %3751 = vmatpush1.bf16.msra.mxu1 %v8713_v54  ;;  %v165_v53 = vld [vmem:[%s12206_s0 + $0x350] sm:$0xff] }
 0x164   :  { %2844 = vmatmul.mubr.bf16.gmra.mrb[16].mxu0 %v6969_v55  ;;  %3616 = vmatmul.mubr.bf16.gmra.mrb[16].mxu1 %v6969_v55  ;;  %v169_v54 = vld [vmem:[%s12206_s0 + $0x370] sm:$0xff]  ;;  %v7033_v55 = vcombine.low %v157_v48, %v161_v49 }
 0x165   :  { %2853 = vmatprep.mubr.bf16.mxu0 %v6978_v56  ;;  %3625 = vmatprep.mubr.bf16.mxu1 %v6978_v56  ;;  %v7042_v56 = vcombine.high %v165_v53, %v169_v54  ;;  %v8793_v48 = vld [vmem:[%s12211_s5 + $0x74] ss:$8 sps:$4 sm:$0xff]  }
 0x166   :  { %2981 = vmatpush1.bf16.msra.mxu0 %v8680_v57  ;;  %3752 = vmatprep.subr.bf16.mxu1 %v8721_v58  ;;  %v173_v57 = vld [vmem:[%s12206_s0 + $0x390] sm:$0xff] }
 0x167   :  { %2982 = vmatprep.subr.bf16.mxu0 %v8691_v59  ;;  %3753 = vmatpush1.bf16.msra.mxu1 %v8719_v60  ;;  %v177_v58 = vld [vmem:[%s12206_s0 + $0x3b0] sm:$0xff]  ;;  %v7041_v59 = vcombine.low %v165_v53, %v169_v54  ;;  %v8799_v54 = vld [vmem:[%s12211_s5 + $0x84] ss:$8 sps:$4 sm:$0xff]  }
 0x168   :  { %3754 = vmatprep.subr.bf16.mxu1 %v8724_v61  ;;  %v7050_v60 = vcombine.high %v173_v57, %v177_v58  ;;  %v8760_v61 = vld [vmem:[%s12209_s3 + $0x4] ss:$8 sps:$4 sm:$0xff]   ;;  %v8802_v49 = vld [vmem:[%s12209_s3 + $0x74] ss:$8 sps:$4 sm:$0xff]   ;;  %v8800_v53 = vld [vmem:[%s12209_s3 + $0x70] ss:$8 sps:$4 sm:$0xff]  }
 0x16a   :  { %2983 = vmatpush1.bf16.msra.mxu0 %v8689_v0  ;;  %v7049_v0 = vcombine.low %v173_v57, %v177_v58  ;;  %v8797_v58 = vld [vmem:[%s12211_s5 + $0x80] ss:$8 sps:$4 sm:$0xff]  }
 0x16b   :  { %2984 = vmatprep.subr.bf16.mxu0 %v8700_v1  ;;  %3755 = vmatpush1.bf16.msra.mxu1 %v8722_v2  ;;  %v7058_v1 = vcombine.high %v181_v62, %v185_v63  ;;  %v62_v2 = vld [vmem:[%s12206_s0 + $0x18] sm:$0xff] }
 0x16c   :  { %2854 = vmatmul.mubr.bf16.gmra.mrb[20].mxu0 %v6977_v3  ;;  %3626 = vmatmul.mubr.bf16.gmra.mrb[20].mxu1 %v6977_v3  ;;  %v66_v3 = vld [vmem:[%s12206_s0 + $0x38] sm:$0xff] }
 0x16d   :  { %2863 = vmatprep.mubr.bf16.mxu0 %v6986_v4  ;;  %3635 = vmatprep.mubr.bf16.mxu1 %v6986_v4  ;;  %v7057_v4 = vcombine.low %v181_v62, %v185_v63  ;;  %v110_v62 = vld [vmem:[%s12206_s0 + $0x198] sm:$0xff] }
 0x16e   :  { %2985 = vmatpush1.bf16.msra.mxu0 %v8698_v5  ;;  %3756 = vmatprep.subr.bf16.mxu1 %v8730_v6  ;;  %v6940_v5 = vcombine.high %v62_v2, %v66_v3  ;;  %v70_v6 = vld [vmem:[%s12206_s0 + $0x58] sm:$0xff] }
 0x16f   :  { %2986 = vmatprep.subr.bf16.mxu0 %v8709_v7  ;;  %3757 = vmatpush1.bf16.msra.mxu1 %v8728_v8  ;;  %v74_v7 = vld [vmem:[%s12206_s0 + $0x78] sm:$0xff]  ;;  %v6939_v8 = vcombine.low %v62_v2, %v66_v3  ;;  %v8811_v2 = vld [vmem:[%s12211_s5 + $0xa4] ss:$8 sps:$4 sm:$0xff]  }
 0x170   :  { %3758 = vmatprep.subr.bf16.mxu1 %v8733_v9  ;;  %v6948_v9 = vcombine.high %v70_v6, %v74_v7  ;;  %v114_v63 = vld [vmem:[%s12206_s0 + $0x1b8] sm:$0xff]  ;;  %v8820_v3 = vld [vmem:[%s12209_s3 + $0xa4] ss:$8 sps:$4 sm:$0xff]  }
 0x172   :  { %2987 = vmatpush1.bf16.msra.mxu0 %v8707_v12  ;;  %v8757_v12 = vld [vmem:[%s12211_s5 + $0x14] ss:$8 sps:$4 sm:$0xff]  }
 0x173   :  { %2988 = vmatprep.subr.bf16.mxu0 %v8718_v13  ;;  %3759 = vmatpush1.bf16.msra.mxu1 %v8731_v14  ;;  %v8766_v13 = vld [vmem:[%s12209_s3 + $0x14] ss:$8 sps:$4 sm:$0xff]  }
 0x174   :  { %2864 = vmatmul.mubr.bf16.gmra.mrb[24].mxu0 %v6985_v15  ;;  %3636 = vmatmul.mubr.bf16.gmra.mrb[24].mxu1 %v6985_v15  ;;  %v78_v14 = vld [vmem:[%s12206_s0 + $0x98] sm:$0xff] }
 0x175   :  { %2873 = vmatprep.mubr.bf16.mxu0 %v6994_v16  ;;  %3645 = vmatprep.mubr.bf16.mxu1 %v6994_v16  ;;  %v82_v15 = vld [vmem:[%s12206_s0 + $0xb8] sm:$0xff] }
 0x176   :  { %2989 = vmatpush1.bf16.msra.mxu0 %v8716_v17  ;;  %3760 = vmatprep.subr.bf16.mxu1 %v8739_v18  ;;  %v8755_v16 = vld [vmem:[%s12211_s5 + $0x10] ss:$8 sps:$4 sm:$0xff]   ;;  %v8763_v18 = vld [vmem:[%s12211_s5 + $0x24] ss:$8 sps:$4 sm:$0xff]  }
 0x177   :  { %2990 = vmatprep.subr.bf16.mxu0 %v8727_v19  ;;  %3761 = vmatpush1.bf16.msra.mxu1 %v8737_v20  ;;  %v8764_v17 = vld [vmem:[%s12209_s3 + $0x10] ss:$8 sps:$4 sm:$0xff]   ;;  %v8772_v19 = vld [vmem:[%s12209_s3 + $0x24] ss:$8 sps:$4 sm:$0xff]   ;;  %v6947_v20 = vcombine.low %v70_v6, %v74_v7  ;;  %v8809_v6 = vld [vmem:[%s12211_s5 + $0xa0] ss:$8 sps:$4 sm:$0xff]  }
 0x178   :  { %3762 = vmatprep.subr.bf16.mxu1 %v8742_v21  ;;  %v6956_v21 = vcombine.high %v78_v14, %v82_v15  ;;  %v8818_v7 = vld [vmem:[%s12209_s3 + $0xa0] ss:$8 sps:$4 sm:$0xff]  }
 0x17a   :  { %2991 = vmatpush1.bf16.msra.mxu0 %v8725_v24  ;;  %v8769_v24 = vld [vmem:[%s12211_s5 + $0x34] ss:$8 sps:$4 sm:$0xff]  }
 0x17b   :  { %2992 = vmatprep.subr.bf16.mxu0 %v8736_v25  ;;  %3763 = vmatpush1.bf16.msra.mxu1 %v8740_v26  ;;  %v8778_v25 = vld [vmem:[%s12209_s3 + $0x34] ss:$8 sps:$4 sm:$0xff]  }
 0x17c   :  { %2874 = vmatmul.mubr.bf16.gmra.mrb[28].mxu0 %v6993_v27  ;;  %3646 = vmatmul.mubr.bf16.gmra.mrb[28].mxu1 %v6993_v27  ;;  %v86_v26 = vld [vmem:[%s12206_s0 + $0xd8] sm:$0xff] }
 0x17d   :  { %2883 = vmatprep.mubr.bf16.mxu0 %v7002_v28  ;;  %3655 = vmatprep.mubr.bf16.mxu1 %v7002_v28  ;;  %v90_v27 = vld [vmem:[%s12206_s0 + $0xf8] sm:$0xff] }
 0x17e   :  { %2993 = vmatpush1.bf16.msra.mxu0 %v8734_v29  ;;  %3764 = vmatprep.subr.bf16.mxu1 %v8748_v30  ;;  %v8767_v28 = vld [vmem:[%s12211_s5 + $0x30] ss:$8 sps:$4 sm:$0xff]   ;;  %v8775_v30 = vld [vmem:[%s12211_s5 + $0x44] ss:$8 sps:$4 sm:$0xff]   ;;  %v6963_v44 = vcombine.low %v86_v26, %v90_v27 }
 0x17f   :  { %2994 = vmatprep.subr.bf16.mxu0 %v8745_v31  ;;  %3765 = vmatpush1.bf16.msra.mxu1 %v8746_v32  ;;  %v8776_v29 = vld [vmem:[%s12209_s3 + $0x30] ss:$8 sps:$4 sm:$0xff]   ;;  %v8784_v31 = vld [vmem:[%s12209_s3 + $0x44] ss:$8 sps:$4 sm:$0xff]   ;;  %v6955_v32 = vcombine.low %v78_v14, %v82_v15 }
 0x180   :  { %3766 = vmatprep.subr.bf16.mxu1 %v8751_v33  ;;  %v6964_v33 = vcombine.high %v86_v26, %v90_v27  ;;  %v8823_v14 = vld [vmem:[%s12211_s5 + $0xc4] ss:$8 sps:$4 sm:$0xff]  }
 0x181   :  { %v8832_v15 = vld [vmem:[%s12209_s3 + $0xc4] ss:$8 sps:$4 sm:$0xff]  }
 0x182   :  { %2995 = vmatpush1.bf16.msra.mxu0 %v8743_v36  ;;  %v8781_v36 = vld [vmem:[%s12211_s5 + $0x54] ss:$8 sps:$4 sm:$0xff]   ;;  %v8835_v26 = vld [vmem:[%s12211_s5 + $0xe4] ss:$8 sps:$4 sm:$0xff]  }
 0x183   :  { %3767 = vmatpush1.bf16.msra.mxu1 %v8749_v37  ;;  %4517 = vmatprep.subr.bf16.mxu0 %v8760_v61  ;;  %v8790_v37 = vld [vmem:[%s12209_s3 + $0x54] ss:$8 sps:$4 sm:$0xff]  }
 0x184   :  { %2884 = vmatmul.mubr.bf16.gmra.mrb[32].mxu0 %v7001_v38  ;;  %3656 = vmatmul.mubr.bf16.gmra.mrb[32].mxu1 %v7001_v38  ;;  %v94_v38 = vld [vmem:[%s12206_s0 + $0x118] sm:$0xff] }
 0x185   :  { %2893 = vmatprep.mubr.bf16.mxu0 %v7010_v39  ;;  %3665 = vmatprep.mubr.bf16.mxu1 %v7010_v39  ;;  %v98_v39 = vld [vmem:[%s12206_s0 + $0x138] sm:$0xff] }
 0x186   :  { %5363 = vmatprep.subr.bf16.mxu1 %v8754_v52  ;;  %v6972_v45 = vcombine.high %v94_v38, %v98_v39  ;;  %v8791_v52 = vld [vmem:[%s12211_s5 + $0x70] ss:$8 sps:$4 sm:$0xff]   ;;  %v8814_v61 = vld [vmem:[%s12209_s3 + $0x94] ss:$8 sps:$4 sm:$0xff]  }
 0x18c   :  { %2894 = vmatmul.mubr.bf16.gmra.mrb[36].mxu0 %v7009_v42  ;;  %3666 = vmatmul.mubr.bf16.gmra.mrb[36].mxu1 %v7009_v42  ;;  %v8787_v42 = vld [vmem:[%s12211_s5 + $0x64] ss:$8 sps:$4 sm:$0xff]  }
 0x18d   :  { %2903 = vmatprep.mubr.bf16.mxu0 %v7018_v43  ;;  %3675 = vmatprep.mubr.bf16.mxu1 %v7018_v43  ;;  %v8796_v43 = vld [vmem:[%s12209_s3 + $0x64] ss:$8 sps:$4 sm:$0xff]  }
 0x194   :  { %2904 = vmatmul.mubr.bf16.gmra.mrb[40].mxu0 %v7017_v46  ;;  %3676 = vmatmul.mubr.bf16.gmra.mrb[40].mxu1 %v7017_v46  ;;  %v8785_v46 = vld [vmem:[%s12211_s5 + $0x60] ss:$8 sps:$4 sm:$0xff]  }
 0x195   :  { %2913 = vmatprep.mubr.bf16.mxu0 %v7026_v47  ;;  %3685 = vmatprep.mubr.bf16.mxu1 %v7026_v47  ;;  %v8794_v47 = vld [vmem:[%s12209_s3 + $0x60] ss:$8 sps:$4 sm:$0xff]  }
 0x19c   :  { %2914 = vmatmul.mubr.bf16.gmra.mrb[44].mxu0 %v7025_v50  ;;  %3686 = vmatmul.mubr.bf16.gmra.mrb[44].mxu1 %v7025_v50  ;;  %v102_v50 = vld [vmem:[%s12206_s0 + $0x158] sm:$0xff] }
 0x19d   :  { %2923 = vmatprep.mubr.bf16.mxu0 %v7034_v51  ;;  %3695 = vmatprep.mubr.bf16.mxu1 %v7034_v51  ;;  %v106_v51 = vld [vmem:[%s12206_s0 + $0x178] sm:$0xff] }
 0x19e   :  { %v6980_v57 = vcombine.high %v102_v50, %v106_v51 }
 0x1a4   :  { %2924 = vmatmul.mubr.bf16.gmra.mrb[48].mxu0 %v7033_v55  ;;  %3696 = vmatmul.mubr.bf16.gmra.mrb[48].mxu1 %v7033_v55  ;;  %v8808_v55 = vld [vmem:[%s12209_s3 + $0x84] ss:$8 sps:$4 sm:$0xff]  }
 0x1a5   :  { %2933 = vmatprep.mubr.bf16.mxu0 %v7042_v56  ;;  %3705 = vmatprep.mubr.bf16.mxu1 %v7042_v56  ;;  %v6971_v56 = vcombine.low %v94_v38, %v98_v39  ;;  %v150_v38 = vld [vmem:[%s12206_s0 + $0x2d8] sm:$0xff] }
 0x1a6   :  { %v154_v39 = vld [vmem:[%s12206_s0 + $0x2f8] sm:$0xff] }
 0x1ac   :  { %2934 = vmatmul.mubr.bf16.gmra.mrb[52].mxu0 %v7041_v59  ;;  %3706 = vmatmul.mubr.bf16.gmra.mrb[52].mxu1 %v7041_v59  ;;  %v8806_v59 = vld [vmem:[%s12209_s3 + $0x80] ss:$8 sps:$4 sm:$0xff]  }
 0x1ad   :  { %2943 = vmatprep.mubr.bf16.mxu0 %v7050_v60  ;;  %3715 = vmatprep.mubr.bf16.mxu1 %v7050_v60  ;;  %v8805_v60 = vld [vmem:[%s12211_s5 + $0x94] ss:$8 sps:$4 sm:$0xff]  }
 0x1b4   :  { %2944 = vmatmul.mubr.bf16.gmra.mrb[56].mxu0 %v7049_v0  ;;  %3716 = vmatmul.mubr.bf16.gmra.mrb[56].mxu1 %v7049_v0  ;;  %v8803_v0 = vld [vmem:[%s12211_s5 + $0x90] ss:$8 sps:$4 sm:$0xff]  }
 0x1b5   :  { %2953 = vmatprep.mubr.bf16.mxu0 %v7058_v1  ;;  %3725 = vmatprep.mubr.bf16.mxu1 %v7058_v1  ;;  %v8812_v1 = vld [vmem:[%s12209_s3 + $0x90] ss:$8 sps:$4 sm:$0xff]  }
 0x1bc   :  { %2954 = vmatmul.mubr.bf16.gmra.mrb[60].mxu0 %v7057_v4  ;;  %3726 = vmatmul.mubr.bf16.gmra.mrb[60].mxu1 %v7057_v4  ;;  %v6979_v4 = vcombine.low %v102_v50, %v106_v51  ;;  %v8847_v50 = vld [vmem:[%s12209_s3 + $0xf4] ss:$8 sps:$4 sm:$0xff]   ;;  %v8845_v51 = vld [vmem:[%s12209_s3 + $0xf0] ss:$8 sps:$4 sm:$0xff]  }
 0x1bd   :  { %2996 = vmatprep.mubr.bf16.mxu0 %v6940_v5  ;;  %3768 = vmatprep.mubr.bf16.mxu1 %v6940_v5  ;;  %v6988_v5 = vcombine.high %v110_v62, %v114_v63 }
 0x1c4   :  { %2997 = vmatmul.mubr.bf16.vlgmr.msra.gmra.mrb[0].mxu0 %v6939_v8  ;;  %3769 = vmatmul.mubr.bf16.vlgmr.msra.gmra.mrb[0].mxu1 %v6939_v8  ;;  %v8817_v8 = vld [vmem:[%s12211_s5 + $0xb4] ss:$8 sps:$4 sm:$0xff]  }
 0x1c5   :  { %3006 = vmatprep.mubr.bf16.mxu0 %v6948_v9  ;;  %3778 = vmatprep.mubr.bf16.mxu1 %v6948_v9  ;;  %v8826_v9 = vld [vmem:[%s12209_s3 + $0xb4] ss:$8 sps:$4 sm:$0xff]  }
 0x1c6   :  { %5364 = vmatpush1.bf16.msra.mxu1 %v8752_v10  ;;  %4518 = vmatpush1.bf16.msra.mxu0 %v8758_v11  ;;  %v118_v10 = vld [vmem:[%s12206_s0 + $0x1d8] sm:$0xff] }
 0x1c7   :  { %5365 = vmatprep.subr.bf16.mxu1 %v8757_v12  ;;  %4519 = vmatprep.subr.bf16.mxu0 %v8766_v13  ;;  %v122_v11 = vld [vmem:[%s12206_s0 + $0x1f8] sm:$0xff] }
 0x1c8   :  { %v8815_v12 = vld [vmem:[%s12211_s5 + $0xb0] ss:$8 sps:$4 sm:$0xff]   ;;  %v6995_v27 = vcombine.low %v118_v10, %v122_v11 }
 0x1c9   :  { %v8824_v13 = vld [vmem:[%s12209_s3 + $0xb0] ss:$8 sps:$4 sm:$0xff]  }
 0x1ca   :  { %5366 = vmatpush1.bf16.msra.mxu1 %v8755_v16  ;;  %4520 = vmatpush1.bf16.msra.mxu0 %v8764_v17  ;;  %v6987_v16 = vcombine.low %v110_v62, %v114_v63  ;;  %v6996_v17 = vcombine.high %v118_v10, %v122_v11  ;;  %v186_v62 = vld [vmem:[%s12206_s0 + $0x3f8] sm:$0xff] }
 0x1cb   :  { %5367 = vmatprep.subr.bf16.mxu1 %v8763_v18  ;;  %4521 = vmatprep.subr.bf16.mxu0 %v8772_v19  ;;  %v8821_v18 = vld [vmem:[%s12211_s5 + $0xc0] ss:$8 sps:$4 sm:$0xff]  }
 0x1cc   :  { %3007 = vmatmul.mubr.bf16.gmra.mrb[4].mxu0 %v6947_v20  ;;  %3779 = vmatmul.mubr.bf16.gmra.mrb[4].mxu1 %v6947_v20  ;;  %v8830_v19 = vld [vmem:[%s12209_s3 + $0xc0] ss:$8 sps:$4 sm:$0xff]   ;;  %v8829_v20 = vld [vmem:[%s12211_s5 + $0xd4] ss:$8 sps:$4 sm:$0xff]  }
 0x1cd   :  { %3016 = vmatprep.mubr.bf16.mxu0 %v6956_v21  ;;  %3788 = vmatprep.mubr.bf16.mxu1 %v6956_v21  ;;  %v8838_v21 = vld [vmem:[%s12209_s3 + $0xd4] ss:$8 sps:$4 sm:$0xff]  }
 0x1ce   :  { %5368 = vmatpush1.bf16.msra.mxu1 %v8761_v22  ;;  %4522 = vmatpush1.bf16.msra.mxu0 %v8770_v23  ;;  %v126_v22 = vld [vmem:[%s12206_s0 + $0x218] sm:$0xff] }
 0x1cf   :  { %5369 = vmatprep.subr.bf16.mxu1 %v8769_v24  ;;  %4523 = vmatprep.subr.bf16.mxu0 %v8778_v25  ;;  %v130_v23 = vld [vmem:[%s12206_s0 + $0x238] sm:$0xff] }
 0x1d0   :  { %v8827_v24 = vld [vmem:[%s12211_s5 + $0xd0] ss:$8 sps:$4 sm:$0xff]  }
 0x1d1   :  { %v8836_v25 = vld [vmem:[%s12209_s3 + $0xd0] ss:$8 sps:$4 sm:$0xff]  }
 0x1d2   :  { %5370 = vmatpush1.bf16.msra.mxu1 %v8767_v28  ;;  %4524 = vmatpush1.bf16.msra.mxu0 %v8776_v29  ;;  %v7004_v28 = vcombine.high %v126_v22, %v130_v23  ;;  %v8833_v29 = vld [vmem:[%s12211_s5 + $0xe0] ss:$8 sps:$4 sm:$0xff]  }
 0x1d3   :  { %5371 = vmatprep.subr.bf16.mxu1 %v8775_v30  ;;  %4525 = vmatprep.subr.bf16.mxu0 %v8784_v31  ;;  %v134_v30 = vld [vmem:[%s12206_s0 + $0x258] sm:$0xff] }
 0x1d4   :  { %3017 = vmatmul.mubr.bf16.gmra.mrb[8].mxu0 %v6955_v32  ;;  %3789 = vmatmul.mubr.bf16.gmra.mrb[8].mxu1 %v6955_v32  ;;  %v138_v31 = vld [vmem:[%s12206_s0 + $0x278] sm:$0xff]  ;;  %v7003_v32 = vcombine.low %v126_v22, %v130_v23 }
 0x1d5   :  { %3026 = vmatprep.mubr.bf16.mxu0 %v6964_v33  ;;  %3798 = vmatprep.mubr.bf16.mxu1 %v6964_v33  ;;  %v7012_v33 = vcombine.high %v134_v30, %v138_v31 }
 0x1d6   :  { %5372 = vmatpush1.bf16.msra.mxu1 %v8773_v34  ;;  %4526 = vmatpush1.bf16.msra.mxu0 %v8782_v35  ;;  %v142_v34 = vld [vmem:[%s12206_s0 + $0x298] sm:$0xff] }
 0x1d7   :  { %5373 = vmatprep.subr.bf16.mxu1 %v8781_v36  ;;  %4527 = vmatprep.subr.bf16.mxu0 %v8790_v37  ;;  %v146_v35 = vld [vmem:[%s12206_s0 + $0x2b8] sm:$0xff]  ;;  %v7011_v36 = vcombine.low %v134_v30, %v138_v31 }
 0x1d8   :  { %v7020_v37 = vcombine.high %v142_v34, %v146_v35 }
 0x1da   :  { %5374 = vmatpush1.bf16.msra.mxu1 %v8779_v40  ;;  %4528 = vmatpush1.bf16.msra.mxu0 %v8788_v41  ;;  %v7019_v40 = vcombine.low %v142_v34, %v146_v35  ;;  %v7028_v41 = vcombine.high %v150_v38, %v154_v39 }
 0x1db   :  { %5375 = vmatprep.subr.bf16.mxu1 %v8787_v42  ;;  %4529 = vmatprep.subr.bf16.mxu0 %v8796_v43  ;;  %v158_v42 = vld [vmem:[%s12206_s0 + $0x318] sm:$0xff] }
 0x1dc   :  { %3027 = vmatmul.mubr.bf16.gmra.mrb[12].mxu0 %v6963_v44  ;;  %3799 = vmatmul.mubr.bf16.gmra.mrb[12].mxu1 %v6963_v44  ;;  %v162_v43 = vld [vmem:[%s12206_s0 + $0x338] sm:$0xff]  ;;  %v7027_v44 = vcombine.low %v150_v38, %v154_v39 }
 0x1dd   :  { %3036 = vmatprep.mubr.bf16.mxu0 %v6972_v45  ;;  %3808 = vmatprep.mubr.bf16.mxu1 %v6972_v45  ;;  %v8841_v45 = vld [vmem:[%s12209_s3 + $0xe4] ss:$8 sps:$4 sm:$0xff]  }
 0x1de   :  { %5376 = vmatpush1.bf16.msra.mxu1 %v8785_v46  ;;  %4530 = vmatpush1.bf16.msra.mxu0 %v8794_v47  ;;  %v7036_v46 = vcombine.high %v158_v42, %v162_v43  ;;  %v8839_v47 = vld [vmem:[%s12209_s3 + $0xe0] ss:$8 sps:$4 sm:$0xff]  }
 0x1df   :  { %5377 = vmatprep.subr.bf16.mxu1 %v8793_v48  ;;  %4531 = vmatprep.subr.bf16.mxu0 %v8802_v49  ;;  %v8844_v48 = vld [vmem:[%s12211_s5 + $0xf4] ss:$8 sps:$4 sm:$0xff]   ;;  %v8842_v49 = vld [vmem:[%s12211_s5 + $0xf0] ss:$8 sps:$4 sm:$0xff]  }
 0x1e2   :  { %5378 = vmatpush1.bf16.msra.mxu1 %v8791_v52  ;;  %4532 = vmatpush1.bf16.msra.mxu0 %v8800_v53  ;;  %v166_v52 = vld [vmem:[%s12206_s0 + $0x358] sm:$0xff] }
 0x1e3   :  { %5379 = vmatprep.subr.bf16.mxu1 %v8799_v54  ;;  %4533 = vmatprep.subr.bf16.mxu0 %v8808_v55  ;;  %v170_v53 = vld [vmem:[%s12206_s0 + $0x378] sm:$0xff]  ;;  %v8850_v54 = vld [vmem:[%s12211_s5 + $0x104] ss:$8 sps:$4 sm:$0xff]   ;;  %v7035_v55 = vcombine.low %v158_v42, %v162_v43 }
 0x1e4   :  { %3037 = vmatmul.mubr.bf16.gmra.mrb[16].mxu0 %v6971_v56  ;;  %3809 = vmatmul.mubr.bf16.gmra.mrb[16].mxu1 %v6971_v56  ;;  %v7044_v56 = vcombine.high %v166_v52, %v170_v53 }
 0x1e5   :  { %3046 = vmatprep.mubr.bf16.mxu0 %v6980_v57  ;;  %3818 = vmatprep.mubr.bf16.mxu1 %v6980_v57  ;;  %v174_v57 = vld [vmem:[%s12206_s0 + $0x398] sm:$0xff] }
 0x1e6   :  { %5380 = vmatpush1.bf16.msra.mxu1 %v8797_v58  ;;  %4534 = vmatpush1.bf16.msra.mxu0 %v8806_v59  ;;  %v178_v58 = vld [vmem:[%s12206_s0 + $0x3b8] sm:$0xff]  ;;  %v7043_v59 = vcombine.low %v166_v52, %v170_v53 }
 0x1e7   :  { %5381 = vmatprep.subr.bf16.mxu1 %v8805_v60  ;;  %4535 = vmatprep.subr.bf16.mxu0 %v8814_v61  ;;  %v7052_v60 = vcombine.high %v174_v57, %v178_v58  ;;  %v182_v61 = vld [vmem:[%s12206_s0 + $0x3d8] sm:$0xff]  ;;  %v7051_v63 = vcombine.low %v174_v57, %v178_v58 }
 0x1ea   :  { %5382 = vmatpush1.bf16.msra.mxu1 %v8803_v0  ;;  %4536 = vmatpush1.bf16.msra.mxu0 %v8812_v1  ;;  %v7060_v0 = vcombine.high %v182_v61, %v186_v62  ;;  %v8862_v1 = vld [vmem:[%s12209_s3 + $0x104] ss:$8 sps:$4 sm:$0xff]  }
 0x1eb   :  { %5383 = vmatprep.subr.bf16.mxu1 %v8811_v2  ;;  %4537 = vmatprep.subr.bf16.mxu0 %v8820_v3  ;;  %v7059_v2 = vcombine.low %v182_v61, %v186_v62  ;;  %v12223_v3 = vlaneseq  ;;  %v8851_v62 = vld [vmem:[%s12211_s5 + $0x110] ss:$8 sps:$4 sm:$0xff]  }
 0x1ec   :  { %3047 = vmatmul.mubr.bf16.gmra.mrb[20].mxu0 %v6979_v4  ;;  %3819 = vmatmul.mubr.bf16.gmra.mrb[20].mxu1 %v6979_v4 }
 0x1ed   :  { %3056 = vmatprep.mubr.bf16.mxu0 %v6988_v5  ;;  %3828 = vmatprep.mubr.bf16.mxu1 %v6988_v5  ;;  %v10878_v4 = vshrl.u32 %v12223_v3, 7 }
 0x1ee   :  { %5384 = vmatpush1.bf16.msra.mxu1 %v8809_v6  ;;  %4538 = vmatpush1.bf16.msra.mxu0 %v8818_v7  ;;  %v443_v7 = vld [vmem:[%s12208_s2] sm:$0xf] }
 0x1ef   :  { %5385 = vmatprep.subr.bf16.mxu1 %v8817_v8  ;;  %4539 = vmatprep.subr.bf16.mxu0 %v8826_v9  ;;  %12285 = vst [vmem:[#allocation13_spill] sm:$0xff] %v10878_v4  ;;  %v10881_v5 = vsub.s32 0, %v10878_v4  ;;  %v12221_v6 = vsub.s32 2, %v10878_v4  ;;  %v10888_v8 = vsub.s32 1, %v10878_v4  ;;  %v12222_v9 = vsub.s32 3, %v10878_v4 }
 0x1f1   :  { %12286 = vst [vmem:[#allocation14_spill] sm:$0xff] %v10881_v5  ;;  %12287 = vst [vmem:[#allocation15_spill] sm:$0xff] %v10888_v8  ;;  %v10892_v10 = vrot.slane %v443_v7, %v10881_v5  ;;  %v10896_v11 = vrot.slane %v443_v7, %v12221_v6 }
 0x1f2   :  { %5386 = vmatpush1.bf16.msra.mxu1 %v8815_v12  ;;  %4540 = vmatpush1.bf16.msra.mxu0 %v8824_v13  ;;  %v10899_v12 = vrot.slane %v443_v7, %v10888_v8  ;;  %v10903_v13 = vrot.slane %v443_v7, %v12222_v9 }
 0x1f3   :  { %5387 = vmatprep.subr.bf16.mxu1 %v8823_v14  ;;  %4541 = vmatprep.subr.bf16.mxu0 %v8832_v15 }
 0x1f4   :  { %3057 = vmatmul.mubr.bf16.gmra.mrb[24].mxu0 %v6987_v16  ;;  %3829 = vmatmul.mubr.bf16.gmra.mrb[24].mxu1 %v6987_v16 }
 0x1f5   :  { %3066 = vmatprep.mubr.bf16.mxu0 %v6996_v17  ;;  %3838 = vmatprep.mubr.bf16.mxu1 %v6996_v17 }
 0x1f6   :  { %5388 = vmatpush1.bf16.msra.mxu1 %v8821_v18  ;;  %4542 = vmatpush1.bf16.msra.mxu0 %v8830_v19 }
 0x1f7   :  { %5389 = vmatprep.subr.bf16.mxu1 %v8829_v20  ;;  %4543 = vmatprep.subr.bf16.mxu0 %v8838_v21 }
 0x1fa   :  { %5390 = vmatpush1.bf16.msra.mxu1 %v8827_v24  ;;  %4544 = vmatpush1.bf16.msra.mxu0 %v8836_v25 }
 0x1fb   :  { %5391 = vmatprep.subr.bf16.mxu1 %v8835_v26  ;;  %4545 = vmatprep.subr.bf16.mxu0 %v8841_v45  ;;  %v8860_v45 = vld [vmem:[%s12209_s3 + $0x100] ss:$8 sps:$4 sm:$0xff]  }
 0x1fc   :  { %3067 = vmatmul.mubr.bf16.gmra.mrb[28].mxu0 %v6995_v27  ;;  %3839 = vmatmul.mubr.bf16.gmra.mrb[28].mxu1 %v6995_v27 }
 0x1fd   :  { %3076 = vmatprep.mubr.bf16.mxu0 %v7004_v28  ;;  %3848 = vmatprep.mubr.bf16.mxu1 %v7004_v28 }
 0x1fe   :  { %5392 = vmatpush1.bf16.msra.mxu1 %v8833_v29  ;;  %4546 = vmatpush1.bf16.msra.mxu0 %v8839_v47 }
 0x1ff   :  { %5393 = vmatprep.subr.bf16.mxu1 %v8844_v48  ;;  %4547 = vmatprep.subr.bf16.mxu0 %v8847_v50  ;;  %v8853_v50 = vld [vmem:[%s12211_s5 + $0x114] ss:$8 sps:$4 sm:$0xff]  }
 0x202   :  { %5394 = vmatpush1.bf16.msra.mxu1 %v8842_v49  ;;  %4548 = vmatpush1.bf16.msra.mxu0 %v8845_v51  ;;  %v8871_v51 = vld [vmem:[%s12209_s3 + $0x114] ss:$8 sps:$4 sm:$0xff]  }
 0x203   :  { %5556 = vmatprep.subr.bf16.mxu1 %v8850_v54  ;;  %4710 = vmatprep.subr.bf16.mxu0 %v8862_v1 }
 0x204   :  { %3077 = vmatmul.mubr.bf16.gmra.mrb[32].mxu0 %v7003_v32  ;;  %3849 = vmatmul.mubr.bf16.gmra.mrb[32].mxu1 %v7003_v32 }
 0x205   :  { %3086 = vmatprep.mubr.bf16.mxu0 %v7012_v33  ;;  %3858 = vmatprep.mubr.bf16.mxu1 %v7012_v33 }
 0x20c   :  { %3087 = vmatmul.mubr.bf16.gmra.mrb[36].mxu0 %v7011_v36  ;;  %3859 = vmatmul.mubr.bf16.gmra.mrb[36].mxu1 %v7011_v36 }
 0x20d   :  { %3096 = vmatprep.mubr.bf16.mxu0 %v7020_v37  ;;  %3868 = vmatprep.mubr.bf16.mxu1 %v7020_v37 }
 0x214   :  { %3097 = vmatmul.mubr.bf16.gmra.mrb[40].mxu0 %v7019_v40  ;;  %3869 = vmatmul.mubr.bf16.gmra.mrb[40].mxu1 %v7019_v40 }
 0x215   :  { %3106 = vmatprep.mubr.bf16.mxu0 %v7028_v41  ;;  %3878 = vmatprep.mubr.bf16.mxu1 %v7028_v41 }
 0x21c   :  { %3107 = vmatmul.mubr.bf16.gmra.mrb[44].mxu0 %v7027_v44  ;;  %3879 = vmatmul.mubr.bf16.gmra.mrb[44].mxu1 %v7027_v44  ;;  %v8848_v44 = vld [vmem:[%s12211_s5 + $0x100] ss:$8 sps:$4 sm:$0xff]  }
 0x21d   :  { %3116 = vmatprep.mubr.bf16.mxu0 %v7036_v46  ;;  %3888 = vmatprep.mubr.bf16.mxu1 %v7036_v46 }
 0x224   :  { %3117 = vmatmul.mubr.bf16.gmra.mrb[48].mxu0 %v7035_v55  ;;  %3889 = vmatmul.mubr.bf16.gmra.mrb[48].mxu1 %v7035_v55 }
 0x225   :  { %3126 = vmatprep.mubr.bf16.mxu0 %v7044_v56  ;;  %3898 = vmatprep.mubr.bf16.mxu1 %v7044_v56 }
 0x22c   :  { %3127 = vmatmul.mubr.bf16.gmra.mrb[52].mxu0 %v7043_v59  ;;  %3899 = vmatmul.mubr.bf16.gmra.mrb[52].mxu1 %v7043_v59 }
 0x22d   :  { %3136 = vmatprep.mubr.bf16.mxu0 %v7052_v60  ;;  %3908 = vmatprep.mubr.bf16.mxu1 %v7052_v60 }
 0x234   :  { %3137 = vmatmul.mubr.bf16.gmra.mrb[56].mxu0 %v7051_v63  ;;  %3909 = vmatmul.mubr.bf16.gmra.mrb[56].mxu1 %v7051_v63  ;;  %v8856_v63 = vld [vmem:[%s12211_s5 + $0x124] ss:$8 sps:$4 sm:$0xff]  }
 0x235   :  { %3146 = vmatprep.mubr.bf16.mxu0 %v7060_v0  ;;  %3918 = vmatprep.mubr.bf16.mxu1 %v7060_v0  ;;  %v8869_v0 = vld [vmem:[%s12209_s3 + $0x110] ss:$8 sps:$4 sm:$0xff]  }
 0x23c   :  { %3147 = vmatmul.mubr.bf16.gmra.mrb[60].mxu0 %v7059_v2  ;;  %3919 = vmatmul.mubr.bf16.gmra.mrb[60].mxu1 %v7059_v2 }
 0x297   :  { %v2998_v14 = vpop.f32.mrb[0].mxu0  ;;  %v3770_v15 = vpop.f32.mrb[0].mxu1 }
 0x298   :  { %v7591_v16 = vadd.f32 %v2998_v14, %v10892_v10  ;;  %v7655_v17 = vadd.f32 %v3770_v15, %v10896_v11  ;;  %v3000_v18 = vpop.f32.mrb[1].mxu0  ;;  %v3772_v19 = vpop.f32.mrb[1].mxu1  ;;  %v8880_v15 = vld [vmem:[%s12209_s3 + $0x124] ss:$8 sps:$4 sm:$0xff]  }
 0x299   :  { %v7592_v20 = vadd.f32 %v3000_v18, %v10899_v12  ;;  %v7656_v21 = vadd.f32 %v3772_v19, %v10903_v13  ;;  %v3002_v22 = vpop.f32.mrb[2].mxu0  ;;  %v3774_v23 = vpop.f32.mrb[2].mxu1 }
 0x29a   :  { %v7593_v24 = vadd.f32 %v3002_v22, %v10892_v10  ;;  %v7657_v25 = vadd.f32 %v3774_v23, %v10896_v11  ;;  %v3004_v26 = vpop.f32.mrb[3].mxu0  ;;  %v3776_v27 = vpop.f32.mrb[3].mxu1  ;;  %v3929_v30 = vmax.f32 %v7591_v16, 0.0  ;;  %v3931_v31 = vmax.f32 %v7655_v17, 0.0 }
 0x29b   :  { %v7594_v28 = vadd.f32 %v3004_v26, %v10899_v12  ;;  %v7658_v29 = vadd.f32 %v3776_v27, %v10903_v13  ;;  %v3930_v34 = vmax.f32 %v7592_v20, 0.0  ;;  %v3932_v35 = vmax.f32 %v7656_v21, 0.0  ;;  %v8854_v26 = vld [vmem:[%s12211_s5 + $0x120] ss:$8 sps:$4 sm:$0xff]  }
 0x29c   :  { %v3933_v32 = vmax.f32 %v7593_v24, 0.0  ;;  %v3935_v33 = vmax.f32 %v7657_v25, 0.0  ;;  %v8878_v27 = vld [vmem:[%s12209_s3 + $0x120] ss:$8 sps:$4 sm:$0xff]  }
 0x29d   :  { %v3934_v36 = vmax.f32 %v7594_v28, 0.0  ;;  %v3936_v37 = vmax.f32 %v7658_v29, 0.0 }
 0x29e   :  { %v10913_v38 = vpack.c.bf16 %v3933_v32, %v3929_v30  ;;  %v10915_v39 = vpack.c.bf16 %v3935_v33, %v3931_v31  ;;  %v8859_v32 = vld [vmem:[%s12211_s5 + $0x134] ss:$8 sps:$4 sm:$0xff]  }
 0x29f   :  { %v10917_v40 = vpack.c.bf16 %v3934_v36, %v3930_v34  ;;  %v10919_v41 = vpack.c.bf16 %v3936_v37, %v3932_v35  ;;  %v3008_v42 = vpop.f32.mrb[4].mxu0  ;;  %v3780_v43 = vpop.f32.mrb[4].mxu1  ;;  %v8889_v33 = vld [vmem:[%s12209_s3 + $0x134] ss:$8 sps:$4 sm:$0xff]  }
 0x2a0   :  { %12288 = vst [vmem:[#allocation16_spill] sm:$0xff] %v10915_v39  ;;  %v7595_v46 = vadd.f32 %v3008_v42, %v10892_v10  ;;  %v7659_v47 = vadd.f32 %v3780_v43, %v10896_v11  ;;  %v3010_v48 = vpop.f32.mrb[5].mxu0  ;;  %v3782_v49 = vpop.f32.mrb[5].mxu1 }
 0x2a1   :  { %12289 = vst [vmem:[#allocation17_spill] sm:$0xff] %v10919_v41  ;;  %v7596_v52 = vadd.f32 %v3010_v48, %v10899_v12  ;;  %v7660_v53 = vadd.f32 %v3782_v49, %v10903_v13  ;;  %v3012_v54 = vpop.f32.mrb[6].mxu0  ;;  %v3784_v55 = vpop.f32.mrb[6].mxu1  ;;  %4549 = vmatprep.mubr.bf16.mxu0 %v10917_v40  ;;  %5395 = vmatprep.mubr.bf16.mxu1 %v10917_v40  ;;  %v8857_v48 = vld [vmem:[%s12211_s5 + $0x130] ss:$8 sps:$4 sm:$0xff]  }
 0x2a2   :  { %v7597_v56 = vadd.f32 %v3012_v54, %v10892_v10  ;;  %v7661_v57 = vadd.f32 %v3784_v55, %v10896_v11  ;;  %v3014_v58 = vpop.f32.mrb[7].mxu0  ;;  %v3786_v59 = vpop.f32.mrb[7].mxu1  ;;  %4550 = vmatmul.mubr.bf16.vlgmr.msra.gmra.mrb[64].mxu0 %v10913_v38  ;;  %5396 = vmatmul.mubr.bf16.vlgmr.msra.gmra.mrb[64].mxu1 %v10913_v38  ;;  %v3937_v1 = vmax.f32 %v7595_v46, 0.0  ;;  %v3939_v2 = vmax.f32 %v7659_v47, 0.0  ;;  %v8865_v49 = vld [vmem:[%s12211_s5 + $0x144] ss:$8 sps:$4 sm:$0xff]  }
 0x2a3   :  { %v7598_v60 = vadd.f32 %v3014_v58, %v10899_v12  ;;  %v7662_v61 = vadd.f32 %v3786_v59, %v10903_v13  ;;  %5557 = vmatpush1.bf16.msra.mxu1 %v8848_v44  ;;  %4711 = vmatpush1.bf16.msra.mxu0 %v8860_v45  ;;  %v3938_v16 = vmax.f32 %v7596_v52, 0.0  ;;  %v3940_v17 = vmax.f32 %v7660_v53, 0.0  ;;  %v8898_v55 = vld [vmem:[%s12209_s3 + $0x144] ss:$8 sps:$4 sm:$0xff]  }
 0x2a4   :  { %v3941_v7 = vmax.f32 %v7597_v56, 0.0  ;;  %v3943_v14 = vmax.f32 %v7661_v57, 0.0  ;;  %5558 = vmatprep.subr.bf16.mxu1 %v8853_v50  ;;  %4712 = vmatprep.subr.bf16.mxu0 %v8871_v51  ;;  %v8887_v50 = vld [vmem:[%s12209_s3 + $0x130] ss:$8 sps:$4 sm:$0xff]  }
 0x2a5   :  { %v3942_v18 = vmax.f32 %v7598_v60, 0.0  ;;  %v3944_v19 = vmax.f32 %v7662_v61, 0.0 }
 0x2a6   :  { %v10957_v20 = vpack.c.bf16 %v3941_v7, %v3937_v1  ;;  %v10959_v21 = vpack.c.bf16 %v3943_v14, %v3939_v2  ;;  %v8863_v2 = vld [vmem:[%s12211_s5 + $0x140] ss:$8 sps:$4 sm:$0xff]  }
 0x2a7   :  { %v10961_v22 = vpack.c.bf16 %v3942_v18, %v3938_v16  ;;  %v10963_v23 = vpack.c.bf16 %v3944_v19, %v3940_v17  ;;  %5559 = vmatpush1.bf16.msra.mxu1 %v8851_v62  ;;  %v3018_v24 = vpop.f32.mrb[8].mxu0  ;;  %v3790_v25 = vpop.f32.mrb[8].mxu1  ;;  %4713 = vmatpush1.bf16.msra.mxu0 %v8869_v0  ;;  %v8896_v7 = vld [vmem:[%s12209_s3 + $0x140] ss:$8 sps:$4 sm:$0xff]   ;;  %v8868_v18 = vld [vmem:[%s12211_s5 + $0x154] ss:$8 sps:$4 sm:$0xff]  }
 0x2a8   :  { %12290 = vst [vmem:[#allocation18_spill] sm:$0xff] %v10959_v21  ;;  %v7599_v28 = vadd.f32 %v3018_v24, %v10892_v10  ;;  %v7663_v29 = vadd.f32 %v3790_v25, %v10896_v11  ;;  %v3020_v30 = vpop.f32.mrb[9].mxu0  ;;  %v3792_v31 = vpop.f32.mrb[9].mxu1  ;;  %5560 = vmatprep.subr.bf16.mxu1 %v8856_v63  ;;  %4714 = vmatprep.subr.bf16.mxu0 %v8880_v15  ;;  %v8907_v19 = vld [vmem:[%s12209_s3 + $0x154] ss:$8 sps:$4 sm:$0xff]  }
 0x2a9   :  { %12291 = vst [vmem:[#allocation19_spill] sm:$0xff] %v10963_v23  ;;  %v7600_v34 = vadd.f32 %v3020_v30, %v10899_v12  ;;  %v7664_v35 = vadd.f32 %v3792_v31, %v10903_v13  ;;  %v3022_v36 = vpop.f32.mrb[10].mxu0  ;;  %v3794_v37 = vpop.f32.mrb[10].mxu1  ;;  %4559 = vmatprep.mubr.bf16.mxu0 %v10961_v22  ;;  %5405 = vmatprep.mubr.bf16.mxu1 %v10961_v22 }
 0x2aa   :  { %v7601_v42 = vadd.f32 %v3022_v36, %v10892_v10  ;;  %v7665_v43 = vadd.f32 %v3794_v37, %v10896_v11  ;;  %v3024_v44 = vpop.f32.mrb[11].mxu0  ;;  %v3796_v45 = vpop.f32.mrb[11].mxu1  ;;  %4560 = vmatmul.mubr.bf16.gmra.mrb[68].mxu0 %v10957_v20  ;;  %5406 = vmatmul.mubr.bf16.gmra.mrb[68].mxu1 %v10957_v20  ;;  %v3945_v51 = vmax.f32 %v7599_v28, 0.0  ;;  %v3947_v52 = vmax.f32 %v7663_v29, 0.0  ;;  %v8905_v36 = vld [vmem:[%s12209_s3 + $0x150] ss:$8 sps:$4 sm:$0xff]  }
 0x2ab   :  { %v7602_v46 = vadd.f32 %v3024_v44, %v10899_v12  ;;  %v7666_v47 = vadd.f32 %v3796_v45, %v10903_v13  ;;  %5561 = vmatpush1.bf16.msra.mxu1 %v8854_v26  ;;  %4715 = vmatpush1.bf16.msra.mxu0 %v8878_v27  ;;  %v3946_v56 = vmax.f32 %v7600_v34, 0.0  ;;  %v3948_v57 = vmax.f32 %v7664_v35, 0.0  ;;  %v8866_v34 = vld [vmem:[%s12211_s5 + $0x150] ss:$8 sps:$4 sm:$0xff]   ;;  %v8874_v35 = vld [vmem:[%s12211_s5 + $0x164] ss:$8 sps:$4 sm:$0xff]  }
 0x2ac   :  { %v3949_v53 = vmax.f32 %v7601_v42, 0.0  ;;  %v3951_v54 = vmax.f32 %v7665_v43, 0.0  ;;  %5562 = vmatprep.subr.bf16.mxu1 %v8859_v32  ;;  %4716 = vmatprep.subr.bf16.mxu0 %v8889_v33  ;;  %v8916_v45 = vld [vmem:[%s12209_s3 + $0x164] ss:$8 sps:$4 sm:$0xff]  }
 0x2ad   :  { %v3950_v58 = vmax.f32 %v7602_v46, 0.0  ;;  %v3952_v59 = vmax.f32 %v7666_v47, 0.0 }
 0x2ae   :  { %v11001_v60 = vpack.c.bf16 %v3949_v53, %v3945_v51  ;;  %v11003_v61 = vpack.c.bf16 %v3951_v54, %v3947_v52 }
 0x2af   :  { %v11005_v62 = vpack.c.bf16 %v3950_v58, %v3946_v56  ;;  %v11007_v63 = vpack.c.bf16 %v3952_v59, %v3948_v57  ;;  %5563 = vmatpush1.bf16.msra.mxu1 %v8857_v48  ;;  %v3028_v0 = vpop.f32.mrb[12].mxu0  ;;  %v3800_v1 = vpop.f32.mrb[12].mxu1  ;;  %4717 = vmatpush1.bf16.msra.mxu0 %v8887_v50  ;;  %v8872_v56 = vld [vmem:[%s12211_s5 + $0x160] ss:$8 sps:$4 sm:$0xff]  }
 0x2b0   :  { %12292 = vst [vmem:[#allocation20_spill] sm:$0xff] %v11003_v61  ;;  %v7603_v14 = vadd.f32 %v3028_v0, %v10892_v10  ;;  %v7667_v15 = vadd.f32 %v3800_v1, %v10896_v11  ;;  %v3030_v16 = vpop.f32.mrb[13].mxu0  ;;  %v3802_v17 = vpop.f32.mrb[13].mxu1  ;;  %5564 = vmatprep.subr.bf16.mxu1 %v8865_v49  ;;  %4718 = vmatprep.subr.bf16.mxu0 %v8898_v55  ;;  %v8914_v57 = vld [vmem:[%s12209_s3 + $0x160] ss:$8 sps:$4 sm:$0xff]  }
 0x2b1   :  { %12293 = vst [vmem:[#allocation21_spill] sm:$0xff] %v11007_v63  ;;  %v7604_v24 = vadd.f32 %v3030_v16, %v10899_v12  ;;  %v7668_v25 = vadd.f32 %v3802_v17, %v10903_v13  ;;  %v3032_v26 = vpop.f32.mrb[14].mxu0  ;;  %v3804_v27 = vpop.f32.mrb[14].mxu1  ;;  %4569 = vmatprep.mubr.bf16.mxu0 %v11005_v62  ;;  %5415 = vmatprep.mubr.bf16.mxu1 %v11005_v62 }
 0x2b2   :  { %v7605_v28 = vadd.f32 %v3032_v26, %v10892_v10  ;;  %v7669_v29 = vadd.f32 %v3804_v27, %v10896_v11  ;;  %v3034_v30 = vpop.f32.mrb[15].mxu0  ;;  %v3806_v31 = vpop.f32.mrb[15].mxu1  ;;  %4570 = vmatmul.mubr.bf16.gmra.mrb[72].mxu0 %v11001_v60  ;;  %5416 = vmatmul.mubr.bf16.gmra.mrb[72].mxu1 %v11001_v60  ;;  %v3953_v37 = vmax.f32 %v7603_v14, 0.0  ;;  %v3955_v42 = vmax.f32 %v7667_v15, 0.0 }
 0x2b3   :  { %v7606_v32 = vadd.f32 %v3034_v30, %v10899_v12  ;;  %v7670_v33 = vadd.f32 %v3806_v31, %v10903_v13  ;;  %5565 = vmatpush1.bf16.msra.mxu1 %v8863_v2  ;;  %4719 = vmatpush1.bf16.msra.mxu0 %v8896_v7  ;;  %v3954_v46 = vmax.f32 %v7604_v24, 0.0  ;;  %v3956_v47 = vmax.f32 %v7668_v25, 0.0  ;;  %v8877_v2 = vld [vmem:[%s12211_s5 + $0x174] ss:$8 sps:$4 sm:$0xff]   ;;  %v8917_v30 = vld [vmem:[%s12209_s3 + $0x170] ss:$8 sps:$4 sm:$0xff]  }
 0x2b4   :  { %v3957_v43 = vmax.f32 %v7605_v28, 0.0  ;;  %v3959_v44 = vmax.f32 %v7669_v29, 0.0  ;;  %5566 = vmatprep.subr.bf16.mxu1 %v8868_v18  ;;  %4720 = vmatprep.subr.bf16.mxu0 %v8907_v19  ;;  %v8919_v7 = vld [vmem:[%s12209_s3 + $0x174] ss:$8 sps:$4 sm:$0xff]   ;;  %v8875_v28 = vld [vmem:[%s12211_s5 + $0x170] ss:$8 sps:$4 sm:$0xff]  }
 0x2b5   :  { %v3958_v48 = vmax.f32 %v7606_v32, 0.0  ;;  %v3960_v49 = vmax.f32 %v7670_v33, 0.0  ;;  %v8883_v29 = vld [vmem:[%s12211_s5 + $0x184] ss:$8 sps:$4 sm:$0xff]  }
 0x2b6   :  { %v11045_v50 = vpack.c.bf16 %v3957_v43, %v3953_v37  ;;  %v11047_v51 = vpack.c.bf16 %v3959_v44, %v3955_v42 }
 0x2b7   :  { %v11049_v52 = vpack.c.bf16 %v3958_v48, %v3954_v46  ;;  %v11051_v53 = vpack.c.bf16 %v3960_v49, %v3956_v47  ;;  %5567 = vmatpush1.bf16.msra.mxu1 %v8866_v34  ;;  %v3038_v54 = vpop.f32.mrb[16].mxu0  ;;  %v3810_v55 = vpop.f32.mrb[16].mxu1  ;;  %4721 = vmatpush1.bf16.msra.mxu0 %v8905_v36 }
 0x2b8   :  { %12294 = vst [vmem:[#allocation22_spill] sm:$0xff] %v11047_v51  ;;  %v7607_v58 = vadd.f32 %v3038_v54, %v10892_v10  ;;  %v7671_v59 = vadd.f32 %v3810_v55, %v10896_v11  ;;  %v3040_v0 = vpop.f32.mrb[17].mxu0  ;;  %v3812_v1 = vpop.f32.mrb[17].mxu1  ;;  %5568 = vmatprep.subr.bf16.mxu1 %v8874_v35  ;;  %4722 = vmatprep.subr.bf16.mxu0 %v8916_v45  ;;  %v8922_v35 = vld [vmem:[%s12209_s3 + $0x184] ss:$8 sps:$4 sm:$0xff]  }
 0x2b9   :  { %12295 = vst [vmem:[#allocation23_spill] sm:$0xff] %v11051_v53  ;;  %v7608_v14 = vadd.f32 %v3040_v0, %v10899_v12  ;;  %v7672_v15 = vadd.f32 %v3812_v1, %v10903_v13  ;;  %v3042_v16 = vpop.f32.mrb[18].mxu0  ;;  %v3814_v17 = vpop.f32.mrb[18].mxu1  ;;  %4579 = vmatprep.mubr.bf16.mxu0 %v11049_v52  ;;  %5425 = vmatprep.mubr.bf16.mxu1 %v11049_v52  ;;  %v8881_v54 = vld [vmem:[%s12211_s5 + $0x180] ss:$8 sps:$4 sm:$0xff]  }
 0x2ba   :  { %v7609_v18 = vadd.f32 %v3042_v16, %v10892_v10  ;;  %v7673_v19 = vadd.f32 %v3814_v17, %v10896_v11  ;;  %v3044_v24 = vpop.f32.mrb[19].mxu0  ;;  %v3816_v25 = vpop.f32.mrb[19].mxu1  ;;  %4580 = vmatmul.mubr.bf16.gmra.mrb[76].mxu0 %v11045_v50  ;;  %5426 = vmatmul.mubr.bf16.gmra.mrb[76].mxu1 %v11045_v50  ;;  %v3961_v31 = vmax.f32 %v7607_v58, 0.0  ;;  %v3963_v32 = vmax.f32 %v7671_v59, 0.0  ;;  %v8920_v55 = vld [vmem:[%s12209_s3 + $0x180] ss:$8 sps:$4 sm:$0xff]  }
 0x2bb   :  { %v7610_v26 = vadd.f32 %v3044_v24, %v10899_v12  ;;  %v7674_v27 = vadd.f32 %v3816_v25, %v10903_v13  ;;  %5569 = vmatpush1.bf16.msra.mxu1 %v8872_v56  ;;  %4723 = vmatpush1.bf16.msra.mxu0 %v8914_v57  ;;  %v3962_v36 = vmax.f32 %v7608_v14, 0.0  ;;  %v3964_v37 = vmax.f32 %v7672_v15, 0.0  ;;  %v8886_v0 = vld [vmem:[%s12211_s5 + $0x194] ss:$8 sps:$4 sm:$0xff]  }
 0x2bc   :  { %v3965_v33 = vmax.f32 %v7609_v18, 0.0  ;;  %v3967_v34 = vmax.f32 %v7673_v19, 0.0  ;;  %5570 = vmatprep.subr.bf16.mxu1 %v8877_v2  ;;  %4724 = vmatprep.subr.bf16.mxu0 %v8919_v7  ;;  %v8925_v1 = vld [vmem:[%s12209_s3 + $0x194] ss:$8 sps:$4 sm:$0xff]  }
 0x2bd   :  { %v3966_v42 = vmax.f32 %v7610_v26, 0.0  ;;  %v3968_v43 = vmax.f32 %v7674_v27, 0.0  ;;  %v8884_v26 = vld [vmem:[%s12211_s5 + $0x190] ss:$8 sps:$4 sm:$0xff]   ;;  %v8892_v27 = vld [vmem:[%s12211_s5 + $0x1a4] ss:$8 sps:$4 sm:$0xff]  }
 0x2be   :  { %v11089_v44 = vpack.c.bf16 %v3965_v33, %v3961_v31  ;;  %v11091_v45 = vpack.c.bf16 %v3967_v34, %v3963_v32  ;;  %v8928_v33 = vld [vmem:[%s12209_s3 + $0x1a4] ss:$8 sps:$4 sm:$0xff]  }
 0x2bf   :  { %v11093_v46 = vpack.c.bf16 %v3966_v42, %v3962_v36  ;;  %v11095_v47 = vpack.c.bf16 %v3968_v43, %v3964_v37  ;;  %5571 = vmatpush1.bf16.msra.mxu1 %v8875_v28  ;;  %v3048_v48 = vpop.f32.mrb[20].mxu0  ;;  %v3820_v49 = vpop.f32.mrb[20].mxu1  ;;  %4725 = vmatpush1.bf16.msra.mxu0 %v8917_v30  ;;  %v8923_v28 = vld [vmem:[%s12209_s3 + $0x190] ss:$8 sps:$4 sm:$0xff]  }
 0x2c0   :  { %12296 = vst [vmem:[#allocation24_spill] sm:$0xff] %v11091_v45  ;;  %v7611_v56 = vadd.f32 %v3048_v48, %v10892_v10  ;;  %v7675_v57 = vadd.f32 %v3820_v49, %v10896_v11  ;;  %v3050_v58 = vpop.f32.mrb[21].mxu0  ;;  %v3822_v59 = vpop.f32.mrb[21].mxu1  ;;  %5572 = vmatprep.subr.bf16.mxu1 %v8883_v29  ;;  %4726 = vmatprep.subr.bf16.mxu0 %v8922_v35 }
 0x2c1   :  { %12297 = vst [vmem:[#allocation25_spill] sm:$0xff] %v11095_v47  ;;  %v7612_v2 = vadd.f32 %v3050_v58, %v10899_v12  ;;  %v7676_v7 = vadd.f32 %v3822_v59, %v10903_v13  ;;  %v3052_v14 = vpop.f32.mrb[22].mxu0  ;;  %v3824_v15 = vpop.f32.mrb[22].mxu1  ;;  %4589 = vmatprep.mubr.bf16.mxu0 %v11093_v46  ;;  %5435 = vmatprep.mubr.bf16.mxu1 %v11093_v46 }
 0x2c2   :  { %v7613_v16 = vadd.f32 %v3052_v14, %v10892_v10  ;;  %v7677_v17 = vadd.f32 %v3824_v15, %v10896_v11  ;;  %v3054_v18 = vpop.f32.mrb[23].mxu0  ;;  %v3826_v19 = vpop.f32.mrb[23].mxu1  ;;  %4590 = vmatmul.mubr.bf16.gmra.mrb[80].mxu0 %v11089_v44  ;;  %5436 = vmatmul.mubr.bf16.gmra.mrb[80].mxu1 %v11089_v44  ;;  %v3969_v29 = vmax.f32 %v7611_v56, 0.0  ;;  %v3971_v30 = vmax.f32 %v7675_v57, 0.0  ;;  %v8890_v56 = vld [vmem:[%s12211_s5 + $0x1a0] ss:$8 sps:$4 sm:$0xff]  }
 0x2c3   :  { %v7614_v24 = vadd.f32 %v3054_v18, %v10899_v12  ;;  %v7678_v25 = vadd.f32 %v3826_v19, %v10903_v13  ;;  %5573 = vmatpush1.bf16.msra.mxu1 %v8881_v54  ;;  %4727 = vmatpush1.bf16.msra.mxu0 %v8920_v55  ;;  %v3970_v34 = vmax.f32 %v7612_v2, 0.0  ;;  %v3972_v35 = vmax.f32 %v7676_v7, 0.0  ;;  %v8926_v57 = vld [vmem:[%s12209_s3 + $0x1a0] ss:$8 sps:$4 sm:$0xff]   ;;  %v8895_v2 = vld [vmem:[%s12211_s5 + $0x1b4] ss:$8 sps:$4 sm:$0xff]  }
 0x2c4   :  { %v3973_v31 = vmax.f32 %v7613_v16, 0.0  ;;  %v3975_v32 = vmax.f32 %v7677_v17, 0.0  ;;  %5574 = vmatprep.subr.bf16.mxu1 %v8886_v0  ;;  %4728 = vmatprep.subr.bf16.mxu0 %v8925_v1  ;;  %v8931_v7 = vld [vmem:[%s12209_s3 + $0x1b4] ss:$8 sps:$4 sm:$0xff]  }
 0x2c5   :  { %v3974_v36 = vmax.f32 %v7614_v24, 0.0  ;;  %v3976_v37 = vmax.f32 %v7678_v25, 0.0 }
 0x2c6   :  { %v11133_v42 = vpack.c.bf16 %v3973_v31, %v3969_v29  ;;  %v11135_v43 = vpack.c.bf16 %v3975_v32, %v3971_v30  ;;  %v8901_v29 = vld [vmem:[%s12211_s5 + $0x1c4] ss:$8 sps:$4 sm:$0xff]   ;;  %v8929_v30 = vld [vmem:[%s12209_s3 + $0x1b0] ss:$8 sps:$4 sm:$0xff]  }
 0x2c7   :  { %v11137_v48 = vpack.c.bf16 %v3974_v36, %v3970_v34  ;;  %v11139_v49 = vpack.c.bf16 %v3976_v37, %v3972_v35  ;;  %5575 = vmatpush1.bf16.msra.mxu1 %v8884_v26  ;;  %v3058_v54 = vpop.f32.mrb[24].mxu0  ;;  %v3830_v55 = vpop.f32.mrb[24].mxu1  ;;  %4729 = vmatpush1.bf16.msra.mxu0 %v8923_v28  ;;  %v8893_v28 = vld [vmem:[%s12211_s5 + $0x1b0] ss:$8 sps:$4 sm:$0xff]   ;;  %v8934_v35 = vld [vmem:[%s12209_s3 + $0x1c4] ss:$8 sps:$4 sm:$0xff]  }
 0x2c8   :  { %12298 = vst [vmem:[#allocation26_spill] sm:$0xff] %v11135_v43  ;;  %v7615_v58 = vadd.f32 %v3058_v54, %v10892_v10  ;;  %v7679_v59 = vadd.f32 %v3830_v55, %v10896_v11  ;;  %v3060_v0 = vpop.f32.mrb[25].mxu0  ;;  %v3832_v1 = vpop.f32.mrb[25].mxu1  ;;  %5576 = vmatprep.subr.bf16.mxu1 %v8892_v27  ;;  %4730 = vmatprep.subr.bf16.mxu0 %v8928_v33 }
 0x2c9   :  { %12299 = vst [vmem:[#allocation27_spill] sm:$0xff] %v11139_v49  ;;  %v7616_v14 = vadd.f32 %v3060_v0, %v10899_v12  ;;  %v7680_v15 = vadd.f32 %v3832_v1, %v10903_v13  ;;  %v3062_v16 = vpop.f32.mrb[26].mxu0  ;;  %v3834_v17 = vpop.f32.mrb[26].mxu1  ;;  %4599 = vmatprep.mubr.bf16.mxu0 %v11137_v48  ;;  %5445 = vmatprep.mubr.bf16.mxu1 %v11137_v48 }
 0x2ca   :  { %v7617_v18 = vadd.f32 %v3062_v16, %v10892_v10  ;;  %v7681_v19 = vadd.f32 %v3834_v17, %v10896_v11  ;;  %v3064_v24 = vpop.f32.mrb[27].mxu0  ;;  %v3836_v25 = vpop.f32.mrb[27].mxu1  ;;  %4600 = vmatmul.mubr.bf16.gmra.mrb[84].mxu0 %v11133_v42  ;;  %5446 = vmatmul.mubr.bf16.gmra.mrb[84].mxu1 %v11133_v42  ;;  %v3977_v31 = vmax.f32 %v7615_v58, 0.0  ;;  %v3979_v32 = vmax.f32 %v7679_v59, 0.0 }
 0x2cb   :  { %v7618_v26 = vadd.f32 %v3064_v24, %v10899_v12  ;;  %v7682_v27 = vadd.f32 %v3836_v25, %v10903_v13  ;;  %5577 = vmatpush1.bf16.msra.mxu1 %v8890_v56  ;;  %4731 = vmatpush1.bf16.msra.mxu0 %v8926_v57  ;;  %v3978_v36 = vmax.f32 %v7616_v14, 0.0  ;;  %v3980_v37 = vmax.f32 %v7680_v15, 0.0 }
 0x2cc   :  { %v3981_v33 = vmax.f32 %v7617_v18, 0.0  ;;  %v3983_v34 = vmax.f32 %v7681_v19, 0.0  ;;  %5578 = vmatprep.subr.bf16.mxu1 %v8895_v2  ;;  %4732 = vmatprep.subr.bf16.mxu0 %v8931_v7  ;;  %v8899_v2 = vld [vmem:[%s12211_s5 + $0x1c0] ss:$8 sps:$4 sm:$0xff]   ;;  %v8904_v18 = vld [vmem:[%s12211_s5 + $0x1d4] ss:$8 sps:$4 sm:$0xff]  }
 0x2cd   :  { %v3982_v54 = vmax.f32 %v7618_v26, 0.0  ;;  %v3984_v55 = vmax.f32 %v7682_v27, 0.0  ;;  %v8932_v7 = vld [vmem:[%s12209_s3 + $0x1c0] ss:$8 sps:$4 sm:$0xff]   ;;  %v8937_v19 = vld [vmem:[%s12209_s3 + $0x1d4] ss:$8 sps:$4 sm:$0xff]  }
 0x2ce   :  { %v11177_v56 = vpack.c.bf16 %v3981_v33, %v3977_v31  ;;  %v11179_v57 = vpack.c.bf16 %v3983_v34, %v3979_v32  ;;  %v8902_v34 = vld [vmem:[%s12211_s5 + $0x1d0] ss:$8 sps:$4 sm:$0xff]  }
 0x2cf   :  { %v11181_v0 = vpack.c.bf16 %v3982_v54, %v3978_v36  ;;  %v11183_v58 = vpack.c.bf16 %v3984_v55, %v3980_v37  ;;  %5579 = vmatpush1.bf16.msra.mxu1 %v8893_v28  ;;  %v3068_v59 = vpop.f32.mrb[28].mxu0  ;;  %v3840_v1 = vpop.f32.mrb[28].mxu1  ;;  %4733 = vmatpush1.bf16.msra.mxu0 %v8929_v30  ;;  %v8935_v36 = vld [vmem:[%s12209_s3 + $0x1d0] ss:$8 sps:$4 sm:$0xff]  }
 0x2d0   :  { %12300 = vst [vmem:[#allocation28_spill] sm:$0xff] %v11179_v57  ;;  %v7619_v14 = vadd.f32 %v3068_v59, %v10892_v10  ;;  %v7683_v15 = vadd.f32 %v3840_v1, %v10896_v11  ;;  %v3070_v16 = vpop.f32.mrb[29].mxu0  ;;  %v3842_v17 = vpop.f32.mrb[29].mxu1  ;;  %5580 = vmatprep.subr.bf16.mxu1 %v8901_v29  ;;  %4734 = vmatprep.subr.bf16.mxu0 %v8934_v35  ;;  %v8910_v35 = vld [vmem:[%s12211_s5 + $0x1e4] ss:$8 sps:$4 sm:$0xff]  }
 0x2d1   :  { %12301 = vst [vmem:[#allocation29_spill] sm:$0xff] %v11183_v58  ;;  %v7620_v24 = vadd.f32 %v3070_v16, %v10899_v12  ;;  %v7684_v25 = vadd.f32 %v3842_v17, %v10903_v13  ;;  %v3072_v26 = vpop.f32.mrb[30].mxu0  ;;  %v3844_v27 = vpop.f32.mrb[30].mxu1  ;;  %4609 = vmatprep.mubr.bf16.mxu0 %v11181_v0  ;;  %5455 = vmatprep.mubr.bf16.mxu1 %v11181_v0  ;;  %v8940_v1 = vld [vmem:[%s12209_s3 + $0x1e4] ss:$8 sps:$4 sm:$0xff]  }
 0x2d2   :  { %v7621_v28 = vadd.f32 %v3072_v26, %v10892_v10  ;;  %v7685_v29 = vadd.f32 %v3844_v27, %v10896_v11  ;;  %v3074_v30 = vpop.f32.mrb[31].mxu0  ;;  %v3846_v31 = vpop.f32.mrb[31].mxu1  ;;  %4610 = vmatmul.mubr.bf16.gmra.mrb[88].mxu0 %v11177_v56  ;;  %5456 = vmatmul.mubr.bf16.gmra.mrb[88].mxu1 %v11177_v56  ;;  %v3985_v37 = vmax.f32 %v7619_v14, 0.0  ;;  %v3987_v54 = vmax.f32 %v7683_v15, 0.0 }
 0x2d3   :  { %v7622_v32 = vadd.f32 %v3074_v30, %v10899_v12  ;;  %v7686_v33 = vadd.f32 %v3846_v31, %v10903_v13  ;;  %5581 = vmatpush1.bf16.msra.mxu1 %v8899_v2  ;;  %4735 = vmatpush1.bf16.msra.mxu0 %v8932_v7  ;;  %v3986_v2 = vmax.f32 %v7620_v24, 0.0  ;;  %v3988_v16 = vmax.f32 %v7684_v25, 0.0  ;;  %v8938_v24 = vld [vmem:[%s12209_s3 + $0x1e0] ss:$8 sps:$4 sm:$0xff]  }
 0x2d4   :  { %v3989_v55 = vmax.f32 %v7621_v28, 0.0  ;;  %v3991_v59 = vmax.f32 %v7685_v29, 0.0  ;;  %5582 = vmatprep.subr.bf16.mxu1 %v8904_v18  ;;  %4736 = vmatprep.subr.bf16.mxu0 %v8937_v19  ;;  %v8908_v19 = vld [vmem:[%s12211_s5 + $0x1e0] ss:$8 sps:$4 sm:$0xff]  }
 0x2d5   :  { %v3990_v17 = vmax.f32 %v7622_v32, 0.0  ;;  %v3992_v26 = vmax.f32 %v7686_v33, 0.0  ;;  %v8913_v32 = vld [vmem:[%s12211_s5 + $0x1f4] ss:$8 sps:$4 sm:$0xff]  }
 0x2d6   :  { %v11221_v27 = vpack.c.bf16 %v3989_v55, %v3985_v37  ;;  %v11223_v7 = vpack.c.bf16 %v3991_v59, %v3987_v54  ;;  %v8943_v33 = vld [vmem:[%s12209_s3 + $0x1f4] ss:$8 sps:$4 sm:$0xff]  }
 0x2d7   :  { %v11225_v30 = vpack.c.bf16 %v3990_v17, %v3986_v2  ;;  %v11227_v14 = vpack.c.bf16 %v3992_v26, %v3988_v16  ;;  %5583 = vmatpush1.bf16.msra.mxu1 %v8902_v34  ;;  %v3078_v15 = vpop.f32.mrb[32].mxu0  ;;  %v3850_v18 = vpop.f32.mrb[32].mxu1  ;;  %4737 = vmatpush1.bf16.msra.mxu0 %v8935_v36  ;;  %v8911_v17 = vld [vmem:[%s12211_s5 + $0x1f0] ss:$8 sps:$4 sm:$0xff]  }
 0x2d8   :  { %12302 = vst [vmem:[#allocation30_spill] sm:$0xff] %v11223_v7  ;;  %v7623_v25 = vadd.f32 %v3078_v15, %v10892_v10  ;;  %v7687_v28 = vadd.f32 %v3850_v18, %v10896_v11  ;;  %v3080_v29 = vpop.f32.mrb[33].mxu0  ;;  %v3852_v31 = vpop.f32.mrb[33].mxu1  ;;  %5584 = vmatprep.subr.bf16.mxu1 %v8910_v35  ;;  %4738 = vmatprep.subr.bf16.mxu0 %v8940_v1  ;;  %v8941_v26 = vld [vmem:[%s12209_s3 + $0x1f0] ss:$8 sps:$4 sm:$0xff]  }
 0x2d9   :  { %12303 = vst [vmem:[#allocation31_spill] sm:$0xff] %v11227_v14  ;;  %v7624_v34 = vadd.f32 %v3080_v29, %v10899_v12  ;;  %v7688_v36 = vadd.f32 %v3852_v31, %v10903_v13  ;;  %v3082_v37 = vpop.f32.mrb[34].mxu0  ;;  %v3854_v54 = vpop.f32.mrb[34].mxu1  ;;  %4619 = vmatprep.mubr.bf16.mxu0 %v11225_v30  ;;  %5465 = vmatprep.mubr.bf16.mxu1 %v11225_v30 }
 0x2da   :  { %v7625_v35 = vadd.f32 %v3082_v37, %v10892_v10  ;;  %v7689_v55 = vadd.f32 %v3854_v54, %v10896_v11  ;;  %v3084_v59 = vpop.f32.mrb[35].mxu0  ;;  %v3856_v1 = vpop.f32.mrb[35].mxu1  ;;  %4620 = vmatmul.mubr.bf16.gmra.mrb[92].mxu0 %v11221_v27  ;;  %5466 = vmatmul.mubr.bf16.gmra.mrb[92].mxu1 %v11221_v27  ;;  %v3993_v15 = vmax.f32 %v7623_v25, 0.0  ;;  %v3995_v18 = vmax.f32 %v7687_v28, 0.0 }
 0x2db   :  { %v7626_v2 = vadd.f32 %v3084_v59, %v10899_v12  ;;  %v7690_v16 = vadd.f32 %v3856_v1, %v10903_v13  ;;  %5585 = vmatpush1.bf16.msra.mxu1 %v8908_v19  ;;  %4739 = vmatpush1.bf16.msra.mxu0 %v8938_v24  ;;  %v3994_v37 = vmax.f32 %v7624_v34, 0.0  ;;  %v3996_v54 = vmax.f32 %v7688_v36, 0.0 }
 0x2dc   :  { %v3997_v29 = vmax.f32 %v7625_v35, 0.0  ;;  %v3999_v31 = vmax.f32 %v7689_v55, 0.0  ;;  %5586 = vmatprep.subr.bf16.mxu1 %v8913_v32  ;;  %4740 = vmatprep.subr.bf16.mxu0 %v8943_v33 }
 0x2dd   :  { %v3998_v59 = vmax.f32 %v7626_v2, 0.0  ;;  %v4000_v1 = vmax.f32 %v7690_v16, 0.0 }
 0x2de   :  { %v11259_v19 = vpack.c.bf16 %v3997_v29, %v3993_v15  ;;  %v11261_v6 = vpack.c.bf16 %v3999_v31, %v3995_v18 }
 0x2df   :  { %v11263_v9 = vpack.c.bf16 %v3998_v59, %v3994_v37  ;;  %v11265_v24 = vpack.c.bf16 %v4000_v1, %v3996_v54  ;;  %5587 = vmatpush1.bf16.msra.mxu1 %v8911_v17  ;;  %v3088_v3 = vpop.f32.mrb[36].mxu0  ;;  %v3860_v25 = vpop.f32.mrb[36].mxu1  ;;  %4741 = vmatpush1.bf16.msra.mxu0 %v8941_v26 }
 0x2e0   :  { %12304 = vst [vmem:[#allocation32_spill] sm:$0xff] %v11261_v6  ;;  %v7627_v28 = vadd.f32 %v3088_v3, %v10892_v10  ;;  %v7691_v32 = vadd.f32 %v3860_v25, %v10896_v11  ;;  %6379 = vmatprep.subr.bf16.mxu1 %v10917_v40  ;;  %v3090_v33 = vpop.f32.mrb[37].mxu0  ;;  %v3862_v34 = vpop.f32.mrb[37].mxu1 }
 0x2e1   :  { %12305 = vst [vmem:[#allocation33_spill] sm:$0xff] %v11265_v24  ;;  %v7628_v36 = vadd.f32 %v3090_v33, %v10899_v12  ;;  %v7692_v35 = vadd.f32 %v3862_v34, %v10903_v13  ;;  %v3092_v55 = vpop.f32.mrb[38].mxu0  ;;  %v3864_v2 = vpop.f32.mrb[38].mxu1  ;;  %4629 = vmatprep.mubr.bf16.mxu0 %v11263_v9  ;;  %5475 = vmatprep.mubr.bf16.mxu1 %v11263_v9 }
 0x2e2   :  { %v7629_v16 = vadd.f32 %v3092_v55, %v10892_v10  ;;  %v7693_v3 = vadd.f32 %v3864_v2, %v10896_v11  ;;  %v3094_v17 = vpop.f32.mrb[39].mxu0  ;;  %v3866_v26 = vpop.f32.mrb[39].mxu1  ;;  %4630 = vmatmul.mubr.bf16.gmra.mrb[96].mxu0 %v11259_v19  ;;  %5476 = vmatmul.mubr.bf16.gmra.mrb[96].mxu1 %v11259_v19  ;;  %v4001_v18 = vmax.f32 %v7627_v28, 0.0  ;;  %v4003_v29 = vmax.f32 %v7691_v32, 0.0 }
 0x2e3   :  { %v7630_v40 = vadd.f32 %v3094_v17, %v10899_v12  ;;  %v7694_v15 = vadd.f32 %v3866_v26, %v10903_v13  ;;  %v4002_v54 = vmax.f32 %v7628_v36, 0.0  ;;  %v4004_v59 = vmax.f32 %v7692_v35, 0.0 }
 0x2e4   :  { %v4005_v31 = vmax.f32 %v7629_v16, 0.0  ;;  %v4007_v37 = vmax.f32 %v7693_v3, 0.0 }
 0x2e5   :  { %v4006_v1 = vmax.f32 %v7630_v40, 0.0  ;;  %v4008_v25 = vmax.f32 %v7694_v15, 0.0 }
 0x2e6   :  { %v11280_v33 = vpack.c.bf16 %v4005_v31, %v4001_v18  ;;  %v11282_v34 = vpack.c.bf16 %v4007_v37, %v4003_v29 }
 0x2e7   :  { %v11284_v55 = vpack.c.bf16 %v4006_v1, %v4002_v54  ;;  %v11286_v2 = vpack.c.bf16 %v4008_v25, %v4004_v59  ;;  %v3098_v4 = vpop.f32.mrb[40].mxu0  ;;  %v3870_v17 = vpop.f32.mrb[40].mxu1 }
 0x2e8   :  { %12306 = vst [vmem:[#allocation34_spill] sm:$0xff] %v11282_v34  ;;  %v7631_v26 = vadd.f32 %v3098_v4, %v10892_v10  ;;  %v7695_v28 = vadd.f32 %v3870_v17, %v10896_v11  ;;  %v3100_v32 = vpop.f32.mrb[41].mxu0  ;;  %v3872_v16 = vpop.f32.mrb[41].mxu1 }
 0x2e9   :  { %12307 = vst [vmem:[#allocation35_spill] sm:$0xff] %v11286_v2  ;;  %v7632_v36 = vadd.f32 %v3100_v32, %v10899_v12  ;;  %v7696_v35 = vadd.f32 %v3872_v16, %v10903_v13  ;;  %v3102_v3 = vpop.f32.mrb[42].mxu0  ;;  %v3874_v40 = vpop.f32.mrb[42].mxu1  ;;  %4639 = vmatprep.mubr.bf16.mxu0 %v11284_v55  ;;  %5485 = vmatprep.mubr.bf16.mxu1 %v11284_v55 }
 0x2ea   :  { %v7633_v15 = vadd.f32 %v3102_v3, %v10892_v10  ;;  %v7697_v18 = vadd.f32 %v3874_v40, %v10896_v11  ;;  %v3104_v29 = vpop.f32.mrb[43].mxu0  ;;  %v3876_v4 = vpop.f32.mrb[43].mxu1  ;;  %4640 = vmatmul.mubr.bf16.gmra.mrb[100].mxu0 %v11280_v33  ;;  %5486 = vmatmul.mubr.bf16.gmra.mrb[100].mxu1 %v11280_v33  ;;  %v4009_v54 = vmax.f32 %v7631_v26, 0.0  ;;  %v4011_v59 = vmax.f32 %v7695_v28, 0.0 }
 0x2eb   :  { %v7634_v31 = vadd.f32 %v3104_v29, %v10899_v12  ;;  %v7698_v37 = vadd.f32 %v3876_v4, %v10903_v13  ;;  %v4010_v17 = vmax.f32 %v7632_v36, 0.0  ;;  %v4012_v32 = vmax.f32 %v7696_v35, 0.0 }
 0x2ec   :  { %v4013_v1 = vmax.f32 %v7633_v15, 0.0  ;;  %v4015_v25 = vmax.f32 %v7697_v18, 0.0 }
 0x2ed   :  { %v4014_v16 = vmax.f32 %v7634_v31, 0.0  ;;  %v4016_v3 = vmax.f32 %v7698_v37, 0.0 }
 0x2ee   :  { %v11300_v8 = vpack.c.bf16 %v4013_v1, %v4009_v54  ;;  %v11302_v40 = vpack.c.bf16 %v4015_v25, %v4011_v59 }
 0x2ef   :  { %v11304_v5 = vpack.c.bf16 %v4014_v16, %v4010_v17  ;;  %v11306_v34 = vpack.c.bf16 %v4016_v3, %v4012_v32  ;;  %v3108_v2 = vpop.f32.mrb[44].mxu0  ;;  %v3880_v29 = vpop.f32.mrb[44].mxu1 }
 0x2f0   :  { %12308 = vst [vmem:[#allocation36_spill] sm:$0xff] %v11302_v40  ;;  %v7635_v4 = vadd.f32 %v3108_v2, %v10892_v10  ;;  %v7699_v26 = vadd.f32 %v3880_v29, %v10896_v11  ;;  %v3110_v28 = vpop.f32.mrb[45].mxu0  ;;  %v3882_v15 = vpop.f32.mrb[45].mxu1 }
 0x2f1   :  { %12309 = vst [vmem:[#allocation37_spill] sm:$0xff] %v11306_v34  ;;  %v7636_v36 = vadd.f32 %v3110_v28, %v10899_v12  ;;  %v7700_v35 = vadd.f32 %v3882_v15, %v10903_v13  ;;  %v3112_v18 = vpop.f32.mrb[46].mxu0  ;;  %v3884_v31 = vpop.f32.mrb[46].mxu1  ;;  %4649 = vmatprep.mubr.bf16.mxu0 %v11304_v5  ;;  %5495 = vmatprep.mubr.bf16.mxu1 %v11304_v5 }
 0x2f2   :  { %v7637_v37 = vadd.f32 %v3112_v18, %v10892_v10  ;;  %v7701_v54 = vadd.f32 %v3884_v31, %v10896_v11  ;;  %v3114_v59 = vpop.f32.mrb[47].mxu0  ;;  %v3886_v2 = vpop.f32.mrb[47].mxu1  ;;  %4650 = vmatmul.mubr.bf16.gmra.mrb[104].mxu0 %v11300_v8  ;;  %5496 = vmatmul.mubr.bf16.gmra.mrb[104].mxu1 %v11300_v8  ;;  %v4017_v17 = vmax.f32 %v7635_v4, 0.0  ;;  %v4019_v32 = vmax.f32 %v7699_v26, 0.0 }
 0x2f3   :  { %v7638_v1 = vadd.f32 %v3114_v59, %v10899_v12  ;;  %v7702_v25 = vadd.f32 %v3886_v2, %v10903_v13  ;;  %v4018_v29 = vmax.f32 %v7636_v36, 0.0  ;;  %v4020_v28 = vmax.f32 %v7700_v35, 0.0 }
 0x2f4   :  { %v4021_v16 = vmax.f32 %v7637_v37, 0.0  ;;  %v4023_v3 = vmax.f32 %v7701_v54, 0.0 }
 0x2f5   :  { %v4022_v15 = vmax.f32 %v7638_v1, 0.0  ;;  %v4024_v18 = vmax.f32 %v7702_v25, 0.0 }
 0x2f6   :  { %v11320_v40 = vpack.c.bf16 %v4021_v16, %v4017_v17  ;;  %v11322_v31 = vpack.c.bf16 %v4023_v3, %v4019_v32 }
 0x2f7   :  { %v11324_v34 = vpack.c.bf16 %v4022_v15, %v4018_v29  ;;  %v11326_v6 = vpack.c.bf16 %v4024_v18, %v4020_v28  ;;  %v3118_v24 = vpop.f32.mrb[48].mxu0  ;;  %v3890_v59 = vpop.f32.mrb[48].mxu1 }
 0x2f8   :  { %12310 = vst [vmem:[#allocation38_spill] sm:$0xff] %v11322_v31  ;;  %v7639_v2 = vadd.f32 %v3118_v24, %v10892_v10  ;;  %v7703_v4 = vadd.f32 %v3890_v59, %v10896_v11  ;;  %v3120_v26 = vpop.f32.mrb[49].mxu0  ;;  %v3892_v37 = vpop.f32.mrb[49].mxu1 }
 0x2f9   :  { %12311 = vst [vmem:[#allocation39_spill] sm:$0xff] %v11326_v6  ;;  %v7640_v36 = vadd.f32 %v3120_v26, %v10899_v12  ;;  %v7704_v35 = vadd.f32 %v3892_v37, %v10903_v13  ;;  %v3122_v54 = vpop.f32.mrb[50].mxu0  ;;  %v3894_v1 = vpop.f32.mrb[50].mxu1  ;;  %4659 = vmatprep.mubr.bf16.mxu0 %v11324_v34  ;;  %5505 = vmatprep.mubr.bf16.mxu1 %v11324_v34 }
 0x2fa   :  { %v7641_v25 = vadd.f32 %v3122_v54, %v10892_v10  ;;  %v7705_v17 = vadd.f32 %v3894_v1, %v10896_v11  ;;  %v3124_v32 = vpop.f32.mrb[51].mxu0  ;;  %v3896_v24 = vpop.f32.mrb[51].mxu1  ;;  %4660 = vmatmul.mubr.bf16.gmra.mrb[108].mxu0 %v11320_v40  ;;  %5506 = vmatmul.mubr.bf16.gmra.mrb[108].mxu1 %v11320_v40  ;;  %v4025_v29 = vmax.f32 %v7639_v2, 0.0  ;;  %v4027_v28 = vmax.f32 %v7703_v4, 0.0 }
 0x2fb   :  { %v7642_v16 = vadd.f32 %v3124_v32, %v10899_v12  ;;  %v7706_v3 = vadd.f32 %v3896_v24, %v10903_v13  ;;  %v4026_v59 = vmax.f32 %v7640_v36, 0.0  ;;  %v4028_v26 = vmax.f32 %v7704_v35, 0.0 }
 0x2fc   :  { %v4029_v15 = vmax.f32 %v7641_v25, 0.0  ;;  %v4031_v18 = vmax.f32 %v7705_v17, 0.0 }
 0x2fd   :  { %v4030_v37 = vmax.f32 %v7642_v16, 0.0  ;;  %v4032_v54 = vmax.f32 %v7706_v3, 0.0 }
 0x2fe   :  { %v11340_v31 = vpack.c.bf16 %v4029_v15, %v4025_v29  ;;  %v11342_v1 = vpack.c.bf16 %v4031_v18, %v4027_v28 }
 0x2ff   :  { %v11344_v6 = vpack.c.bf16 %v4030_v37, %v4026_v59  ;;  %v11346_v7 = vpack.c.bf16 %v4032_v54, %v4028_v26  ;;  %v3128_v14 = vpop.f32.mrb[52].mxu0  ;;  %v3900_v32 = vpop.f32.mrb[52].mxu1 }
 0x300   :  { %12312 = vst [vmem:[#allocation40_spill] sm:$0xff] %v11340_v31  ;;  %12313 = vst [vmem:[#allocation41_spill] sm:$0xff] %v11342_v1  ;;  %v7643_v24 = vadd.f32 %v3128_v14, %v10892_v10  ;;  %v7707_v2 = vadd.f32 %v3900_v32, %v10896_v11  ;;  %v3130_v4 = vpop.f32.mrb[53].mxu0  ;;  %v3902_v25 = vpop.f32.mrb[53].mxu1 }
 0x301   :  { %12314 = vst [vmem:[#allocation42_spill] sm:$0xff] %v11346_v7  ;;  %v7644_v36 = vadd.f32 %v3130_v4, %v10899_v12  ;;  %v7708_v35 = vadd.f32 %v3902_v25, %v10903_v13  ;;  %v3132_v17 = vpop.f32.mrb[54].mxu0  ;;  %v3904_v16 = vpop.f32.mrb[54].mxu1  ;;  %4669 = vmatprep.mubr.bf16.mxu0 %v11344_v6  ;;  %5515 = vmatprep.mubr.bf16.mxu1 %v11344_v6 }
 0x302   :  { %v7645_v3 = vadd.f32 %v3132_v17, %v10892_v10  ;;  %v7709_v29 = vadd.f32 %v3904_v16, %v10896_v11  ;;  %v3134_v28 = vpop.f32.mrb[55].mxu0  ;;  %v3906_v14 = vpop.f32.mrb[55].mxu1  ;;  %4670 = vmatmul.mubr.bf16.gmra.mrb[112].mxu0 %v11340_v31  ;;  %5516 = vmatmul.mubr.bf16.gmra.mrb[112].mxu1 %v11340_v31  ;;  %v4033_v59 = vmax.f32 %v7643_v24, 0.0  ;;  %v4035_v26 = vmax.f32 %v7707_v2, 0.0 }
 0x303   :  { %v7646_v15 = vadd.f32 %v3134_v28, %v10899_v12  ;;  %v7710_v18 = vadd.f32 %v3906_v14, %v10903_v13  ;;  %v4034_v32 = vmax.f32 %v7644_v36, 0.0  ;;  %v4036_v4 = vmax.f32 %v7708_v35, 0.0 }
 0x304   :  { %v4037_v37 = vmax.f32 %v7645_v3, 0.0  ;;  %v4039_v54 = vmax.f32 %v7709_v29, 0.0 }
 0x305   :  { %v4038_v25 = vmax.f32 %v7646_v15, 0.0  ;;  %v4040_v17 = vmax.f32 %v7710_v18, 0.0 }
 0x306   :  { %v11360_v1 = vpack.c.bf16 %v4037_v37, %v4033_v59  ;;  %v11362_v16 = vpack.c.bf16 %v4039_v54, %v4035_v26 }
 0x307   :  { %v11364_v7 = vpack.c.bf16 %v4038_v25, %v4034_v32  ;;  %v11366_v57 = vpack.c.bf16 %v4040_v17, %v4036_v4  ;;  %v3138_v31 = vpop.f32.mrb[56].mxu0  ;;  %v3910_v28 = vpop.f32.mrb[56].mxu1 }
 0x308   :  { %12315 = vst [vmem:[#allocation43_spill] sm:$0xff] %v11360_v1  ;;  %12316 = vst [vmem:[#allocation44_spill] sm:$0xff] %v11362_v16  ;;  %v7647_v14 = vadd.f32 %v3138_v31, %v10892_v10  ;;  %v7711_v24 = vadd.f32 %v3910_v28, %v10896_v11  ;;  %v3140_v2 = vpop.f32.mrb[57].mxu0  ;;  %v3912_v3 = vpop.f32.mrb[57].mxu1 }
 0x309   :  { %12317 = vst [vmem:[#allocation45_spill] sm:$0xff] %v11364_v7  ;;  %12318 = vst [vmem:[#allocation46_spill] sm:$0xff] %v11366_v57  ;;  %v7648_v36 = vadd.f32 %v3140_v2, %v10899_v12  ;;  %v7712_v35 = vadd.f32 %v3912_v3, %v10903_v13  ;;  %v3142_v29 = vpop.f32.mrb[58].mxu0  ;;  %v3914_v15 = vpop.f32.mrb[58].mxu1  ;;  %4679 = vmatprep.mubr.bf16.mxu0 %v11364_v7  ;;  %5525 = vmatprep.mubr.bf16.mxu1 %v11364_v7 }
 0x30a   :  { %v7649_v18 = vadd.f32 %v3142_v29, %v10892_v10  ;;  %v7713_v59 = vadd.f32 %v3914_v15, %v10896_v11  ;;  %v3144_v26 = vpop.f32.mrb[59].mxu0  ;;  %v3916_v31 = vpop.f32.mrb[59].mxu1  ;;  %4680 = vmatmul.mubr.bf16.gmra.mrb[116].mxu0 %v11360_v1  ;;  %5526 = vmatmul.mubr.bf16.gmra.mrb[116].mxu1 %v11360_v1  ;;  %v4041_v32 = vmax.f32 %v7647_v14, 0.0  ;;  %v4043_v4 = vmax.f32 %v7711_v24, 0.0 }
 0x30b   :  { %v7650_v37 = vadd.f32 %v3144_v26, %v10899_v12  ;;  %v7714_v54 = vadd.f32 %v3916_v31, %v10903_v13  ;;  %v4042_v28 = vmax.f32 %v7648_v36, 0.0  ;;  %v4044_v2 = vmax.f32 %v7712_v35, 0.0 }
 0x30c   :  { %v4045_v25 = vmax.f32 %v7649_v18, 0.0  ;;  %v4047_v17 = vmax.f32 %v7713_v59, 0.0 }
 0x30d   :  { %v4046_v3 = vmax.f32 %v7650_v37, 0.0  ;;  %v4048_v29 = vmax.f32 %v7714_v54, 0.0 }
 0x30e   :  { %v11380_v16 = vpack.c.bf16 %v4045_v25, %v4041_v32  ;;  %v11382_v15 = vpack.c.bf16 %v4047_v17, %v4043_v4 }
 0x30f   :  { %v11384_v57 = vpack.c.bf16 %v4046_v3, %v4042_v28  ;;  %v11386_v7 = vpack.c.bf16 %v4048_v29, %v4044_v2  ;;  %v3148_v1 = vpop.f32.mrb[60].mxu0  ;;  %v3920_v26 = vpop.f32.mrb[60].mxu1 }
 0x310   :  { %12319 = vst [vmem:[#allocation47_spill] sm:$0xff] %v11382_v15  ;;  %v7651_v31 = vadd.f32 %v3148_v1, %v10892_v10  ;;  %v7715_v14 = vadd.f32 %v3920_v26, %v10896_v11  ;;  %v3150_v24 = vpop.f32.mrb[61].mxu0  ;;  %v3922_v18 = vpop.f32.mrb[61].mxu1 }
 0x311   :  { %12320 = vst [vmem:[#allocation48_spill] sm:$0xff] %v11386_v7  ;;  %v7652_v36 = vadd.f32 %v3150_v24, %v10899_v12  ;;  %v7716_v35 = vadd.f32 %v3922_v18, %v10903_v13  ;;  %v3152_v59 = vpop.f32.mrb[62].mxu0  ;;  %v3924_v37 = vpop.f32.mrb[62].mxu1  ;;  %4689 = vmatprep.mubr.bf16.mxu0 %v11384_v57  ;;  %5535 = vmatprep.mubr.bf16.mxu1 %v11384_v57 }
 0x312   :  { %v7653_v54 = vadd.f32 %v3152_v59, %v10892_v10  ;;  %v7717_v32 = vadd.f32 %v3924_v37, %v10896_v11  ;;  %v3154_v4 = vpop.f32.mrb[63].mxu0  ;;  %v3926_v1 = vpop.f32.mrb[63].mxu1  ;;  %4690 = vmatmul.mubr.bf16.gmra.mrb[120].mxu0 %v11380_v16  ;;  %5536 = vmatmul.mubr.bf16.gmra.mrb[120].mxu1 %v11380_v16  ;;  %v4049_v28 = vmax.f32 %v7651_v31, 0.0  ;;  %v4051_v2 = vmax.f32 %v7715_v14, 0.0 }
 0x313   :  { %v7654_v25 = vadd.f32 %v3154_v4, %v10899_v12  ;;  %v7718_v17 = vadd.f32 %v3926_v1, %v10903_v13  ;;  %v4050_v26 = vmax.f32 %v7652_v36, 0.0  ;;  %v4052_v24 = vmax.f32 %v7716_v35, 0.0  ;;  %v12325_v12 = vld [vmem:[#allocation31_spill] sm:$0xff] }
 0x314   :  { %v4053_v3 = vmax.f32 %v7653_v54, 0.0  ;;  %v4055_v29 = vmax.f32 %v7717_v32, 0.0  ;;  %v12327_v13 = vld [vmem:[#allocation43_spill] sm:$0xff] }
 0x315   :  { %v4054_v18 = vmax.f32 %v7654_v25, 0.0  ;;  %v4056_v10 = vmax.f32 %v7718_v17, 0.0 }
 0x316   :  { %v11400_v59 = vpack.c.bf16 %v4053_v3, %v4049_v28  ;;  %v11402_v11 = vpack.c.bf16 %v4055_v29, %v4051_v2 }
 0x317   :  { %v11404_v37 = vpack.c.bf16 %v4054_v18, %v4050_v26  ;;  %v11406_v15 = vpack.c.bf16 %v4056_v10, %v4052_v24 }
 0x318   :  { %12321 = vst [vmem:[#allocation49_spill] sm:$0xff] %v11402_v11 }
 0x319   :  { %12322 = vst [vmem:[#allocation50_spill] sm:$0xff] %v11406_v15  ;;  %4699 = vmatprep.mubr.bf16.mxu0 %v11404_v37  ;;  %5545 = vmatprep.mubr.bf16.mxu1 %v11404_v37 }
 0x31a   :  { %4700 = vmatmul.mubr.bf16.gmra.mrb[124].mxu0 %v11400_v59  ;;  %5546 = vmatmul.mubr.bf16.gmra.mrb[124].mxu1 %v11400_v59 }
 0x31b   :  { %4742 = vmatprep.mubr.bf16.mxu0 %v10919_v41  ;;  %5588 = vmatprep.mubr.bf16.mxu1 %v10919_v41 }
 0x322   :  { %4743 = vmatmul.mubr.bf16.vlgmr.msra.gmra.mrb[64].mxu0 %v10915_v39  ;;  %5589 = vmatmul.mubr.bf16.vlgmr.msra.gmra.mrb[64].mxu1 %v10915_v39 }
 0x323   :  { %6380 = vmatpush1.bf16.msra.mxu1 %v10913_v38  ;;  %4752 = vmatprep.mubr.bf16.mxu0 %v10963_v23  ;;  %v12328_v38 = vld [vmem:[#allocation30_spill] sm:$0xff] }
 0x324   :  { %5598 = vmatprep.mubr.bf16.mxu1 %v10963_v23  ;;  %6381 = vmatprep.subr.bf16.mxu1 %v10961_v22  ;;  %v12331_v22 = vld [vmem:[#allocation35_spill] sm:$0xff] }
 0x327   :  { %6382 = vmatpush1.bf16.msra.mxu1 %v10957_v20  ;;  %v12330_v20 = vld [vmem:[#allocation32_spill] sm:$0xff] }
 0x328   :  { %6383 = vmatprep.subr.bf16.mxu1 %v11005_v62  ;;  %v12333_v62 = vld [vmem:[#allocation37_spill] sm:$0xff] }
 0x32a   :  { %4753 = vmatmul.mubr.bf16.gmra.mrb[68].mxu0 %v10959_v21  ;;  %5599 = vmatmul.mubr.bf16.gmra.mrb[68].mxu1 %v10959_v21 }
 0x32b   :  { %6384 = vmatpush1.bf16.msra.mxu1 %v11001_v60  ;;  %4762 = vmatprep.mubr.bf16.mxu0 %v11007_v63  ;;  %v12332_v60 = vld [vmem:[#allocation34_spill] sm:$0xff] }
 0x32c   :  { %5608 = vmatprep.mubr.bf16.mxu1 %v11007_v63  ;;  %6385 = vmatprep.subr.bf16.mxu1 %v11049_v52  ;;  %v12335_v52 = vld [vmem:[#allocation39_spill] sm:$0xff] }
 0x32f   :  { %6386 = vmatpush1.bf16.msra.mxu1 %v11045_v50  ;;  %v12334_v50 = vld [vmem:[#allocation36_spill] sm:$0xff] }
 0x330   :  { %6387 = vmatprep.subr.bf16.mxu1 %v11093_v46  ;;  %v12337_v46 = vld [vmem:[#allocation42_spill] sm:$0xff] }
 0x332   :  { %4763 = vmatmul.mubr.bf16.gmra.mrb[72].mxu0 %v11003_v61  ;;  %5609 = vmatmul.mubr.bf16.gmra.mrb[72].mxu1 %v11003_v61 }
 0x333   :  { %6388 = vmatpush1.bf16.msra.mxu1 %v11089_v44  ;;  %4772 = vmatprep.mubr.bf16.mxu0 %v11051_v53  ;;  %v12336_v44 = vld [vmem:[#allocation38_spill] sm:$0xff] }
 0x334   :  { %5618 = vmatprep.mubr.bf16.mxu1 %v11051_v53  ;;  %6389 = vmatprep.subr.bf16.mxu1 %v11137_v48  ;;  %v12339_v48 = vld [vmem:[#allocation46_spill] sm:$0xff] }
 0x337   :  { %6390 = vmatpush1.bf16.msra.mxu1 %v11133_v42  ;;  %v12338_v42 = vld [vmem:[#allocation41_spill] sm:$0xff] }
 0x338   :  { %6391 = vmatprep.subr.bf16.mxu1 %v11181_v0  ;;  %v5031_v0 = vld [vmem:[%s12212_s6] sm:$0x3] }
 0x33a   :  { %4773 = vmatmul.mubr.bf16.gmra.mrb[76].mxu0 %v11047_v51  ;;  %5619 = vmatmul.mubr.bf16.gmra.mrb[76].mxu1 %v11047_v51 }
 0x33b   :  { %6392 = vmatpush1.bf16.msra.mxu1 %v11177_v56  ;;  %4782 = vmatprep.mubr.bf16.mxu0 %v11095_v47  ;;  %v12340_v56 = vld [vmem:[#allocation44_spill] sm:$0xff] }
 0x33c   :  { %5628 = vmatprep.mubr.bf16.mxu1 %v11095_v47  ;;  %6393 = vmatprep.subr.bf16.mxu1 %v11225_v30 }
 0x33f   :  { %6394 = vmatpush1.bf16.msra.mxu1 %v11221_v27  ;;  %v12342_v27 = vld [vmem:[#allocation14_spill] sm:$0xff] }
 0x340   :  { %6395 = vmatprep.subr.bf16.mxu1 %v11263_v9  ;;  %v12323_v9 = vld [vmem:[#allocation28_spill] sm:$0xff]  ;;  %v11511_v30 = vrot.slane %v5031_v0, %v12342_v27 }
 0x342   :  { %4783 = vmatmul.mubr.bf16.gmra.mrb[80].mxu0 %v11091_v45  ;;  %5629 = vmatmul.mubr.bf16.gmra.mrb[80].mxu1 %v11091_v45 }
 0x343   :  { %6396 = vmatpush1.bf16.msra.mxu1 %v11259_v19  ;;  %4792 = vmatprep.mubr.bf16.mxu0 %v11139_v49  ;;  %v4185_v19 = vld [vmem:[%s12210_s4] sm:$0x3] }
 0x344   :  { %5638 = vmatprep.mubr.bf16.mxu1 %v11139_v49  ;;  %6397 = vmatprep.subr.bf16.mxu1 %v11284_v55 }
 0x347   :  { %6398 = vmatpush1.bf16.msra.mxu1 %v11280_v33  ;;  %v12343_v33 = vld [vmem:[#allocation15_spill] sm:$0xff] }
 0x348   :  { %6399 = vmatprep.subr.bf16.mxu1 %v11304_v5  ;;  %v12324_v5 = vld [vmem:[#allocation40_spill] sm:$0xff]  ;;  %v11525_v1 = vrot.slane %v4185_v19, %v12343_v33 }
 0x34a   :  { %4793 = vmatmul.mubr.bf16.gmra.mrb[84].mxu0 %v11135_v43  ;;  %5639 = vmatmul.mubr.bf16.gmra.mrb[84].mxu1 %v11135_v43 }
 0x34b   :  { %6400 = vmatpush1.bf16.msra.mxu1 %v11300_v8  ;;  %4802 = vmatprep.mubr.bf16.mxu0 %v11183_v58  ;;  %v12326_v8 = vld [vmem:[#allocation45_spill] sm:$0xff] }
 0x34c   :  { %5648 = vmatprep.mubr.bf16.mxu1 %v11183_v58  ;;  %6401 = vmatprep.subr.bf16.mxu1 %v11324_v34  ;;  %v11517_v34 = vrot.slane %v5031_v0, %v12343_v33 }
 0x34f   :  { %6402 = vmatpush1.bf16.msra.mxu1 %v11320_v40 }
 0x350   :  { %6403 = vmatprep.subr.bf16.mxu1 %v11344_v6  ;;  %v12329_v6 = vld [vmem:[#allocation33_spill] sm:$0xff] }
 0x352   :  { %4803 = vmatmul.mubr.bf16.gmra.mrb[88].mxu0 %v12323_v9  ;;  %5649 = vmatmul.mubr.bf16.gmra.mrb[88].mxu1 %v12323_v9 }
 0x353   :  { %6404 = vmatpush1.bf16.msra.mxu1 %v12324_v5  ;;  %4812 = vmatprep.mubr.bf16.mxu0 %v12325_v12 }
 0x354   :  { %5658 = vmatprep.mubr.bf16.mxu1 %v12325_v12  ;;  %6405 = vmatprep.subr.bf16.mxu1 %v12326_v8 }
 0x357   :  { %6406 = vmatpush1.bf16.msra.mxu1 %v12327_v13 }
 0x358   :  { %6407 = vmatprep.subr.bf16.mxu1 %v11384_v57  ;;  %v12341_v57 = vld [vmem:[#allocation47_spill] sm:$0xff] }
 0x35a   :  { %4813 = vmatmul.mubr.bf16.gmra.mrb[92].mxu0 %v12328_v38  ;;  %5659 = vmatmul.mubr.bf16.gmra.mrb[92].mxu1 %v12328_v38 }
 0x35b   :  { %6408 = vmatpush1.bf16.msra.mxu1 %v11380_v16  ;;  %4822 = vmatprep.mubr.bf16.mxu0 %v12329_v6  ;;  %v11520_v16 = vrot.slane %v4185_v19, %v12342_v27 }
 0x35c   :  { %5668 = vmatprep.mubr.bf16.mxu1 %v12329_v6  ;;  %6409 = vmatprep.subr.bf16.mxu1 %v11404_v37 }
 0x35f   :  { %6410 = vmatpush1.bf16.msra.mxu1 %v11400_v59 }
 0x362   :  { %4823 = vmatmul.mubr.bf16.gmra.mrb[96].mxu0 %v12330_v20  ;;  %5669 = vmatmul.mubr.bf16.gmra.mrb[96].mxu1 %v12330_v20 }
 0x363   :  { %4832 = vmatprep.mubr.bf16.mxu0 %v12331_v22  ;;  %5678 = vmatprep.mubr.bf16.mxu1 %v12331_v22 }
 0x36a   :  { %4833 = vmatmul.mubr.bf16.gmra.mrb[100].mxu0 %v12332_v60  ;;  %5679 = vmatmul.mubr.bf16.gmra.mrb[100].mxu1 %v12332_v60 }
 0x36b   :  { %4842 = vmatprep.mubr.bf16.mxu0 %v12333_v62  ;;  %5688 = vmatprep.mubr.bf16.mxu1 %v12333_v62 }
 0x372   :  { %4843 = vmatmul.mubr.bf16.gmra.mrb[104].mxu0 %v12334_v50  ;;  %5689 = vmatmul.mubr.bf16.gmra.mrb[104].mxu1 %v12334_v50 }
 0x373   :  { %4852 = vmatprep.mubr.bf16.mxu0 %v12335_v52  ;;  %5698 = vmatprep.mubr.bf16.mxu1 %v12335_v52 }
 0x37a   :  { %4853 = vmatmul.mubr.bf16.gmra.mrb[108].mxu0 %v12336_v44  ;;  %5699 = vmatmul.mubr.bf16.gmra.mrb[108].mxu1 %v12336_v44 }
 0x37b   :  { %4862 = vmatprep.mubr.bf16.mxu0 %v12337_v46  ;;  %5708 = vmatprep.mubr.bf16.mxu1 %v12337_v46 }
 0x382   :  { %4863 = vmatmul.mubr.bf16.gmra.mrb[112].mxu0 %v12338_v42  ;;  %5709 = vmatmul.mubr.bf16.gmra.mrb[112].mxu1 %v12338_v42 }
 0x383   :  { %4872 = vmatprep.mubr.bf16.mxu0 %v12339_v48  ;;  %5718 = vmatprep.mubr.bf16.mxu1 %v12339_v48 }
 0x38a   :  { %4873 = vmatmul.mubr.bf16.gmra.mrb[116].mxu0 %v12340_v56  ;;  %5719 = vmatmul.mubr.bf16.gmra.mrb[116].mxu1 %v12340_v56 }
 0x38b   :  { %4882 = vmatprep.mubr.bf16.mxu0 %v11386_v7  ;;  %5728 = vmatprep.mubr.bf16.mxu1 %v11386_v7 }
 0x392   :  { %4883 = vmatmul.mubr.bf16.gmra.mrb[120].mxu0 %v12341_v57  ;;  %5729 = vmatmul.mubr.bf16.gmra.mrb[120].mxu1 %v12341_v57 }
 0x393   :  { %4892 = vmatprep.mubr.bf16.mxu0 %v11406_v15  ;;  %5738 = vmatprep.mubr.bf16.mxu1 %v11406_v15 }
 0x39a   :  { %4893 = vmatmul.mubr.bf16.gmra.mrb[124].mxu0 %v11402_v11  ;;  %5739 = vmatmul.mubr.bf16.gmra.mrb[124].mxu1 %v11402_v11 }
 0x3f5   :  { %v4744_v55 = vpop.f32.mrb[64].mxu0  ;;  %v5590_v40 = vpop.f32.mrb[64].mxu1 }
 0x3f6   :  { %v7783_v31 = vadd.f32 %v5590_v40, %v11511_v30  ;;  %v4746_v14 = vpop.f32.mrb[65].mxu0  ;;  %v5592_v36 = vpop.f32.mrb[65].mxu1  ;;  %v7719_v29 = vadd.f32 %v4744_v55, %v11520_v16 }
 0x3f7   :  { %v7784_v35 = vadd.f32 %v5592_v36, %v11517_v34  ;;  %v4748_v54 = vpop.f32.mrb[66].mxu0  ;;  %v5594_v32 = vpop.f32.mrb[66].mxu1  ;;  %v7720_v18 = vadd.f32 %v4746_v14, %v11525_v1 }
 0x3f8   :  { %v7445_v4 = vmul.f32 -1.442695, %v7783_v31  ;;  %v7785_v25 = vadd.f32 %v5594_v32, %v11511_v30  ;;  %v4750_v17 = vpop.f32.mrb[67].mxu0  ;;  %v5596_v28 = vpop.f32.mrb[67].mxu1  ;;  %v7721_v10 = vadd.f32 %v4748_v54, %v11520_v16 }
 0x3f9   :  { %v7446_v2 = vmul.f32 -1.442695, %v7784_v35  ;;  %v7786_v3 = vadd.f32 %v5596_v28, %v11517_v34  ;;  %v7722_v40 = vadd.f32 %v4750_v17, %v11525_v1 }
 0x3fa   :  { %8976 = vpow2.f32 %v7445_v4  ;;  %v7447_v26 = vmul.f32 -1.442695, %v7785_v25 }
 0x3fb   :  { %8978 = vpow2.f32 %v7446_v2  ;;  %v7448_v24 = vmul.f32 -1.442695, %v7786_v3 }
 0x3fc   :  { %8980 = vpow2.f32 %v7447_v26 }
 0x3fd   :  { %v4754_v59 = vpop.f32.mrb[68].mxu0  ;;  %v5600_v37 = vpop.f32.mrb[68].mxu1  ;;  %8982 = vtanh.f32 %v7719_v29 }
 0x3fe   :  { %v7787_v5 = vadd.f32 %v5600_v37, %v11511_v30  ;;  %v4756_v8 = vpop.f32.mrb[69].mxu0  ;;  %v5602_v13 = vpop.f32.mrb[69].mxu1  ;;  %8984 = vpow2.f32 %v7448_v24  ;;  %v7723_v4 = vadd.f32 %v4754_v59, %v11520_v16 }
 0x3ff   :  { %v7788_v0 = vadd.f32 %v5602_v13, %v11517_v34  ;;  %v4758_v19 = vpop.f32.mrb[70].mxu0  ;;  %v5604_v55 = vpop.f32.mrb[70].mxu1  ;;  %8986 = vtanh.f32 %v7720_v18 }
 0x400   :  { %v7449_v31 = vmul.f32 -1.442695, %v7787_v5  ;;  %v7789_v14 = vadd.f32 %v5604_v55, %v11511_v30  ;;  %v11536_v36 = vpop.f32.mrb[71].mxu0  ;;  %v5606_v35 = vpop.f32.mrb[71].mxu1  ;;  %8988 = vtanh.f32 %v7721_v10  ;;  %v7724_v5 = vadd.f32 %v4756_v8, %v11525_v1 }
 0x401   :  { %v7450_v54 = vmul.f32 -1.442695, %v7788_v0  ;;  %v7790_v32 = vadd.f32 %v5606_v35, %v11517_v34 }
 0x402   :  { %8990 = vpow2.f32 %v7449_v31  ;;  %v7451_v25 = vmul.f32 -1.442695, %v7789_v14 }
 0x403   :  { %8992 = vpow2.f32 %v7450_v54  ;;  %v7452_v17 = vmul.f32 -1.442695, %v7790_v32 }
 0x404   :  { %v8977_v28 = vpop.eup %8976  ;;  %8994 = vtanh.f32 %v7722_v40 }
 0x405   :  { %v8979_v2 = vpop.eup %8978  ;;  %v5941_v3 = vadd.f32 1.0, %v8977_v28  ;;  %8996 = vpow2.f32 %v7451_v25  ;;  %v11540_v29 = vpop.f32.mrb[72].mxu0  ;;  %v7725_v28 = vadd.f32 %v4758_v19, %v11520_v16 }
 0x406   :  { %v5610_v26 = vpop.f32.mrb[72].mxu1  ;;  %v5942_v24 = vadd.f32 1.0, %v8979_v2  ;;  %8998 = vtanh.f32 %v7723_v4  ;;  %v11543_v10 = vpop.f32.mrb[73].mxu0 }
 0x407   :  { %v7791_v18 = vadd.f32 %v5610_v26, %v11511_v30  ;;  %v5612_v37 = vpop.f32.mrb[73].mxu1  ;;  %v8981_v59 = vpop.eup %8980  ;;  %9000 = vrcp.f32 %v5941_v3 }
 0x408   :  { %v11546_v13 = vpop.f32.mrb[74].mxu0  ;;  %v5614_v0 = vpop.f32.mrb[74].mxu1  ;;  %9002 = vrcp.f32 %v5942_v24  ;;  %v5943_v40 = vadd.f32 1.0, %v8981_v59  ;;  %v7792_v32 = vadd.f32 %v5612_v37, %v11517_v34 }
 0x409   :  { %v8983_v55 = vpop.eup %8982  ;;  %v11548_v31 = vpop.f32.mrb[75].mxu0  ;;  %9004 = vpow2.f32 %v7452_v17  ;;  %v7453_v54 = vmul.f32 -1.442695, %v7791_v18  ;;  %v7793_v3 = vadd.f32 %v5614_v0, %v11511_v30  ;;  %v7729_v50 = vadd.f32 %v11546_v13, %v11520_v16 }
 0x40a   :  { %v5616_v14 = vpop.f32.mrb[75].mxu1  ;;  %v8985_v35 = vpop.eup %8984  ;;  %9006 = vrcp.f32 %v5943_v40  ;;  %v7454_v59 = vmul.f32 -1.442695, %v7792_v32  ;;  %v7730_v22 = vadd.f32 %v11548_v31, %v11525_v1 }
 0x40b   :  { %v8987_v4 = vpop.eup %8986  ;;  %v5944_v25 = vadd.f32 1.0, %v8985_v35  ;;  %9008 = vtanh.f32 %v7724_v5  ;;  %v7794_v5 = vadd.f32 %v5616_v14, %v11517_v34  ;;  %v7455_v32 = vmul.f32 -1.442695, %v7793_v3 }
 0x40c   :  { %v8989_v8 = vpop.eup %8988  ;;  %v7727_v3 = vadd.f32 %v11540_v29, %v11520_v16 }
 0x40d   :  { %v8991_v2 = vpop.eup %8990  ;;  %9010 = vrcp.f32 %v5944_v25  ;;  %v11553_v11 = vpop.f32.mrb[76].mxu0  ;;  %v7456_v48 = vmul.f32 -1.442695, %v7794_v5 }
 0x40e   :  { %v8993_v26 = vpop.eup %8992  ;;  %v5945_v24 = vadd.f32 1.0, %v8991_v2  ;;  %9012 = vpow2.f32 %v7453_v54  ;;  %v5620_v17 = vpop.f32.mrb[76].mxu1  ;;  %v7731_v31 = vadd.f32 %v11553_v11, %v11520_v16 }
 0x40f   :  { %v8995_v18 = vpop.eup %8994  ;;  %v5946_v37 = vadd.f32 1.0, %v8993_v26  ;;  %9014 = vtanh.f32 %v7725_v28  ;;  %v11555_v40 = vpop.f32.mrb[77].mxu0  ;;  %v7726_v28 = vadd.f32 %v11536_v36, %v11525_v1  ;;  %v7795_v26 = vadd.f32 %v5620_v17, %v11511_v30 }
 0x410   :  { %v5622_v35 = vpop.f32.mrb[77].mxu1  ;;  %v8997_v19 = vpop.eup %8996  ;;  %9016 = vrcp.f32 %v5945_v24 }
 0x411   :  { %v11558_v25 = vpop.f32.mrb[78].mxu0  ;;  %v5624_v0 = vpop.f32.mrb[78].mxu1  ;;  %9018 = vrcp.f32 %v5946_v37  ;;  %v5947_v54 = vadd.f32 1.0, %v8997_v19  ;;  %v7796_v19 = vadd.f32 %v5622_v35, %v11517_v34  ;;  %v7457_v36 = vmul.f32 -1.442695, %v7795_v26 }
 0x412   :  { %v8999_v15 = vpop.eup %8998  ;;  %v11560_v2 = vpop.f32.mrb[79].mxu0  ;;  %9020 = vpow2.f32 %v7454_v59  ;;  %v7797_v29 = vadd.f32 %v5624_v0, %v11511_v30 }
 0x413   :  { %v5626_v57 = vpop.f32.mrb[79].mxu1  ;;  %v9001_v7 = vpop.eup %9000  ;;  %9022 = vrcp.f32 %v5947_v54 }
 0x414   :  { %v9003_v24 = vpop.eup %9002  ;;  %v6133_v14 = vmul.f32 %v9001_v7, %v8983_v55  ;;  %9024 = vpow2.f32 %v7455_v32 }
 0x415   :  { %v9005_v56 = vpop.eup %9004  ;;  %v6134_v42 = vmul.f32 %v9003_v24, %v8987_v4  ;;  %9026 = vtanh.f32 %v7726_v28  ;;  %v11568_v59 = vpop.f32.mrb[80].mxu0 }
 0x416   :  { %v9007_v46 = vpop.eup %9006  ;;  %v5948_v37 = vadd.f32 1.0, %v9005_v56  ;;  %v5630_v17 = vpop.f32.mrb[80].mxu1  ;;  %v7728_v56 = vadd.f32 %v11543_v10, %v11525_v1  ;;  %v7798_v10 = vadd.f32 %v5626_v57, %v11517_v34 }
 0x417   :  { %v9009_v44 = vpop.eup %9008  ;;  %v6135_v52 = vmul.f32 %v9007_v46, %v8989_v8  ;;  %v11570_v7 = vpop.f32.mrb[81].mxu0  ;;  %v7458_v46 = vmul.f32 -1.442695, %v7796_v19  ;;  %v7799_v13 = vadd.f32 %v5630_v17, %v11511_v30 }
 0x418   :  { %v9011_v54 = vpop.eup %9010  ;;  %9028 = vrcp.f32 %v5948_v37  ;;  %v5632_v55 = vpop.f32.mrb[81].mxu1 }
 0x419   :  { %v9013_v4 = vpop.eup %9012  ;;  %9030 = vpow2.f32 %v7456_v48  ;;  %v11575_v35 = vpop.f32.mrb[82].mxu0  ;;  %v6136_v32 = vmul.f32 %v9011_v54, %v8995_v18  ;;  %v6197_v62 = vpack.c.bf16 %v6135_v52, %v6133_v14  ;;  %v7460_v14 = vmul.f32 -1.442695, %v7798_v10 }
 0x41a   :  { %v5634_v5 = vpop.f32.mrb[82].mxu1  ;;  %v9015_v28 = vpop.eup %9014  ;;  %9032 = vtanh.f32 %v7727_v3  ;;  %v5949_v26 = vadd.f32 1.0, %v9013_v4  ;;  %v7459_v3 = vmul.f32 -1.442695, %v7797_v29 }
 0x41b   :  { %v11577_v8 = vpop.f32.mrb[83].mxu0  ;;  %v11579_v24 = vpop.f32.mrb[83].mxu1  ;;  %9034 = vpow2.f32 %v7457_v36  ;;  %v6198_v0 = vpack.c.bf16 %v6136_v32, %v6134_v42  ;;  %v7800_v32 = vadd.f32 %v5632_v55, %v11517_v34 }
 0x41c   :  { %v9017_v37 = vpop.eup %9016  ;;  %9036 = vrcp.f32 %v5949_v26 }
 0x41d   :  { %v9019_v48 = vpop.eup %9018  ;;  %9038 = vtanh.f32 %v7728_v56  ;;  %v6137_v19 = vmul.f32 %v9017_v37, %v8999_v15  ;;  %6253 = vmatprep.subr.bf16.mxu0 %v6198_v0  ;;  %v11587_v36 = vpop.f32.mrb[84].mxu0  ;;  %v7732_v0 = vadd.f32 %v11555_v40, %v11525_v1  ;;  %v7733_v40 = vadd.f32 %v11558_v25, %v11520_v16 }
 0x41e   :  { %v9021_v18 = vpop.eup %9020  ;;  %v6138_v54 = vmul.f32 %v9019_v48, %v9009_v44  ;;  %9040 = vpow2.f32 %v7458_v46  ;;  %6254 = vmatpush1.bf16.xpose.msra.mxu0 %v6197_v62  ;;  %v5640_v42 = vpop.f32.mrb[84].mxu1  ;;  %v7461_v46 = vmul.f32 -1.442695, %v7799_v13 }
 0x41f   :  { %v9023_v4 = vpop.eup %9022  ;;  %v5950_v60 = vadd.f32 1.0, %v9021_v18  ;;  %9042 = vtanh.f32 %v7729_v50  ;;  %v11589_v44 = vpop.f32.mrb[85].mxu0 }
 0x420   :  { %v6139_v52 = vmul.f32 %v9023_v4, %v9015_v28  ;;  %v9025_v57 = vpop.eup %9024  ;;  %v11591_v15 = vpop.f32.mrb[85].mxu1  ;;  %v7462_v4 = vmul.f32 -1.442695, %v7800_v32 }
 0x421   :  { %9044 = vrcp.f32 %v5950_v60  ;;  %v9027_v56 = vpop.eup %9026  ;;  %v5951_v29 = vadd.f32 1.0, %v9025_v57  ;;  %v11595_v50 = vpop.f32.mrb[86].mxu0 }
 0x422   :  { %9046 = vpow2.f32 %v7459_v3  ;;  %v11597_v62 = vpop.f32.mrb[86].mxu1  ;;  %v9029_v17 = vpop.eup %9028  ;;  %v6199_v18 = vpack.c.bf16 %v6139_v52, %v6137_v19 }
 0x423   :  { %9048 = vtanh.f32 %v7730_v22  ;;  %v11600_v60 = vpop.f32.mrb[87].mxu0  ;;  %v11602_v28 = vpop.f32.mrb[87].mxu1  ;;  %v6140_v11 = vmul.f32 %v9029_v17, %v9027_v56  ;;  %v7801_v22 = vadd.f32 %v5634_v5, %v11511_v30  ;;  %v7802_v5 = vadd.f32 %v11579_v24, %v11517_v34 }
 0x424   :  { %v9031_v26 = vpop.eup %9030  ;;  %9050 = vrcp.f32 %v5951_v29 }
 0x425   :  { %v9033_v37 = vpop.eup %9032  ;;  %v5952_v48 = vadd.f32 1.0, %v9031_v26  ;;  %9052 = vpow2.f32 %v7460_v14  ;;  %v6200_v57 = vpack.c.bf16 %v6140_v11, %v6138_v54  ;;  %v11607_v13 = vpop.f32.mrb[88].mxu0  ;;  %v7463_v17 = vmul.f32 -1.442695, %v7801_v22 }
 0x426   :  { %v9035_v10 = vpop.eup %9034  ;;  %9054 = vtanh.f32 %v7731_v31  ;;  %v11609_v29 = vpop.f32.mrb[88].mxu1  ;;  %v7803_v11 = vadd.f32 %v5640_v42, %v11511_v30  ;;  %v7464_v22 = vmul.f32 -1.442695, %v7802_v5 }
 0x427   :  { %v9037_v55 = vpop.eup %9036  ;;  %9056 = vrcp.f32 %v5952_v48  ;;  %v5953_v3 = vadd.f32 1.0, %v9035_v10  ;;  %6255 = vmatprep.subr.bf16.mxu0 %v6200_v57  ;;  %v11617_v19 = vpop.f32.mrb[89].mxu0  ;;  %v7734_v48 = vadd.f32 %v11560_v2, %v11525_v1  ;;  %v7804_v57 = vadd.f32 %v11591_v15, %v11517_v34 }
 0x428   :  { %v9039_v20 = vpop.eup %9038  ;;  %9058 = vpow2.f32 %v7461_v46  ;;  %v11611_v14 = vmul.f32 %v9037_v55, %v9033_v37  ;;  %v11619_v54 = vpop.f32.mrb[89].mxu1  ;;  %6256 = vmatpush1.bf16.xpose.msra.mxu0 %v6199_v18  ;;  %v7465_v42 = vmul.f32 -1.442695, %v7803_v11  ;;  %v7736_v15 = vadd.f32 %v11570_v7, %v11525_v1 }
 0x429   :  { %v9041_v56 = vpop.eup %9040  ;;  %9060 = vrcp.f32 %v5953_v3  ;;  %v11621_v32 = vpop.f32.mrb[90].mxu0 }
 0x42a   :  { %v9043_v52 = vpop.eup %9042  ;;  %9062 = vtanh.f32 %v7732_v0  ;;  %v5954_v31 = vadd.f32 1.0, %v9041_v56  ;;  %v11623_v26 = vpop.f32.mrb[90].mxu1 }
 0x42b   :  { %v9045_v46 = vpop.eup %9044  ;;  %9064 = vpow2.f32 %v7462_v4  ;;  %v11625_v25 = vpop.f32.mrb[91].mxu0  ;;  %v7735_v4 = vadd.f32 %v11568_v59, %v11520_v16 }
 0x42c   :  { %v11627_v37 = vpop.f32.mrb[91].mxu1  ;;  %v9047_v24 = vpop.eup %9046  ;;  %9066 = vrcp.f32 %v5954_v31  ;;  %v6142_v18 = vmul.f32 %v9045_v46, %v9039_v20 }
 0x42d   :  { %v9049_v10 = vpop.eup %9048  ;;  %9068 = vtanh.f32 %v7733_v40  ;;  %v5955_v0 = vadd.f32 1.0, %v9047_v24  ;;  %v11636_v6 = vpop.f32.mrb[92].mxu0 }
 0x42e   :  { %v9051_v55 = vpop.eup %9050  ;;  %9070 = vpow2.f32 %v7463_v17  ;;  %v11638_v40 = vpop.f32.mrb[92].mxu1 }
 0x42f   :  { %v9053_v3 = vpop.eup %9052  ;;  %9072 = vrcp.f32 %v5955_v0  ;;  %v6143_v56 = vmul.f32 %v9051_v55, %v9043_v52  ;;  %v11641_v17 = vpop.f32.mrb[93].mxu0  ;;  %v7805_v52 = vadd.f32 %v11597_v62, %v11511_v30  ;;  %v7737_v62 = vadd.f32 %v11575_v35, %v11520_v16 }
 0x430   :  { %v9055_v31 = vpop.eup %9054  ;;  %9074 = vtanh.f32 %v7734_v48  ;;  %v5956_v2 = vadd.f32 1.0, %v9053_v3  ;;  %v11643_v46 = vpop.f32.mrb[93].mxu1  ;;  %v7807_v35 = vadd.f32 %v11609_v29, %v11511_v30 }
 0x431   :  { %v9057_v20 = vpop.eup %9056  ;;  %9076 = vpow2.f32 %v7464_v22  ;;  %v6201_v5 = vpack.c.bf16 %v6143_v56, %v11611_v14  ;;  %v11649_v48 = vpop.f32.mrb[94].mxu0  ;;  %v7466_v22 = vmul.f32 -1.442695, %v7804_v57 }
 0x432   :  { %v9059_v59 = vpop.eup %9058  ;;  %9078 = vrcp.f32 %v5956_v2  ;;  %v6144_v24 = vmul.f32 %v9057_v20, %v9049_v10  ;;  %v11651_v11 = vpop.f32.mrb[94].mxu1  ;;  %v7806_v10 = vadd.f32 %v11602_v28, %v11517_v34 }
 0x433   :  { %v9061_v0 = vpop.eup %9060  ;;  %9080 = vtanh.f32 %v7735_v4  ;;  %v5957_v14 = vadd.f32 1.0, %v9059_v59  ;;  %v11653_v55 = vpop.f32.mrb[95].mxu0  ;;  %v7467_v59 = vmul.f32 -1.442695, %v7805_v52 }
 0x434   :  { %v11655_v3 = vpop.f32.mrb[95].mxu1  ;;  %v9063_v56 = vpop.eup %9062  ;;  %9082 = vpow2.f32 %v7465_v42  ;;  %v6202_v2 = vpack.c.bf16 %v6144_v24, %v6142_v18  ;;  %v11661_v20 = vmul.f32 %v9061_v0, %v9055_v31  ;;  %v7738_v24 = vadd.f32 %v11577_v8, %v11525_v1 }
 0x435   :  { %v9065_v7 = vpop.eup %9064  ;;  %9084 = vrcp.f32 %v5957_v14  ;;  %v11667_v28 = vpop.f32.mrb[96].mxu0  ;;  %v7468_v0 = vmul.f32 -1.442695, %v7806_v10  ;;  %v7814_v47 = vadd.f32 %v11655_v3, %v11517_v34 }
 0x436   :  { %v9067_v4 = vpop.eup %9066  ;;  %9086 = vtanh.f32 %v7736_v15  ;;  %v5958_v57 = vadd.f32 1.0, %v9065_v7  ;;  %6257 = vmatprep.subr.bf16.mxu0 %v6202_v2  ;;  %v11669_v31 = vpop.f32.mrb[96].mxu1  ;;  %v7739_v7 = vadd.f32 %v11587_v36, %v11520_v16  ;;  %v7740_v36 = vadd.f32 %v11589_v44, %v11525_v1 }
 0x437   :  { %v9069_v38 = vpop.eup %9068  ;;  %9088 = vpow2.f32 %v7466_v22  ;;  %6258 = vmatpush1.bf16.xpose.msra.mxu0 %v6201_v5  ;;  %v6146_v42 = vmul.f32 %v9067_v4, %v9063_v56  ;;  %v11671_v14 = vpop.f32.mrb[97].mxu0  ;;  %v7741_v44 = vadd.f32 %v11595_v50, %v11520_v16 }
 0x438   :  { %v9071_v18 = vpop.eup %9070  ;;  %9090 = vrcp.f32 %v5958_v57  ;;  %v11673_v5 = vpop.f32.mrb[97].mxu1 }
 0x439   :  { %v9073_v15 = vpop.eup %9072  ;;  %9092 = vtanh.f32 %v7737_v62  ;;  %v5959_v52 = vadd.f32 1.0, %v9071_v18  ;;  %v11675_v2 = vpop.f32.mrb[98].mxu0  ;;  %v7808_v62 = vadd.f32 %v11619_v54, %v11517_v34  ;;  %v7809_v54 = vadd.f32 %v11623_v26, %v11511_v30 }
 0x43a   :  { %v9075_v22 = vpop.eup %9074  ;;  %9094 = vpow2.f32 %v7467_v59  ;;  %v6147_v56 = vmul.f32 %v9073_v15, %v9069_v38  ;;  %v11677_v8 = vpop.f32.mrb[98].mxu1  ;;  %v7469_v38 = vmul.f32 -1.442695, %v7807_v35  ;;  %v7810_v26 = vadd.f32 %v11627_v37, %v11517_v34 }
 0x43b   :  { %v9077_v29 = vpop.eup %9076  ;;  %9096 = vrcp.f32 %v5959_v52  ;;  %v11683_v10 = vpop.f32.mrb[99].mxu0  ;;  %v7470_v43 = vmul.f32 -1.442695, %v7808_v62  ;;  %v7817_v61 = vadd.f32 %v11677_v8, %v11511_v30  ;;  %v7749_v8 = vadd.f32 %v11649_v48, %v11520_v16 }
 0x43c   :  { %v11685_v4 = vpop.f32.mrb[99].mxu1  ;;  %v9079_v57 = vpop.eup %9078  ;;  %9098 = vtanh.f32 %v7738_v24  ;;  %v5960_v59 = vadd.f32 1.0, %v9077_v29  ;;  %v6203_v18 = vpack.c.bf16 %v6147_v56, %v11661_v20 }
 0x43d   :  { %v9081_v15 = vpop.eup %9080  ;;  %9100 = vpow2.f32 %v7468_v0  ;;  %v6148_v12 = vmul.f32 %v9079_v57, %v9075_v22  ;;  %v11694_v20 = vpop.f32.mrb[100].mxu0 }
 0x43e   :  { %v9083_v52 = vpop.eup %9082  ;;  %9102 = vrcp.f32 %v5960_v59  ;;  %v11696_v0 = vpop.f32.mrb[100].mxu1 }
 0x43f   :  { %v9085_v9 = vpop.eup %9084  ;;  %9104 = vtanh.f32 %v7739_v7  ;;  %v5961_v58 = vadd.f32 1.0, %v9083_v52  ;;  %v6204_v24 = vpack.c.bf16 %v6148_v12, %v6146_v42  ;;  %v11702_v56 = vpop.f32.mrb[101].mxu0  ;;  %v7471_v7 = vmul.f32 -1.442695, %v7809_v54 }
 0x440   :  { %v9087_v29 = vpop.eup %9086  ;;  %9106 = vpow2.f32 %v7469_v38  ;;  %v11692_v35 = vmul.f32 %v9085_v9, %v9081_v15  ;;  %v11704_v12 = vpop.f32.mrb[101].mxu1  ;;  %v7742_v15 = vadd.f32 %v11600_v60, %v11525_v1  ;;  %v7811_v52 = vadd.f32 %v11638_v40, %v11511_v30 }
 0x441   :  { %v9089_v22 = vpop.eup %9088  ;;  %9108 = vrcp.f32 %v5961_v58  ;;  %6259 = vmatprep.subr.bf16.mxu0 %v6204_v24  ;;  %v11706_v62 = vpop.f32.mrb[102].mxu0  ;;  %v7472_v54 = vmul.f32 -1.442695, %v7810_v26 }
 0x442   :  { %v9091_v42 = vpop.eup %9090  ;;  %9110 = vtanh.f32 %v7740_v36  ;;  %v5962_v9 = vadd.f32 1.0, %v9089_v22  ;;  %6260 = vmatpush1.bf16.xpose.msra.mxu0 %v6203_v18  ;;  %v11708_v57 = vpop.f32.mrb[102].mxu1  ;;  %v7743_v22 = vadd.f32 %v11607_v13, %v11520_v16  ;;  %v7473_v49 = vmul.f32 -1.442695, %v7811_v52 }
 0x443   :  { %v9093_v58 = vpop.eup %9092  ;;  %9112 = vpow2.f32 %v7470_v43  ;;  %v6150_v50 = vmul.f32 %v9091_v42, %v9087_v29  ;;  %v11710_v59 = vpop.f32.mrb[103].mxu0  ;;  %v7812_v42 = vadd.f32 %v11643_v46, %v11517_v34  ;;  %v7744_v46 = vadd.f32 %v11617_v19, %v11525_v1 }
 0x444   :  { %v11712_v37 = vpop.f32.mrb[103].mxu1  ;;  %v9095_v38 = vpop.eup %9094  ;;  %9114 = vrcp.f32 %v5962_v9 }
 0x445   :  { %v9097_v18 = vpop.eup %9096  ;;  %9116 = vtanh.f32 %v7741_v44  ;;  %v5963_v36 = vadd.f32 1.0, %v9095_v38  ;;  %v11723_v44 = vpop.f32.mrb[104].mxu0  ;;  %v7822_v41 = vadd.f32 %v11712_v37, %v11517_v34 }
 0x446   :  { %v9099_v24 = vpop.eup %9098  ;;  %9118 = vpow2.f32 %v7471_v7  ;;  %v6151_v43 = vmul.f32 %v9097_v18, %v9093_v58  ;;  %v11725_v26 = vpop.f32.mrb[104].mxu1 }
 0x447   :  { %v9101_v29 = vpop.eup %9100  ;;  %9120 = vrcp.f32 %v5963_v36  ;;  %v11727_v38 = vpop.f32.mrb[105].mxu0 }
 0x448   :  { %v9103_v9 = vpop.eup %9102  ;;  %9122 = vtanh.f32 %v7742_v15  ;;  %v5964_v60 = vadd.f32 1.0, %v9101_v29  ;;  %v6205_v40 = vpack.c.bf16 %v6151_v43, %v11692_v35  ;;  %v11729_v18 = vpop.f32.mrb[105].mxu1  ;;  %v7813_v15 = vadd.f32 %v11651_v11, %v11511_v30 }
 0x449   :  { %v9105_v7 = vpop.eup %9104  ;;  %9124 = vpow2.f32 %v7472_v54  ;;  %v6152_v58 = vmul.f32 %v9103_v9, %v9099_v24  ;;  %v11735_v35 = vpop.f32.mrb[106].mxu0  ;;  %v7474_v24 = vmul.f32 -1.442695, %v7812_v42  ;;  %v7745_v11 = vadd.f32 %v11621_v32, %v11520_v16 }
 0x44a   :  { %v9107_v13 = vpop.eup %9106  ;;  %9126 = vrcp.f32 %v5964_v60  ;;  %v11737_v52 = vpop.f32.mrb[106].mxu1  ;;  %v7475_v42 = vmul.f32 -1.442695, %v7813_v15  ;;  %v7815_v32 = vadd.f32 %v11669_v31, %v11511_v30  ;;  %v7476_v15 = vmul.f32 -1.442695, %v7814_v47 }
 0x44b   :  { %v9109_v36 = vpop.eup %9108  ;;  %9128 = vtanh.f32 %v7743_v22  ;;  %v5965_v54 = vadd.f32 1.0, %v9107_v13  ;;  %v6206_v43 = vpack.c.bf16 %v6152_v58, %v6150_v50  ;;  %v11739_v29 = vpop.f32.mrb[107].mxu0 }
 0x44c   :  { %v11741_v9 = vpop.f32.mrb[107].mxu1  ;;  %v9111_v60 = vpop.eup %9110  ;;  %9130 = vpow2.f32 %v7473_v49  ;;  %v11743_v45 = vmul.f32 %v9109_v36, %v9105_v7  ;;  %v7746_v7 = vadd.f32 %v11625_v25, %v11525_v1 }
 0x44d   :  { %v9113_v19 = vpop.eup %9112  ;;  %9132 = vrcp.f32 %v5965_v54  ;;  %6261 = vmatprep.subr.bf16.mxu0 %v6206_v43  ;;  %v11753_v36 = vpop.f32.mrb[108].mxu0 }
 0x44e   :  { %v9115_v22 = vpop.eup %9114  ;;  %9134 = vtanh.f32 %v7744_v46  ;;  %v5966_v50 = vadd.f32 1.0, %v9113_v19  ;;  %6262 = vmatpush1.bf16.xpose.msra.mxu0 %v6205_v40  ;;  %v11755_v3 = vpop.f32.mrb[108].mxu1 }
 0x44f   :  { %v9117_v58 = vpop.eup %9116  ;;  %9136 = vpow2.f32 %v7474_v24  ;;  %v6154_v13 = vmul.f32 %v9115_v22, %v9111_v60  ;;  %v11757_v40 = vpop.f32.mrb[109].mxu0  ;;  %v7747_v22 = vadd.f32 %v11636_v6, %v11520_v16 }
 0x450   :  { %v9119_v49 = vpop.eup %9118  ;;  %9138 = vrcp.f32 %v5966_v50  ;;  %v11759_v24 = vpop.f32.mrb[109].mxu1 }
 0x451   :  { %v9121_v54 = vpop.eup %9120  ;;  %9140 = vtanh.f32 %v7745_v11  ;;  %v5967_v46 = vadd.f32 1.0, %v9119_v49  ;;  %v11761_v19 = vpop.f32.mrb[110].mxu0  ;;  %v7816_v11 = vadd.f32 %v11673_v5, %v11517_v34  ;;  %v7748_v5 = vadd.f32 %v11641_v17, %v11525_v1 }
 0x452   :  { %v9123_v43 = vpop.eup %9122  ;;  %9142 = vpow2.f32 %v7475_v42  ;;  %v6155_v60 = vmul.f32 %v9121_v54, %v9117_v58  ;;  %v11763_v25 = vpop.f32.mrb[110].mxu1  ;;  %v11776_v42 = vld [vmem:[%s12213_s7] sm:$0x3]  ;;  %v7477_v54 = vmul.f32 -1.442695, %v7815_v32 }
 0x453   :  { %v9125_v31 = vpop.eup %9124  ;;  %9144 = vrcp.f32 %v5967_v46  ;;  %v11769_v47 = vpop.f32.mrb[111].mxu0  ;;  %12344 = vst [vmem:[#allocation40_spill] sm:$0xff] %v11776_v42  ;;  %v6238_v63 = vrot.slane %v11776_v42, %v12343_v33  ;;  %v7478_v32 = vmul.f32 -1.442695, %v7816_v11  ;;  %v7479_v11 = vmul.f32 -1.442695, %v7817_v61 }
 0x454   :  { %v11771_v50 = vpop.f32.mrb[111].mxu1  ;;  %v9127_v58 = vpop.eup %9126  ;;  %9146 = vtanh.f32 %v7746_v7  ;;  %v5968_v49 = vadd.f32 1.0, %v9125_v31  ;;  %v6207_v46 = vpack.c.bf16 %v6155_v60, %v11743_v45  ;;  %v7819_v61 = vadd.f32 %v11696_v0, %v11511_v30 }
 0x455   :  { %v9129_v51 = vpop.eup %9128  ;;  %9148 = vpow2.f32 %v7476_v15  ;;  %v6156_v6 = vmul.f32 %v9127_v58, %v9123_v43  ;;  %v11787_v43 = vpop.f32.mrb[112].mxu0  ;;  %v7818_v58 = vadd.f32 %v11685_v4, %v11517_v34 }
 0x456   :  { %v9131_v53 = vpop.eup %9130  ;;  %9150 = vrcp.f32 %v5968_v49  ;;  %v11789_v60 = vpop.f32.mrb[112].mxu1  ;;  %v7481_v23 = vmul.f32 -1.442695, %v7819_v61 }
 0x457   :  { %v9133_v21 = vpop.eup %9132  ;;  %9152 = vtanh.f32 %v7747_v22  ;;  %v5969_v7 = vadd.f32 1.0, %v9131_v53  ;;  %v6208_v31 = vpack.c.bf16 %v6156_v6, %v6154_v13  ;;  %v11795_v53 = vpop.f32.mrb[113].mxu0  ;;  %v6242_v22 = vpack.c.bf16 %v6238_v63, %v6238_v63 }
 0x458   :  { %v9135_v45 = vpop.eup %9134  ;;  %9154 = vpow2.f32 %v7477_v54  ;;  %v11785_v15 = vmul.f32 %v9133_v21, %v9129_v51  ;;  %v11797_v13 = vpop.f32.mrb[113].mxu1  ;;  %v7750_v63 = vadd.f32 %v11653_v55, %v11525_v1 }
 0x459   :  { %v9137_v17 = vpop.eup %9136  ;;  %9156 = vrcp.f32 %v5969_v7  ;;  %6263 = vmatprep.subr.bf16.mxu0 %v6208_v31  ;;  %v11799_v49 = vpop.f32.mrb[114].mxu0  ;;  %6285 = vmatprep.mubr.bf16.mxu0 %v6242_v22  ;;  %v7751_v22 = vadd.f32 %v11667_v28, %v11520_v16 }
 0x45a   :  { %v9139_v21 = vpop.eup %9138  ;;  %9158 = vtanh.f32 %v7748_v5  ;;  %v5970_v51 = vadd.f32 1.0, %v9137_v17  ;;  %6264 = vmatpush1.bf16.xpose.msra.mxu0 %v6207_v46  ;;  %v11801_v54 = vpop.f32.mrb[114].mxu1  ;;  %v7480_v17 = vmul.f32 -1.442695, %v7818_v58 }
 0x45b   :  { %v9141_v6 = vpop.eup %9140  ;;  %9160 = vpow2.f32 %v7478_v32  ;;  %v6158_v48 = vmul.f32 %v9139_v21, %v9135_v45  ;;  %v11803_v7 = vpop.f32.mrb[115].mxu0  ;;  %v7820_v21 = vadd.f32 %v11704_v12, %v11517_v34  ;;  %v7752_v12 = vadd.f32 %v11671_v14, %v11525_v1 }
 0x45c   :  { %v11805_v4 = vpop.f32.mrb[115].mxu1  ;;  %v9143_v31 = vpop.eup %9142  ;;  %9162 = vrcp.f32 %v5970_v51 }
 0x45d   :  { %v9145_v46 = vpop.eup %9144  ;;  %9164 = vtanh.f32 %v7749_v8  ;;  %v5971_v5 = vadd.f32 1.0, %v9143_v31  ;;  %v11816_v8 = vpop.f32.mrb[116].mxu0 }
 0x45e   :  { %v9147_v33 = vpop.eup %9146  ;;  %9166 = vpow2.f32 %v7479_v11  ;;  %v6159_v32 = vmul.f32 %v9145_v46, %v9141_v6  ;;  %v11818_v58 = vpop.f32.mrb[116].mxu1 }
 0x45f   :  { %v9149_v45 = vpop.eup %9148  ;;  %9168 = vrcp.f32 %v5971_v5  ;;  %v11820_v31 = vpop.f32.mrb[117].mxu0 }
 0x460   :  { %v9151_v51 = vpop.eup %9150  ;;  %9170 = vtanh.f32 %v7750_v63  ;;  %v5972_v55 = vadd.f32 1.0, %v9149_v45  ;;  %v6209_v0 = vpack.c.bf16 %v6159_v32, %v11785_v15  ;;  %v11822_v46 = vpop.f32.mrb[117].mxu1  ;;  %v7821_v63 = vadd.f32 %v11708_v57, %v11511_v30 }
 0x461   :  { %v9153_v11 = vpop.eup %9152  ;;  %9172 = vpow2.f32 %v7480_v17  ;;  %v6160_v6 = vmul.f32 %v9151_v51, %v9147_v33  ;;  %v11828_v15 = vpop.f32.mrb[118].mxu0  ;;  %v7482_v33 = vmul.f32 -1.442695, %v7820_v21  ;;  %v7753_v57 = vadd.f32 %v11675_v2, %v11520_v16 }
 0x462   :  { %v9155_v28 = vpop.eup %9154  ;;  %9174 = vrcp.f32 %v5972_v55  ;;  %v11830_v61 = vpop.f32.mrb[118].mxu1  ;;  %v7483_v21 = vmul.f32 -1.442695, %v7821_v63  ;;  %v7823_v2 = vadd.f32 %v11725_v26, %v11511_v30  ;;  %v7484_v63 = vmul.f32 -1.442695, %v7822_v41 }
 0x463   :  { %v9157_v5 = vpop.eup %9156  ;;  %9176 = vtanh.f32 %v7751_v22  ;;  %v5973_v17 = vadd.f32 1.0, %v9155_v28  ;;  %v6210_v32 = vpack.c.bf16 %v6160_v6, %v6158_v48  ;;  %v11832_v45 = vpop.f32.mrb[119].mxu0 }
 0x464   :  { %v11834_v51 = vpop.f32.mrb[119].mxu1  ;;  %v9159_v55 = vpop.eup %9158  ;;  %9178 = vpow2.f32 %v7481_v23  ;;  %v11836_v39 = vmul.f32 %v9157_v5, %v9153_v11  ;;  %v7754_v11 = vadd.f32 %v11683_v10, %v11525_v1 }
 0x465   :  { %v9161_v14 = vpop.eup %9160  ;;  %9180 = vrcp.f32 %v5973_v17  ;;  %6265 = vmatprep.subr.bf16.mxu0 %v6210_v32  ;;  %v11846_v5 = vpop.f32.mrb[120].mxu0 }
 0x466   :  { %v9163_v22 = vpop.eup %9162  ;;  %9182 = vtanh.f32 %v7752_v12  ;;  %v5974_v48 = vadd.f32 1.0, %v9161_v14  ;;  %6266 = vmatpush1.bf16.xpose.msra.mxu0 %v6209_v0  ;;  %v11848_v37 = vpop.f32.mrb[120].mxu1 }
 0x467   :  { %v9165_v6 = vpop.eup %9164  ;;  %9184 = vpow2.f32 %v7482_v33  ;;  %v6162_v28 = vmul.f32 %v9163_v22, %v9159_v55  ;;  %v11850_v0 = vpop.f32.mrb[121].mxu0  ;;  %v7755_v22 = vadd.f32 %v11694_v20, %v11520_v16  ;;  %v7756_v20 = vadd.f32 %v11702_v56, %v11525_v1 }
 0x468   :  { %v9167_v23 = vpop.eup %9166  ;;  %9186 = vrcp.f32 %v5974_v48  ;;  %12345 = vst [vmem:[#allocation45_spill] sm:$0xff] %v11850_v0  ;;  %v11852_v33 = vpop.f32.mrb[121].mxu1  ;;  %v7757_v56 = vadd.f32 %v11706_v62, %v11520_v16 }
 0x469   :  { %v9169_v17 = vpop.eup %9168  ;;  %9188 = vtanh.f32 %v7753_v57  ;;  %v5975_v12 = vadd.f32 1.0, %v9167_v23  ;;  %v11854_v14 = vpop.f32.mrb[122].mxu0  ;;  %v7824_v57 = vadd.f32 %v11729_v18, %v11517_v34  ;;  %v7825_v18 = vadd.f32 %v11737_v52, %v11511_v30 }
 0x46a   :  { %v9171_v32 = vpop.eup %9170  ;;  %9190 = vpow2.f32 %v7483_v21  ;;  %v6163_v55 = vmul.f32 %v9169_v17, %v9165_v6  ;;  %12346 = vst [vmem:[#allocation43_spill] sm:$0xff] %v11854_v14  ;;  %v11856_v10 = vpop.f32.mrb[122].mxu1  ;;  %v7485_v6 = vmul.f32 -1.442695, %v7823_v2  ;;  %v7826_v52 = vadd.f32 %v11741_v9, %v11517_v34 }
 0x46b   :  { %v9173_v26 = vpop.eup %9172  ;;  %9192 = vrcp.f32 %v5975_v12  ;;  %v11862_v41 = vpop.f32.mrb[123].mxu0  ;;  %v7486_v0 = vmul.f32 -1.442695, %v7824_v57 }
 0x46c   :  { %12347 = vst [vmem:[#allocation51_spill] sm:$0xff] %v11862_v41  ;;  %v11864_v48 = vpop.f32.mrb[123].mxu1  ;;  %v9175_v23 = vpop.eup %9174  ;;  %9194 = vtanh.f32 %v7754_v11  ;;  %v5976_v21 = vadd.f32 1.0, %v9173_v26  ;;  %v6211_v17 = vpack.c.bf16 %v6163_v55, %v11836_v39 }
 0x46d   :  { %v9177_v42 = vpop.eup %9176  ;;  %9196 = vpow2.f32 %v7484_v63  ;;  %v6164_v27 = vmul.f32 %v9175_v23, %v9171_v32  ;;  %v11873_v39 = vpop.f32.mrb[124].mxu0 }
 0x46e   :  { %v9179_v12 = vpop.eup %9178  ;;  %9198 = vrcp.f32 %v5976_v21  ;;  %v11875_v63 = vpop.f32.mrb[124].mxu1 }
 0x46f   :  { %v9181_v41 = vpop.eup %9180  ;;  %9200 = vtanh.f32 %v7755_v22  ;;  %v5977_v14 = vadd.f32 1.0, %v9179_v12  ;;  %v6212_v11 = vpack.c.bf16 %v6164_v27, %v6162_v28  ;;  %v11881_v55 = vpop.f32.mrb[125].mxu0  ;;  %v7487_v22 = vmul.f32 -1.442695, %v7825_v18 }
 0x470   :  { %v9183_v26 = vpop.eup %9182  ;;  %9202 = vpow2.f32 %v7485_v6  ;;  %v11871_v2 = vmul.f32 %v9181_v41, %v9177_v42  ;;  %v11883_v27 = vpop.f32.mrb[125].mxu1  ;;  %v7758_v6 = vadd.f32 %v11710_v59, %v11525_v1  ;;  %v7827_v12 = vadd.f32 %v11755_v3, %v11511_v30 }
 0x471   :  { %v9185_v32 = vpop.eup %9184  ;;  %9204 = vrcp.f32 %v5977_v14  ;;  %6267 = vmatprep.subr.bf16.mxu0 %v6212_v11  ;;  %v11885_v57 = vpop.f32.mrb[126].mxu0  ;;  %v7488_v18 = vmul.f32 -1.442695, %v7826_v52 }
 0x472   :  { %v9187_v28 = vpop.eup %9186  ;;  %9206 = vtanh.f32 %v7756_v20  ;;  %v5978_v42 = vadd.f32 1.0, %v9185_v32  ;;  %6268 = vmatpush1.bf16.xpose.msra.mxu0 %v6211_v17  ;;  %v11887_v41 = vpop.f32.mrb[126].mxu1  ;;  %v7759_v32 = vadd.f32 %v11723_v44, %v11520_v16  ;;  %v7829_v44 = vadd.f32 %v11763_v25, %v11511_v30 }
 0x473   :  { %v9189_v14 = vpop.eup %9188  ;;  %9208 = vpow2.f32 %v7486_v0  ;;  %v6166_v62 = vmul.f32 %v9187_v28, %v9183_v26  ;;  %v11889_v23 = vpop.f32.mrb[127].mxu0  ;;  %v7828_v28 = vadd.f32 %v11759_v24, %v11517_v34 }
 0x474   :  { %12348 = vst [vmem:[#allocation52_spill] sm:$0xff] %v11889_v23  ;;  %v11891_v9 = vpop.f32.mrb[127].mxu1  ;;  %v9191_v21 = vpop.eup %9190  ;;  %9210 = vrcp.f32 %v5978_v42  ;;  %v7489_v23 = vmul.f32 -1.442695, %v7827_v12 }
 0x475   :  { %v9193_v17 = vpop.eup %9192  ;;  %9212 = vtanh.f32 %v7757_v56  ;;  %v5979_v20 = vadd.f32 1.0, %v9191_v21 }
 0x476   :  { %v9195_v11 = vpop.eup %9194  ;;  %9214 = vpow2.f32 %v7487_v22  ;;  %v6167_v0 = vmul.f32 %v9193_v17, %v9189_v14  ;;  %v7760_v22 = vadd.f32 %v11727_v38, %v11525_v1  ;;  %v7490_v17 = vmul.f32 -1.442695, %v7828_v28 }
 0x477   :  { %v9197_v26 = vpop.eup %9196  ;;  %9216 = vrcp.f32 %v5979_v20 }
 0x478   :  { %v9199_v42 = vpop.eup %9198  ;;  %9218 = vtanh.f32 %v7758_v6  ;;  %v5980_v59 = vadd.f32 1.0, %v9197_v26  ;;  %v6213_v3 = vpack.c.bf16 %v6167_v0, %v11871_v2  ;;  %v7491_v0 = vmul.f32 -1.442695, %v7829_v44 }
 0x479   :  { %v9201_v56 = vpop.eup %9200  ;;  %9220 = vpow2.f32 %v7488_v18  ;;  %v6168_v52 = vmul.f32 %v9199_v42, %v9195_v11  ;;  %v7761_v18 = vadd.f32 %v11735_v35, %v11520_v16  ;;  %v7830_v11 = vadd.f32 %v11771_v50, %v11517_v34 }
 0x47a   :  { %v9203_v21 = vpop.eup %9202  ;;  %9222 = vrcp.f32 %v5980_v59  ;;  %v7831_v35 = vadd.f32 %v11789_v60, %v11511_v30 }
 0x47b   :  { %v9205_v14 = vpop.eup %9204  ;;  %9224 = vtanh.f32 %v7759_v32  ;;  %v5981_v24 = vadd.f32 1.0, %v9203_v21  ;;  %v6214_v6 = vpack.c.bf16 %v6168_v52, %v6166_v62  ;;  %v7492_v42 = vmul.f32 -1.442695, %v7830_v11 }
 0x47c   :  { %v9207_v20 = vpop.eup %9206  ;;  %9226 = vpow2.f32 %v7489_v23  ;;  %v6169_v12 = vmul.f32 %v9205_v14, %v9201_v56  ;;  %v7762_v23 = vadd.f32 %v11739_v29, %v11525_v1  ;;  %v7832_v21 = vadd.f32 %v11797_v13, %v11517_v34 }
 0x47d   :  { %v9209_v2 = vpop.eup %9208  ;;  %9228 = vrcp.f32 %v5981_v24  ;;  %6269 = vmatprep.subr.bf16.mxu0 %v6214_v6  ;;  %v7493_v44 = vmul.f32 -1.442695, %v7831_v35  ;;  %v7764_v6 = vadd.f32 %v11757_v40, %v11525_v1  ;;  %v7766_v35 = vadd.f32 %v11769_v47, %v11525_v1 }
 0x47e   :  { %v9211_v38 = vpop.eup %9210  ;;  %9230 = vtanh.f32 %v7760_v22  ;;  %v5982_v25 = vadd.f32 1.0, %v9209_v2  ;;  %6270 = vmatpush1.bf16.xpose.msra.mxu0 %v6213_v3  ;;  %v7763_v3 = vadd.f32 %v11753_v36, %v11520_v16  ;;  %v7494_v13 = vmul.f32 -1.442695, %v7832_v21 }
 0x47f   :  { %v9213_v26 = vpop.eup %9212  ;;  %9232 = vpow2.f32 %v7490_v17  ;;  %v6170_v62 = vmul.f32 %v9211_v38, %v9207_v20  ;;  %v7833_v20 = vadd.f32 %v11801_v54, %v11511_v30 }
 0x480   :  { %v9215_v32 = vpop.eup %9214  ;;  %9234 = vrcp.f32 %v5982_v25  ;;  %v7765_v25 = vadd.f32 %v11761_v19, %v11520_v16  ;;  %v7835_v19 = vadd.f32 %v11818_v58, %v11511_v30 }
 0x481   :  { %v9217_v28 = vpop.eup %9216  ;;  %9236 = vtanh.f32 %v7761_v18  ;;  %v5983_v50 = vadd.f32 1.0, %v9215_v32 }
 0x482   :  { %v9219_v59 = vpop.eup %9218  ;;  %9238 = vpow2.f32 %v7491_v0  ;;  %v6171_v56 = vmul.f32 %v9217_v28, %v9213_v26  ;;  %v7834_v0 = vadd.f32 %v11805_v4, %v11517_v34  ;;  %v7495_v26 = vmul.f32 -1.442695, %v7833_v20 }
 0x483   :  { %v9221_v52 = vpop.eup %9220  ;;  %9240 = vrcp.f32 %v5983_v50 }
 0x484   :  { %v9223_v22 = vpop.eup %9222  ;;  %9242 = vtanh.f32 %v7762_v23  ;;  %v5984_v29 = vadd.f32 1.0, %v9221_v52  ;;  %v6215_v60 = vpack.c.bf16 %v6171_v56, %v6169_v12  ;;  %v7496_v50 = vmul.f32 -1.442695, %v7834_v0 }
 0x485   :  { %v9225_v14 = vpop.eup %9224  ;;  %9244 = vpow2.f32 %v7492_v42  ;;  %v6172_v24 = vmul.f32 %v9223_v22, %v9219_v59  ;;  %v7767_v52 = vadd.f32 %v11787_v43, %v11520_v16  ;;  %v7497_v22 = vmul.f32 -1.442695, %v7835_v19 }
 0x486   :  { %v9227_v17 = vpop.eup %9226  ;;  %9246 = vrcp.f32 %v5984_v29  ;;  %v9442_v0 = vmov 0   ;;  %v7771_v19 = vadd.f32 %v11816_v8, %v11520_v16  ;;  %v7841_v8 = vadd.f32 %v11856_v10, %v11511_v30 }
 0x487   :  { %v9229_v36 = vpop.eup %9228  ;;  %9248 = vtanh.f32 %v7763_v3  ;;  %v5985_v2 = vadd.f32 1.0, %v9227_v17  ;;  %v6216_v18 = vpack.c.bf16 %v6172_v24, %v6170_v62  ;;  %v7836_v3 = vadd.f32 %v11822_v46, %v11517_v34  ;;  %8366 = vset.pattern.permute.xlu0 %v9442_v0  ;;  %8367 = vset.pattern.permute.xlu1 %v9442_v0  ;;  %v12349_v0 = vld [vmem:[#allocation45_spill] sm:$0xff] }
 0x488   :  { %v9231_v11 = vpop.eup %9230  ;;  %9250 = vpow2.f32 %v7493_v44  ;;  %v6173_v38 = vmul.f32 %v9229_v36, %v9225_v14  ;;  %v7768_v14 = vadd.f32 %v11795_v53, %v11525_v1  ;;  %v7837_v24 = vadd.f32 %v11830_v61, %v11511_v30 }
 0x489   :  { %v9233_v12 = vpop.eup %9232  ;;  %9252 = vrcp.f32 %v5985_v2  ;;  %6271 = vmatprep.subr.bf16.mxu0 %v6216_v18  ;;  %v7498_v46 = vmul.f32 -1.442695, %v7836_v3  ;;  %v7838_v53 = vadd.f32 %v11834_v51, %v11517_v34  ;;  %v7839_v51 = vadd.f32 %v11848_v37, %v11511_v30 }
 0x48a   :  { %v9235_v40 = vpop.eup %9234  ;;  %9254 = vtanh.f32 %v7764_v6  ;;  %v5986_v54 = vadd.f32 1.0, %v9233_v12  ;;  %6272 = vmatpush1.bf16.xpose.msra.mxu0 %v6215_v60 }
 0x48b   :  { %v9237_v32 = vpop.eup %9236  ;;  %9256 = vpow2.f32 %v7494_v13  ;;  %v6174_v62 = vmul.f32 %v9235_v40, %v9231_v11  ;;  %v7769_v13 = vadd.f32 %v11799_v49, %v11520_v16  ;;  %v7499_v11 = vmul.f32 -1.442695, %v7837_v24 }
 0x48c   :  { %v9239_v23 = vpop.eup %9238  ;;  %9258 = vrcp.f32 %v5986_v54  ;;  %v7770_v49 = vadd.f32 %v11803_v7, %v11525_v1  ;;  %v7501_v37 = vmul.f32 -1.442695, %v7839_v51 }
 0x48d   :  { %v9241_v28 = vpop.eup %9240  ;;  %9260 = vtanh.f32 %v7765_v25  ;;  %v5987_v4 = vadd.f32 1.0, %v9239_v23 }
 0x48e   :  { %v9243_v42 = vpop.eup %9242  ;;  %9262 = vpow2.f32 %v7495_v26  ;;  %v6175_v59 = vmul.f32 %v9241_v28, %v9237_v32  ;;  %v7500_v32 = vmul.f32 -1.442695, %v7838_v53  ;;  %v7840_v28 = vadd.f32 %v11852_v33, %v11517_v34 }
 0x48f   :  { %v9245_v56 = vpop.eup %9244  ;;  %9264 = vrcp.f32 %v5987_v4  ;;  %v7775_v53 = vadd.f32 %v11846_v5, %v11520_v16 }
 0x490   :  { %v9247_v21 = vpop.eup %9246  ;;  %9266 = vtanh.f32 %v7766_v35  ;;  %v5988_v47 = vadd.f32 1.0, %v9245_v56  ;;  %v6217_v58 = vpack.c.bf16 %v6175_v59, %v6173_v38  ;;  %v6243_v38 = vld [vmem:[#allocation5] sm:$0x1] }
 0x491   :  { %v9249_v29 = vpop.eup %9248  ;;  %9268 = vpow2.f32 %v7496_v50  ;;  %v6176_v44 = vmul.f32 %v9247_v21, %v9243_v42  ;;  %6246 = vperm.xlu0 %8366, %v6243_v38   ;;  %v7502_v21 = vmul.f32 -1.442695, %v7840_v28 }
 0x492   :  { %v9251_v60 = vpop.eup %9250  ;;  %9270 = vrcp.f32 %v5988_v47 }
 0x493   :  { %v9253_v43 = vpop.eup %9252  ;;  %9272 = vtanh.f32 %v7767_v52  ;;  %v5989_v17 = vadd.f32 1.0, %v9251_v60  ;;  %v6218_v6 = vpack.c.bf16 %v6176_v44, %v6174_v62  ;;  %v7772_v52 = vadd.f32 %v11820_v31, %v11525_v1 }
 0x494   :  { %v9255_v20 = vpop.eup %9254  ;;  %9274 = vpow2.f32 %v7497_v22  ;;  %v11938_v36 = vmul.f32 %v9253_v43, %v9249_v29  ;;  %v7773_v44 = vadd.f32 %v11828_v15, %v11520_v16  ;;  %v7842_v60 = vadd.f32 %v11864_v48, %v11517_v34 }
 0x495   :  { %v9257_v2 = vpop.eup %9256  ;;  %9276 = vrcp.f32 %v5989_v17  ;;  %6273 = vmatprep.subr.bf16.mxu0 %v6218_v6  ;;  %v7843_v15 = vadd.f32 %v11875_v63, %v11511_v30 }
 0x496   :  { %v9259_v18 = vpop.eup %9258  ;;  %9278 = vtanh.f32 %v7768_v14  ;;  %v5990_v61 = vadd.f32 1.0, %v9257_v2  ;;  %6274 = vmatpush1.bf16.xpose.msra.mxu0 %v6217_v58  ;;  %v7503_v14 = vmul.f32 -1.442695, %v7841_v8 }
 0x497   :  { %v9261_v12 = vpop.eup %9260  ;;  %9280 = vpow2.f32 %v7498_v46  ;;  %v6178_v25 = vmul.f32 %v9259_v18, %v9255_v20  ;;  %v7774_v46 = vadd.f32 %v11832_v45, %v11525_v1  ;;  %v7504_v20 = vmul.f32 -1.442695, %v7842_v60 }
 0x498   :  { %v9263_v40 = vpop.eup %9262  ;;  %9282 = vrcp.f32 %v5990_v61  ;;  %v7844_v18 = vadd.f32 %v11883_v27, %v11517_v34 }
 0x499   :  { %v9265_v54 = vpop.eup %9264  ;;  %9284 = vtanh.f32 %v7769_v13  ;;  %v5991_v26 = vadd.f32 1.0, %v9263_v40  ;;  %v7776_v40 = vadd.f32 %v12349_v0, %v11525_v1 }
 0x49a   :  { %v9267_v62 = vpop.eup %9266  ;;  %9286 = vpow2.f32 %v7499_v11  ;;  %v6179_v23 = vmul.f32 %v9265_v54, %v9261_v12  ;;  %v7505_v11 = vmul.f32 -1.442695, %v7843_v15  ;;  %v7506_v27 = vmul.f32 -1.442695, %v7844_v18 }
 0x49b   :  { %v9269_v35 = vpop.eup %9268  ;;  %9288 = vrcp.f32 %v5991_v26 }
 0x49c   :  { %v9271_v7 = vpop.eup %9270  ;;  %9290 = vtanh.f32 %v7770_v49  ;;  %v5992_v4 = vadd.f32 1.0, %v9269_v35  ;;  %v6219_v50 = vpack.c.bf16 %v6179_v23, %v11938_v36  ;;  %v7845_v49 = vadd.f32 %v11887_v41, %v11511_v30  ;;  %v12350_v23 = vld [vmem:[#allocation43_spill] sm:$0xff] }
 0x49d   :  { %v9273_v42 = vpop.eup %9272  ;;  %9292 = vpow2.f32 %v7500_v32  ;;  %v6180_v59 = vmul.f32 %v9271_v7, %v9267_v62  ;;  %v7777_v35 = vadd.f32 %v12350_v23, %v11520_v16  ;;  %v12354_v23 = vld [vmem:[#allocation40_spill] sm:$0xff] }
 0x49e   :  { %v9275_v56 = vpop.eup %9274  ;;  %9294 = vrcp.f32 %v5992_v4  ;;  %v7507_v41 = vmul.f32 -1.442695, %v7845_v49 }
 0x49f   :  { %v9277_v3 = vpop.eup %9276  ;;  %9296 = vtanh.f32 %v7771_v19  ;;  %v5993_v33 = vadd.f32 1.0, %v9275_v56  ;;  %v6220_v47 = vpack.c.bf16 %v6180_v59, %v6178_v25  ;;  %v7846_v19 = vadd.f32 %v11891_v9, %v11517_v34 }
 0x4a0   :  { %v9279_v22 = vpop.eup %9278  ;;  %9298 = vpow2.f32 %v7501_v37  ;;  %v6181_v58 = vmul.f32 %v9277_v3, %v9273_v42 }
 0x4a1   :  { %v9281_v29 = vpop.eup %9280  ;;  %9300 = vrcp.f32 %v5993_v33  ;;  %6275 = vmatprep.subr.bf16.mxu0 %v6220_v47 }
 0x4a2   :  { %v9283_v31 = vpop.eup %9282  ;;  %9302 = vtanh.f32 %v7772_v52  ;;  %v5994_v10 = vadd.f32 1.0, %v9281_v29  ;;  %6276 = vmatpush1.bf16.xpose.msra.mxu0 %v6219_v50  ;;  %v12351_v50 = vld [vmem:[#allocation51_spill] sm:$0xff]  ;;  %v7508_v52 = vmul.f32 -1.442695, %v7846_v19  ;;  %v12355_v19 = vld [vmem:[#allocation17_spill] sm:$0xff] }
 0x4a3   :  { %v9285_v24 = vpop.eup %9284  ;;  %9304 = vpow2.f32 %v7502_v21  ;;  %v6182_v43 = vmul.f32 %v9283_v31, %v9279_v22  ;;  %v7778_v42 = vadd.f32 %v12351_v50, %v11525_v1  ;;  %v7779_v21 = vadd.f32 %v11873_v39, %v11520_v16  ;;  %v12361_v50 = vld [vmem:[#allocation23_spill] sm:$0xff] }
 0x4a4   :  { %v9287_v17 = vpop.eup %9286  ;;  %9306 = vrcp.f32 %v5994_v10  ;;  %v7780_v31 = vadd.f32 %v11881_v55, %v11525_v1 }
 0x4a5   :  { %v9289_v6 = vpop.eup %9288  ;;  %9308 = vtanh.f32 %v7773_v44  ;;  %v5995_v48 = vadd.f32 1.0, %v9287_v17 }
 0x4a6   :  { %v9291_v36 = vpop.eup %9290  ;;  %9310 = vpow2.f32 %v7503_v14  ;;  %v6183_v2 = vmul.f32 %v9289_v6, %v9285_v24 }
 0x4a7   :  { %v9293_v13 = vpop.eup %9292  ;;  %9312 = vrcp.f32 %v5995_v48 }
 0x4a8   :  { %v9295_v61 = vpop.eup %9294  ;;  %9314 = vtanh.f32 %v7774_v46  ;;  %v5996_v45 = vadd.f32 1.0, %v9293_v13  ;;  %v6221_v63 = vpack.c.bf16 %v6183_v2, %v6181_v58  ;;  %v7781_v46 = vadd.f32 %v11885_v57, %v11520_v16 }
 0x4a9   :  { %v9297_v38 = vpop.eup %9296  ;;  %9316 = vpow2.f32 %v7504_v20  ;;  %v6184_v12 = vmul.f32 %v9295_v61, %v9291_v36  ;;  %v12352_v36 = vld [vmem:[#allocation52_spill] sm:$0xff] }
 0x4aa   :  { %v9299_v25 = vpop.eup %9298  ;;  %9318 = vrcp.f32 %v5996_v45  ;;  %v7782_v2 = vadd.f32 %v12352_v36, %v11525_v1 }
 0x4ab   :  { %v9301_v5 = vpop.eup %9300  ;;  %9320 = vtanh.f32 %v7775_v53  ;;  %v5997_v51 = vadd.f32 1.0, %v9299_v25  ;;  %v6222_v54 = vpack.c.bf16 %v6184_v12, %v6182_v43 }
 0x4ac   :  { %v9303_v26 = vpop.eup %9302  ;;  %9322 = vpow2.f32 %v7505_v11  ;;  %v6185_v32 = vmul.f32 %v9301_v5, %v9297_v38 }
 0x4ad   :  { %v9305_v62 = vpop.eup %9304  ;;  %9324 = vrcp.f32 %v5997_v51  ;;  %6277 = vmatprep.subr.bf16.mxu0 %v6222_v54 }
 0x4ae   :  { %v9307_v28 = vpop.eup %9306  ;;  %9326 = vtanh.f32 %v7776_v40  ;;  %v5998_v30 = vadd.f32 1.0, %v9305_v62  ;;  %6278 = vmatpush1.bf16.xpose.msra.mxu0 %v6221_v63  ;;  %v12353_v62 = vld [vmem:[#allocation14_spill] sm:$0xff] }
 0x4af   :  { %v9309_v7 = vpop.eup %9308  ;;  %9328 = vpow2.f32 %v7506_v27  ;;  %v6186_v4 = vmul.f32 %v9307_v28, %v9303_v26 }
 0x4b0   :  { %v9311_v37 = vpop.eup %9310  ;;  %9330 = vrcp.f32 %v5998_v30  ;;  %v12356_v30 = vld [vmem:[#allocation16_spill] sm:$0xff] }
 0x4b1   :  { %v9313_v59 = vpop.eup %9312  ;;  %9332 = vtanh.f32 %v7777_v35  ;;  %v5999_v56 = vadd.f32 1.0, %v9311_v37  ;;  %v6234_v35 = vrot.slane %v12354_v23, %v12353_v62  ;;  %v12360_v37 = vld [vmem:[#allocation20_spill] sm:$0xff] }
 0x4b2   :  { %v9315_v8 = vpop.eup %9314  ;;  %9334 = vpow2.f32 %v7507_v41  ;;  %v6187_v34 = vmul.f32 %v9313_v59, %v9309_v7  ;;  %v12357_v41 = vld [vmem:[#allocation19_spill] sm:$0xff]  ;;  %v12358_v7 = vld [vmem:[#allocation18_spill] sm:$0xff]  ;;  %v12363_v59 = vld [vmem:[#allocation25_spill] sm:$0xff] }
 0x4b3   :  { %v9317_v9 = vpop.eup %9316  ;;  %9336 = vrcp.f32 %v5999_v56  ;;  %v6241_v28 = vpack.c.bf16 %v6234_v35, %v6234_v35  ;;  %v12364_v56 = vld [vmem:[#allocation24_spill] sm:$0xff] }
 0x4b4   :  { %v9319_v3 = vpop.eup %9318  ;;  %9338 = vtanh.f32 %v7778_v42  ;;  %v6000_v33 = vadd.f32 1.0, %v9317_v9  ;;  %v6223_v47 = vpack.c.bf16 %v6187_v34, %v6185_v32  ;;  %v12362_v42 = vld [vmem:[#allocation22_spill] sm:$0xff]  ;;  %v12367_v34 = vld [vmem:[#allocation29_spill] sm:$0xff]  ;;  %v12368_v9 = vld [vmem:[#allocation28_spill] sm:$0xff] }
 0x4b5   :  { %v9321_v22 = vpop.eup %9320  ;;  %9340 = vpow2.f32 %v7508_v52  ;;  %v6188_v58 = vmul.f32 %v9319_v3, %v9315_v8  ;;  %v12365_v52 = vld [vmem:[#allocation27_spill] sm:$0xff]  ;;  %v12366_v8 = vld [vmem:[#allocation26_spill] sm:$0xff] }
 0x4b6   :  { %v9323_v29 = vpop.eup %9322  ;;  %9342 = vrcp.f32 %v6000_v33  ;;  %v12369_v3 = vld [vmem:[#allocation31_spill] sm:$0xff]  ;;  %v12370_v33 = vld [vmem:[#allocation30_spill] sm:$0xff] }
 0x4b7   :  { %v9325_v44 = vpop.eup %9324  ;;  %v6001_v60 = vadd.f32 1.0, %v9323_v29  ;;  %v6224_v10 = vpack.c.bf16 %v6188_v58, %v6186_v4  ;;  %9344 = vtanh.f32 %v7779_v21  ;;  %v12359_v4 = vld [vmem:[#allocation21_spill] sm:$0xff]  ;;  %v12374_v58 = vld [vmem:[#allocation34_spill] sm:$0xff] }
 0x4b8   :  { %v9327_v14 = vpop.eup %9326  ;;  %v6189_v24 = vmul.f32 %v9325_v44, %v9321_v22  ;;  %v12371_v21 = vld [vmem:[#allocation33_spill] sm:$0xff]  ;;  %v12373_v22 = vld [vmem:[#allocation35_spill] sm:$0xff]  ;;  %v12376_v44 = vld [vmem:[#allocation36_spill] sm:$0xff] }
 0x4b9   :  { %v9329_v43 = vpop.eup %9328  ;;  %9346 = vrcp.f32 %v6001_v60  ;;  %6279 = vmatprep.subr.bf16.mxu0 %v6224_v10  ;;  %v12375_v29 = vld [vmem:[#allocation37_spill] sm:$0xff]  ;;  %v12377_v60 = vld [vmem:[#allocation39_spill] sm:$0xff]  ;;  %v12379_v10 = vld [vmem:[#allocation42_spill] sm:$0xff] }
 0x4ba   :  { %v9331_v17 = vpop.eup %9330  ;;  %v6002_v39 = vadd.f32 1.0, %v9329_v43  ;;  %6280 = vmatpush1.bf16.xpose.msra.mxu0 %v6223_v47  ;;  %9348 = vtanh.f32 %v7780_v31  ;;  %v12372_v47 = vld [vmem:[#allocation32_spill] sm:$0xff]  ;;  %v12378_v31 = vld [vmem:[#allocation38_spill] sm:$0xff] }
 0x4bb   :  { %v9333_v15 = vpop.eup %9332  ;;  %v6190_v6 = vmul.f32 %v9331_v17, %v9327_v14  ;;  %v12380_v14 = vld [vmem:[#allocation41_spill] sm:$0xff]  ;;  %v12382_v43 = vld [vmem:[#allocation44_spill] sm:$0xff] }
 0x4bc   :  { %v9335_v48 = vpop.eup %9334  ;;  %9350 = vrcp.f32 %v6002_v39  ;;  %v12383_v17 = vld [vmem:[#allocation48_spill] sm:$0xff]  ;;  %v12384_v39 = vld [vmem:[#allocation47_spill] sm:$0xff] }
 0x4bd   :  { %v9337_v20 = vpop.eup %9336  ;;  %v6003_v55 = vadd.f32 1.0, %v9335_v48  ;;  %9352 = vtanh.f32 %v7781_v46  ;;  %v12385_v46 = vld [vmem:[#allocation50_spill] sm:$0xff] }
 0x4be   :  { %v9339_v13 = vpop.eup %9338  ;;  %v6191_v53 = vmul.f32 %v9337_v20, %v9333_v15  ;;  %v12386_v15 = vld [vmem:[#allocation49_spill] sm:$0xff] }
 0x4bf   :  { %v9341_v18 = vpop.eup %9340  ;;  %9354 = vrcp.f32 %v6003_v55  ;;  %v9443_v55 = vmov 1966171168  }
 0x4c0   :  { %v9343_v61 = vpop.eup %9342  ;;  %v6004_v45 = vadd.f32 1.0, %v9341_v18  ;;  %v6225_v11 = vpack.c.bf16 %v6191_v53, %v6189_v24  ;;  %9356 = vtanh.f32 %v7782_v2  ;;  %v12381_v24 = vld [vmem:[#allocation46_spill] sm:$0xff]  ;;  %v6298_v36 = vunpack.c.l.s4 %v9443_v55 }
 0x4c1   :  { %v6192_v16 = vmul.f32 %v9343_v61, %v9339_v13  ;;  %v9345_v57 = vpop.eup %9344  ;;  %v8959_v55 = vld [vmem:[%s12215_s9 + $0x38] sm:$0xff]  }
 0x4c2   :  { %9358 = vrcp.f32 %v6004_v45  ;;  %v6299_v53 = vunpack.c.0.s8 %v6298_v36  ;;  %v8960_v36 = vld [vmem:[%s12215_s9 + $0xc0] sm:$0xff]  }
 0x4c3   :  { %v9347_v63 = vpop.eup %9346  ;;  %v6226_v38 = vpack.c.bf16 %v6192_v16, %v6190_v6  ;;  %v12387_v6 = vlaneseq }
 0x4c4   :  { %v6193_v12 = vmul.f32 %v9347_v63, %v9345_v57  ;;  %v9349_v25 = vpop.eup %9348  ;;  %v12388_v57 = vld [vmem:[#allocation13_spill] sm:$0xff] }
 0x4c5   :  { %6281 = vmatprep.subr.bf16.mxu0 %v6226_v38  ;;  %v6319_v48 = vand.u32 127, %v12387_v6  ;;  %v12024_v63 = vsub.s32 %v6299_v53, %v12388_v57  ;;  %vm6314_vm2 = vcmp.lt.s32.totalorder %v12387_v6, 256  ;;  %vm12036_vm4 = vcmp.lt.s32.totalorder %v12387_v6, 512  ;;  %v8956_v6 = vld [vmem:[%s12215_s9 + $0x70] sm:$0xff]  }
 0x4c6   :  { %v9351_v0 = vpop.eup %9350  ;;  %6282 = vmatpush1.bf16.xpose.msra.mxu0 %v6225_v11 }
 0x4c7   :  { %v6194_v1 = vmul.f32 %v9351_v0, %v9349_v25  ;;  %v9353_v40 = vpop.eup %9352  ;;  %v6320_v13 = vadd.s32 128, %v6319_v48  ;;  %v8957_v48 = vld [vmem:[%s12215_s9 + $0x30] sm:$0xff]  }
 0x4c9   :  { %v9355_v49 = vpop.eup %9354  ;;  %vm6325_vm0 = vcmp.lt.s32.totalorder %v6320_v13, 200 }
 0x4ca   :  { %v6195_v5 = vmul.f32 %v9355_v49, %v9353_v40  ;;  %v9357_v51 = vpop.eup %9356  ;;  %vm7509_vm5 = vmpackc.low %vm6325_vm0, %vm6325_vm0 }
 0x4cc   :  { %v9359_v27 = vpop.eup %9358  ;;  %v6227_v54 = vpack.c.bf16 %v6195_v5, %v6193_v12 }
 0x4cd   :  { %v6196_v26 = vmul.f32 %v9359_v27, %v9357_v51  ;;  %v9444_v51 = vmov -1e+30   ;;  %v9445_v27 = vmov 0.0  }
 0x4ce   :  { %52 = vst.msk [vmem:[#allocation2] sm:$0x1] %vm51_vm3, %v9444_v51  ;;  %53 = vst.msk [vmem:[#allocation3] sm:$0x1] %vm51_vm3, %v9445_v27 }
 0x4cf   :  { %v6228_v32 = vpack.c.bf16 %v6196_v26, %v6194_v1  ;;  %58 = vst.msk [vmem:[#allocation4] sm:$0xf] %vm12036_vm4, %v9445_v27 }
 0x4d1   :  { %6283 = vmatprep.subr.bf16.mxu0 %v6228_v32 }
 0x4d2   :  { %6284 = vmatpush1.bf16.xpose.msra.mxu0 %v6227_v54 }
 0x4d3   :  { %6420 = vmatprep.subr.bf16.mxu0 %v12355_v19 }
 0x4d5   :  { %v6328_v54 = vld [vmem:[#allocation2] sm:$0x1] }
 0x4d9   :  { %6286 = vmatmul.mubr.bf16.vlgmr.msra.gmra.mrb[128].mxu0 %v6241_v28 }
 0x4da   :  { %6421 = vmatpush1.bf16.msra.mxu0 %v12356_v30 }
 0x4db   :  { %6422 = vmatprep.subr.bf16.mxu0 %v12357_v41 }
 0x4de   :  { %6423 = vmatpush1.bf16.msra.mxu0 %v12358_v7 }
 0x4df   :  { %6424 = vmatprep.subr.bf16.mxu0 %v12359_v4 }
 0x4e2   :  { %6425 = vmatpush1.bf16.msra.mxu0 %v12360_v37 }
 0x4e3   :  { %6426 = vmatprep.subr.bf16.mxu0 %v12361_v50 }
 0x4e6   :  { %6427 = vmatpush1.bf16.msra.mxu0 %v12362_v42 }
 0x4e7   :  { %6428 = vmatprep.subr.bf16.mxu0 %v12363_v59 }
 0x4ea   :  { %6429 = vmatpush1.bf16.msra.mxu0 %v12364_v56 }
 0x4eb   :  { %6430 = vmatprep.subr.bf16.mxu0 %v12365_v52 }
 0x4ee   :  { %6431 = vmatpush1.bf16.msra.mxu0 %v12366_v8 }
 0x4ef   :  { %6432 = vmatprep.subr.bf16.mxu0 %v12367_v34 }
 0x4f2   :  { %6433 = vmatpush1.bf16.msra.mxu0 %v12368_v9 }
 0x4f3   :  { %6434 = vmatprep.subr.bf16.mxu0 %v12369_v3 }
 0x4f6   :  { %6435 = vmatpush1.bf16.msra.mxu0 %v12370_v33  ;;  %v8944_v33 = vld [vmem:[%s12215_s9 + $0x40] sm:$0xff]  }
 0x4f7   :  { %6436 = vmatprep.subr.bf16.mxu0 %v12371_v21  ;;  %v8945_v21 = vld [vmem:[%s12215_s9] sm:$0xff]   ;;  %7547 = vmatprep.subr.bf16.mxu1 %v8944_v33  ;;  %v8970_v33 = vld [vmem:[%s12215_s9 + $0xe8] sm:$0xff]  }
 0x4fa   :  { %6437 = vmatpush1.bf16.msra.mxu0 %v12372_v47  ;;  %v8946_v47 = vld [vmem:[%s12215_s9 + $0x48] sm:$0xff]  }
 0x4fb   :  { %6438 = vmatprep.subr.bf16.mxu0 %v12373_v22  ;;  %v8947_v22 = vld [vmem:[%s12215_s9 + $0x8] sm:$0xff]  }
 0x4fe   :  { %6439 = vmatpush1.bf16.msra.mxu0 %v12374_v58  ;;  %v8948_v58 = vld [vmem:[%s12215_s9 + $0x50] sm:$0xff]  }
 0x4ff   :  { %6440 = vmatprep.subr.bf16.mxu0 %v12375_v29  ;;  %v8949_v29 = vld [vmem:[%s12215_s9 + $0x10] sm:$0xff]  }
 0x502   :  { %6441 = vmatpush1.bf16.msra.mxu0 %v12376_v44  ;;  %v8950_v44 = vld [vmem:[%s12215_s9 + $0x58] sm:$0xff]  }
 0x503   :  { %6442 = vmatprep.subr.bf16.mxu0 %v12377_v60  ;;  %v6356_v60 = vld [vmem:[#allocation3] sm:$0x1] }
 0x506   :  { %6443 = vmatpush1.bf16.msra.mxu0 %v12378_v31 }
 0x507   :  { %6444 = vmatprep.subr.bf16.mxu0 %v12379_v10 }
 0x50a   :  { %6445 = vmatpush1.bf16.msra.mxu0 %v12380_v14 }
 0x50b   :  { %6446 = vmatprep.subr.bf16.mxu0 %v12381_v24  ;;  %v8951_v24 = vld [vmem:[%s12215_s9 + $0x18] sm:$0xff]  }
 0x50e   :  { %6447 = vmatpush1.bf16.msra.mxu0 %v12382_v43 }
 0x50f   :  { %6448 = vmatprep.subr.bf16.mxu0 %v12383_v17  ;;  %v8952_v17 = vld [vmem:[%s12215_s9 + $0x60] sm:$0xff]  }
 0x510   :  { %v6247_v20 = vpop.permute.xlu0 %6246 }
 0x511   :  { %v6252_v2 = vrot.slane %v6247_v20, %v12353_v62  ;;  %v8958_v20 = vld [vmem:[%s12215_s9 + $0x78] sm:$0xff]  }
 0x512   :  { %6449 = vmatpush1.bf16.msra.mxu0 %v12384_v39  ;;  %v8953_v39 = vld [vmem:[%s12215_s9 + $0x20] sm:$0xff]  }
 0x513   :  { %6450 = vmatprep.subr.bf16.mxu0 %v12385_v46  ;;  %v8954_v46 = vld [vmem:[%s12215_s9 + $0x68] sm:$0xff]  }
 0x516   :  { %6451 = vmatpush1.bf16.msra.mxu0 %v12386_v15  ;;  %v8955_v15 = vld [vmem:[%s12215_s9 + $0x28] sm:$0xff]  }
 0x5ac   :  { %v6287_v18 = vpop.f32.mrb[128].mxu0 }
 0x5ad   :  { %v6288_v61 = vadd.f32 %v6287_v18, %v6252_v2  ;;  %v6289_v45 = vpop.f32.mrb[129].mxu0 }
 0x5ae   :  { %v6290_v11 = vadd.f32 %v6289_v45, %v6252_v2  ;;  %v6291_v16 = vpop.f32.mrb[130].mxu0 }
 0x5af   :  { %v6292_v38 = vpop.f32.mrb[131].mxu0  ;;  %v6330_v0 = vsel %vm6329_vm1, %v6288_v61, -inf }
 0x5b0   :  { %v6296_v12 = vcombine.low %v6288_v61, %v6290_v11  ;;  %v6327_v25 = vsel %vm6325_vm0, %v6290_v11, -1e+30 }
 0x5b1   :  { %v6331_v1 = vsel %vm6329_vm1, %v6327_v25, -inf }
 0x5b2   :  { %v6332_v40 = vmax.f32 %v6330_v0, %v6331_v1  ;;  %v6303_v49 = vrot.slane %v6296_v12, %v12024_v63 }
 0x5b4   :  { %6333 = vmax.xlane.f32.xlu0 %v6332_v40  ;;  %v6310_v5 = vrot.slane %v6303_v49, %v12024_v63  ;;  %v6366_v49 = vld [vmem:[#allocation4] sm:$0xf] }
 0x5b6   :  { %6316 = vst.msk [vmem:[#allocation6] sm:$0x3] %vm6314_vm2, %v6310_v5 }
 0x641   :  { %v6334_v26 = vpop.xlane.xlu0 %6333 }
 0x642   :  { %v6335_v32 = vmax.f32 %v6328_v54, %v6334_v26 }
 0x644   :  { %v6336_v23 = vsub.f32 %v6328_v54, %v6335_v32  ;;  %6494 = vst.msk [vmem:[#allocation2] sm:$0x1] %vm51_vm3, %v6335_v32  ;;  %6341 = vperm.xlu1 %8367, %v6335_v32  }
 0x646   :  { %v6337_v35 = vmul.f32 1.442695, %v6336_v23 }
 0x648   :  { %9360 = vpow2.f32 %v6337_v35 }
 0x652   :  { %v9361_v28 = vpop.eup %9360 }
 0x653   :  { %6369 = vperm.xlu0 %8366, %v9361_v28   ;;  %v6357_v31 = vmul.f32 %v9361_v28, %v6356_v60 }
 0x6c3   :  { %v6342_v30 = vpop.permute.xlu1 %6341 }
 0x6c4   :  { %v6347_v41 = vrot.slane %v6342_v30, %v12353_v62  ;;  %v12391_v30 = vld [vmem:[#allocation15_spill] sm:$0xff] }
 0x6c6   :  { %v6348_v7 = vsub.f32 %v6288_v61, %v6347_v41  ;;  %v6349_v4 = vsub.f32 %v6327_v25, %v6347_v41 }
 0x6c8   :  { %v6350_v37 = vmul.f32 1.442695, %v6348_v7  ;;  %v6352_v50 = vmul.f32 1.442695, %v6349_v4 }
 0x6ca   :  { %9362 = vpow2.f32 %v6350_v37 }
 0x6cb   :  { %9364 = vpow2.f32 %v6352_v50 }
 0x6d2   :  { %v6370_v2 = vpop.permute.xlu0 %6369 }
 0x6d3   :  { %v6375_v0 = vrot.slane %v6370_v2, %v12353_v62 }
 0x6d4   :  { %v9363_v42 = vpop.eup %9362 }
 0x6d5   :  { %v9365_v59 = vpop.eup %9364  ;;  %v6377_v56 = vpack.c.bf16 %v9363_v42, %v9363_v42  ;;  %v6358_v52 = vsel %vm6329_vm1, %v9363_v42, 0.0  ;;  %v6376_v51 = vmul.f32 %v6375_v0, %v6366_v49  ;;  %v8961_v42 = vld [vmem:[%s12215_s9 + $0x80] sm:$0xff]  }
 0x6d6   :  { %v7510_v8 = vpack.c.bf16 %v9365_v59, %v9365_v59  ;;  %v6355_v34 = vsel %vm6325_vm0, %v9365_v59, 0.0  ;;  %v8962_v59 = vld [vmem:[%s12215_s9 + $0xc8] sm:$0xff]  }
 0x6d7   :  { %v6359_v9 = vsel %vm6329_vm1, %v6355_v34, 0.0  ;;  %v8967_v34 = vld [vmem:[%s12215_s9 + $0x98] sm:$0xff]  }
 0x6d8   :  { %7511 = vmatprep.mubr.msk.bf16.mxu1 %vm7509_vm5, %v7510_v8  ;;  %7514 = vmatprep.mubr.msk.bf16.mxu0 %vm7509_vm5, %v7510_v8  ;;  %v6360_v3 = vadd.f32 %v6359_v9, %v6358_v52  ;;  %v8965_v52 = vld [vmem:[%s12215_s9 + $0x90] sm:$0xff]   ;;  %v8966_v8 = vld [vmem:[%s12215_s9 + $0xd8] sm:$0xff]   ;;  %v8968_v9 = vld [vmem:[%s12215_s9 + $0xe0] sm:$0xff]  }
 0x6d9   :  { %6412 = vmatmul.mubr.bf16.vlgmr.msra.gmra.mrb[128].mxu1 %v6377_v56  ;;  %6453 = vmatmul.mubr.bf16.vlgmr.msra.gmra.mrb[132].mxu0 %v6377_v56  ;;  %v8964_v56 = vld [vmem:[%s12215_s9 + $0xd0] sm:$0xff]  }
 0x6da   :  { %6361 = vadd.xlane.f32.xlu1 %v6360_v3  ;;  %7548 = vmatpush3.bf16.msra.mxu1 %v8945_v21  ;;  %v8969_v3 = vld [vmem:[%s12215_s9 + $0xa0] sm:$0xff]   ;;  %v8971_v21 = vld [vmem:[%s12215_s9 + $0xa8] sm:$0xff]  }
 0x6db   :  { %7549 = vmatprep.subr.bf16.mxu1 %v8946_v47  ;;  %v8972_v47 = vld [vmem:[%s12215_s9 + $0xf0] sm:$0xff]  }
 0x6de   :  { %7550 = vmatpush3.bf16.msra.mxu1 %v8947_v22  ;;  %v8973_v22 = vld [vmem:[%s12215_s9 + $0xb0] sm:$0xff]  }
 0x6df   :  { %7551 = vmatprep.subr.bf16.mxu1 %v8948_v58  ;;  %v8974_v58 = vld [vmem:[%s12215_s9 + $0xf8] sm:$0xff]  }
 0x6e2   :  { %7552 = vmatpush3.bf16.msra.mxu1 %v8949_v29  ;;  %v8975_v29 = vld [vmem:[%s12215_s9 + $0xb8] sm:$0xff]  }
 0x6e3   :  { %7553 = vmatprep.subr.bf16.mxu1 %v8950_v44  ;;  %v12393_v44 = vsub.s32 2, %v12388_v57 }
 0x6e6   :  { %7554 = vmatpush3.bf16.msra.mxu1 %v8951_v24 }
 0x6e7   :  { %7555 = vmatprep.subr.bf16.mxu1 %v8952_v17 }
 0x6ea   :  { %7556 = vmatpush3.bf16.msra.mxu1 %v8953_v39  ;;  %v6601_v39 = vld [vmem:[%s12216_s10] sm:$0x1]  ;;  %s9446_s10 = smov [#allocation6]  }
 0x6eb   :  { %7557 = vmatprep.subr.bf16.mxu1 %v8954_v46  ;;  %s6894_s20 = sshll.u32 %s9446_s10, 4  ;;  %s6895_s20 = int_to_ptr.vmem [resolvable:$true] %s6894_s20 }
 0x6ec   :  { %s9372_s21 = scalar_lea.vmem %s6895_s20, 32  ;;  %p9377_p1 = scmp.lt.s32.totalorder %s6895_s20, %s6895_s20 }
 0x6ed   :  { %p9373_p0 = scmp.ne.s32.totalorder %s6895_s20, %s9372_s21  ;;  %p9378_p2 = scmp.lt.s32.totalorder %s9372_s21, %s9372_s21 }
 0x6ee   :  { %7558 = vmatpush3.bf16.msra.mxu1 %v8955_v15 }
 0x6ef   :  { %7559 = vmatprep.subr.bf16.mxu1 %v8956_v6  ;;  %p9379_p3 = por %p9378_p2, %p9377_p1 }
 0x6f1   :  { %p9380_p4 = pnand %p9379_p3, %p9373_p0 }
 0x6f2   :  { %7560 = vmatpush3.bf16.msra.mxu1 %v8957_v48 }
 0x6f3   :  { %7561 = vmatprep.subr.bf16.mxu1 %v8958_v20 }
 0x6f6   :  { %7562 = vmatpush3.bf16.msra.mxu1 %v8959_v55 }
 0x6f7   :  { %7569 = vmatprep.subr.bf16.mxu1 %v8960_v36 }
 0x767   :  { %v6362_v10 = vpop.xlane.xlu1 %6361 }
 0x768   :  { %v6363_v14 = vadd.f32 %v6362_v10, %v6357_v31 }
 0x76a   :  { %6365 = vst.msk [vmem:[#allocation3] sm:$0x1] %vm51_vm3, %v6363_v14 }
 0x771   :  { %v6499_v43 = vld [vmem:[#allocation3] sm:$0x1] }
 0x772   :  { %6502 = vperm.xlu1 %8367, %v6499_v43  }
 0x7ac   :  { %v6413_v13 = vpop.f32.mrb[128].mxu1  ;;  %v6454_v53 = vpop.f32.mrb[132].mxu0 }
 0x7ad   :  { %v6415_v18 = vpop.f32.mrb[129].mxu1  ;;  %v6456_v61 = vpop.f32.mrb[133].mxu0 }
 0x7ae   :  { %v6465_v45 = vcombine.low %v6413_v13, %v6415_v18  ;;  %v6466_v11 = vcombine.low %v6454_v53, %v6456_v61  ;;  %v6417_v16 = vpop.f32.mrb[130].mxu1  ;;  %v6458_v38 = vpop.f32.mrb[134].mxu0 }
 0x7af   :  { %v6418_v12 = vpop.f32.mrb[131].mxu1  ;;  %v6459_v25 = vpop.f32.mrb[135].mxu0 }
 0x7b0   :  { %v6473_v1 = vrot.slane %v6465_v45, %v12024_v63  ;;  %v6480_v40 = vrot.slane %v6466_v11, %v12024_v63 }
 0x7b2   :  { %v6481_v5 = vcombine.low %v6473_v1, %v6480_v40 }
 0x7b4   :  { %v6488_v27 = vrot.slane %v6481_v5, %v12024_v63  ;;  %v12392_v63 = vsub.s32 3, %v12388_v57 }
 0x7b6   :  { %v6490_v54 = vadd.f32 %v6488_v27, %v6376_v51 }
 0x7b8   :  { %6493 = vst.msk [vmem:[#allocation4] sm:$0xf] %vm12036_vm4, %v6490_v54 }
 0x7bf   :  { %v6498_v35 = vld [vmem:[#allocation4] sm:$0xf] }
 0x7f1   :  { %v6503_v26 = vpop.permute.xlu1 %6502 }
 0x7f2   :  { %v6508_v32 = vrot.slane %v6503_v26, %v12353_v62 }
 0x7f4   :  { %9366 = vrcp.f32 %v6508_v32 }
 0x7fe   :  { %v9367_v23 = vpop.eup %9366 }
 0x7ff   :  { %v6510_v28 = vmul.f32 %v9367_v23, %v6498_v35 }
 0x801   :  { %6511 = vst.msk [vmem:[#allocation10] sm:$0xf] %vm12036_vm4, %v6510_v28  ;;  %v6520_v41 = vrot.slane %v6510_v28, %v12391_v30  ;;  %v6516_v7 = vrot.slane %v6510_v28, %v12353_v62  ;;  %v6528_v4 = vrot.slane %v6510_v28, %v12392_v63  ;;  %v8963_v62 = vld [vmem:[%s12215_s9 + $0x88] sm:$0xff]   ;;  %v6524_v60 = vrot.slane %v6510_v28, %v12393_v44 }
 0x803   :  { %v6534_v37 = vpack.c.bf16 %v6520_v41, %v6520_v41  ;;  %v6533_v50 = vpack.c.bf16 %v6516_v7, %v6516_v7  ;;  %v6536_v19 = vpack.c.bf16 %v6528_v4, %v6528_v4  ;;  %v6535_v31 = vpack.c.bf16 %v6524_v60, %v6524_v60 }
 0x805   :  { %6826 = vmatprep.mubr.bf16.mxu1 %v6534_v37 }
 0x806   :  { %6827 = vmatmul.mubr.bf16.vlgmr.msra.gmra.mrb[132].mxu1 %v6533_v50 }
 0x807   :  { %7570 = vmatpush3.bf16.msra.mxu1 %v8961_v42  ;;  %6866 = vmatprep.mubr.bf16.mxu1 %v6536_v19 }
 0x808   :  { %7571 = vmatprep.subr.bf16.mxu1 %v8962_v59 }
 0x80b   :  { %7572 = vmatpush3.bf16.msra.mxu1 %v8963_v62 }
 0x80c   :  { %7573 = vmatprep.subr.bf16.mxu1 %v8964_v56 }
 0x80f   :  { %7574 = vmatpush3.bf16.msra.mxu1 %v8965_v52 }
 0x810   :  { %7575 = vmatprep.subr.bf16.mxu1 %v8966_v8 }
 0x813   :  { %7576 = vmatpush3.bf16.msra.mxu1 %v8967_v34 }
 0x814   :  { %7577 = vmatprep.subr.bf16.mxu1 %v8968_v9 }
 0x817   :  { %7578 = vmatpush3.bf16.msra.mxu1 %v8969_v3 }
 0x818   :  { %7579 = vmatprep.subr.bf16.mxu1 %v8970_v33 }
 0x81b   :  { %7580 = vmatpush3.bf16.msra.mxu1 %v8971_v21 }
 0x81c   :  { %7581 = vmatprep.subr.bf16.mxu1 %v8972_v47 }
 0x81f   :  { %7582 = vmatpush3.bf16.msra.mxu1 %v8973_v22 }
 0x820   :  { %7583 = vmatprep.subr.bf16.mxu1 %v8974_v58 }
 0x823   :  { %7584 = vmatpush3.bf16.msra.mxu1 %v8975_v29 }
 0x826   :  { %6867 = vmatmul.mubr.bf16.vlgmr.msra.gmra.mrb[136].mxu1 %v6535_v31 }
 0x8d9   :  { %v7563_v10 = vpop.f32.mrb[132].mxu1 }
 0x8da   :  { %v7564_v14 = vpop.f32.mrb[133].mxu1 }
 0x8db   :  { %v7565_v24 = vadd.f32 %v7564_v14, %v7563_v10  ;;  %v7566_v43 = vpop.f32.mrb[134].mxu1 }
 0x8dc   :  { %v7567_v17 = vpop.f32.mrb[135].mxu1 }
 0x8dd   :  { %v6829_v6 = vadd.f32 %v7565_v24, %v6601_v39 }
 0x8f9   :  { %v7585_v46 = vpop.f32.mrb[136].mxu1 }
 0x8fa   :  { %v7586_v15 = vpop.f32.mrb[137].mxu1 }
 0x8fb   :  { %v7587_v48 = vadd.f32 %v7586_v15, %v7585_v46  ;;  %v7588_v20 = vpop.f32.mrb[138].mxu1 }
 0x8fc   :  { %v7589_v55 = vpop.f32.mrb[139].mxu1 }
 0x8fd   :  { %v6869_v57 = vadd.f32 %v7587_v48, %v6829_v6 }
 0x8ff   :  { %v6876_v36 = vsel %vm6874_vm6, %v6869_v57, -inf  ;;  %6875 = vst.msk [vmem:[%s12218_s12] sm:$0x1] %vm6874_vm6, %v6869_v57 }
 0x900   :  { %6877 = vmax.xlane.f32.xlu0 %v6876_v36 }
 0x98d   :  { %v6878_v2 = vpop.xlane.xlu0 %6877 }
 0x98e   :  { %v6879_v13 = vsub.f32 %v6869_v57, %v6878_v2 }
 0x990   :  { %v6880_v53 = vmul.f32 1.442695, %v6879_v13 }
 0x992   :  { %9368 = vpow2.f32 %v6880_v53 }
 0x99c   :  { %v9369_v18 = vpop.eup %9368 }
 0x99d   :  { %v6882_v61 = vsel %vm6874_vm6, %v9369_v18, 0.0 }
 0x99e   :  { %6883 = vadd.xlane.f32.xlu1 %v6882_v61 }
 0x99f   :  { %9383 = shalt.err (!%p9380_p4)
}
 0x9a0   :  { %s9384_s5 = scalar_lea.hbm %s12217_s11, 32 }
 0x9a1   :  { %p9385_p5 = scmp.ne.s32.totalorder %s12217_s11, %s9384_s5  ;;  %p9388_p6 = scmp.lt.u32.totalorder %s9384_s5, %s12217_s11 }
 0x9a3   :  { %p9390_p7 = pnand %p9388_p6, %p9385_p5 }
 0x9a5   :  { %9393 = shalt.err (!%p9390_p7)
}
 0x9a6   :  { %6897 = dma.vmem_to_hbm [thread:$0]  %s6895_s20, 32, %s12217_s11, [#allocation7]  }
 0x9a7   :  { %s9447_s24 = smov [#allocation8]   ;;  %s9448_s26 = smov [#allocation10]  }
 0x9a8   :  { %s6906_s25 = sshll.u32 %s9447_s24, 4  ;;  %s6916_s27 = sshll.u32 %s9448_s26, 4  ;;  %s6907_s25 = int_to_ptr.vmem [resolvable:$true] %s6906_s25  ;;  %s6917_s27 = int_to_ptr.vmem [resolvable:$true] %s6916_s27 }
 0x9a9   :  { %s9394_s28 = scalar_lea.vmem %s6907_s25, 16  ;;  %s9398_s29 = scalar_lea.vmem %s6907_s25, 32 }
 0x9aa   :  { %p9395_p8 = scmp.ne.s32.totalorder %s6907_s25, %s9394_s28  ;;  %p9399_p9 = scmp.lt.s32.totalorder %s6907_s25, %s6907_s25 }
 0x9ab   :  { %p9400_p10 = scmp.lt.s32.totalorder %s9398_s29, %s9394_s28 }
 0x9ad   :  { %p9401_p11 = por %p9400_p10, %p9399_p9 }
 0x9af   :  { %p9402_p12 = pnand %p9401_p11, %p9395_p8 }
 0xa2b   :  { %v6884_v45 = vpop.xlane.xlu1 %6883 }
 0xa2c   :  { %9370 = vrcp.f32 %v6884_v45 }
 0xa36   :  { %v9371_v11 = vpop.eup %9370 }
 0xa37   :  { %v6886_v16 = vmul.f32 %v9371_v11, %v9369_v18 }
 0xa39   :  { %6887 = vst.msk [vmem:[#allocation8] sm:$0x1] %vm6874_vm6, %v6886_v16 }
 0xa3a   :  { %9405 = shalt.err (!%p9402_p12)
}
 0xa3b   :  { %s9406_s15 = scalar_lea.hbm %s12219_s13, 16 }
 0xa3c   :  { %p9407_p13 = scmp.ne.s32.totalorder %s12219_s13, %s9406_s15  ;;  %p9410_p0 = scmp.lt.u32.totalorder %s9406_s15, %s12219_s13 }
 0xa3e   :  { %p9412_p1 = pnand %p9410_p0, %p9407_p13 }
 0xa40   :  { %9415 = shalt.err (!%p9412_p1)
}
 0xa41   :  { %6909 = dma.vmem_to_hbm [thread:$0]  %s6907_s25, 16, %s12219_s13, [#allocation9]  }
 0xa42   :  { %s9416_s9 = scalar_lea.vmem %s6917_s27, 64  ;;  %p9421_p3 = scmp.lt.s32.totalorder %s6917_s27, %s6917_s27 }
 0xa43   :  { %p9417_p2 = scmp.ne.s32.totalorder %s6917_s27, %s9416_s9  ;;  %p9422_p4 = scmp.lt.s32.totalorder %s9416_s9, %s9416_s9 }
 0xa45   :  { %p9423_p5 = por %p9422_p4, %p9421_p3 }
 0xa47   :  { %p9424_p6 = pnand %p9423_p5, %p9417_p2 }
 0xa49   :  { %9427 = shalt.err (!%p9424_p6)
}
 0xa4a   :  { %s9428_s20 = scalar_lea.hbm %s12220_s14, 64 }
 0xa4b   :  { %p9429_p7 = scmp.ne.s32.totalorder %s12220_s14, %s9428_s20  ;;  %p9432_p8 = scmp.lt.u32.totalorder %s9428_s20, %s12220_s14 }
 0xa4d   :  { %p9434_p9 = pnand %p9432_p8, %p9429_p7 }
 0xa4f   :  { %9437 = shalt.err (!%p9434_p9)
}
 0xa50   :  { %6919 = dma.vmem_to_hbm [thread:$0]  %s6917_s27, 64, %s12220_s14, [#allocation9]  }
 0xa51   :  { %9438 = dma.done.wait [#allocation7], 32  }
 0xa52   :  { %9439 = vsyncadd [#allocation7], 4294967264 }
 0xa53   :  { %9440 = dma.done.wait [#allocation9], 80  }
 0xa54   :  { %9441 = vsyncadd [#allocation9], 4294967216 }
 0xa55   :  { %6931 = vsyncpa [#allocation7], 1 }
 0xa56   :  { %6932 = vsyncpa [#allocation9], 1 }

</bundles_post_ra>
